<compile_context>
chip_gen: v5e
topology: v5e:2x2
jax: 0.10.0
libtpu: 0.0.40
codegen_flags: <defaults>
</compile_context>

<pallas_src>
import math
import functools

import jax
import jax.numpy as jnp
from jax import lax
from jax.experimental import pallas as pl
from jax.experimental.pallas import tpu as pltpu


# -----------------------------------------------------------------------------
# Pallas kernel: (x ⊙ style_k) @ Wk -> per-column scales -> per-head attention
# -> lane-concat -> @ Wo -> per-column demod_o.  One grid step = batch_block
# batch elements.
# -----------------------------------------------------------------------------
def _mha_kernel(x_ref, stk_ref, rows_ref, rowo_ref, wk_ref, wo_ref, o_ref, *,
                batch_block, head_num, head_dim):
    nt = (((1,), (0,)), ((), ()))          # plain matmul: contract lhs[-1] x rhs[0]
    wk = wk_ref[...]                       # (Cin, HID)  bf16, pre-scaled 1/sqrt(Cin)
    wo = wo_ref[...]                       # (HID, Cout) bf16, pre-scaled 1/sqrt(HID)

    def one_batch(b):
        # ---- modulated QKV projection (k_mapping), demod hoisted to rows ----
        xmod = x_ref[b] * stk_ref[b]                       # (N, Cin) bf16
        kqv = lax.dot_general(xmod, wk, nt,
                              preferred_element_type=jnp.float32)      # (N, HID) f32
        rows = rows_ref[b]                                 # (3, HID) f32
        q_bf = (kqv * rows[0:1, :]).astype(jnp.bfloat16)   # demod_k / sqrt(head_dim)
        k_bf = (kqv * rows[1:2, :]).astype(jnp.bfloat16)   # demod_k
        v_bf = (kqv * rows[2:3, :]).astype(jnp.bfloat16)   # demod_k * style_o

        # ---- per-head self attention (q = k = v = kqv); heads = lane slices ----
        ao_heads = []
        for h in range(head_num):                          # static, small
            sl = slice(h * head_dim, (h + 1) * head_dim)
            qh, kh, vh = q_bf[:, sl], k_bf[:, sl], v_bf[:, sl]
            s = lax.dot_general(qh, kh, (((1,), (1,)), ((), ())),
                                preferred_element_type=jnp.float32)    # (N, N)
            s = s - jnp.max(s, axis=-1, keepdims=True)
            p = jnp.exp(s)
            p = p * pl.reciprocal(jnp.sum(p, axis=-1, keepdims=True), approx=True)
            ao_heads.append(
                lax.dot_general(p.astype(jnp.bfloat16), vh, nt,
                                preferred_element_type=jnp.float32))   # (N, HD)

        # ---- output projection (o_mapping): single K=HID matmul + demod row ----
        ao = jnp.concatenate(ao_heads, axis=-1).astype(jnp.bfloat16)   # (N, HID)
        out = lax.dot_general(ao, wo, nt,
                              preferred_element_type=jnp.float32)      # (N, Cout)
        o_ref[b] = (out * rowo_ref[b]).astype(o_ref.dtype)

    if batch_block <= 2:
        for b in range(batch_block):        # tiny static unroll
            one_batch(b)
    else:
        def body(b, carry):                 # real loop bounds live ranges
            one_batch(b)
            return carry
        lax.fori_loop(0, batch_block, body, 0, unroll=False)


def _pick_batch_block(B):
    # v7x has 2 TensorCores -> keep >=2 "parallel" grid steps; v5e/v6e have one
    # TC, so the grid is a sequential loop and a single fat step is best.
    try:
        kind = jax.devices()[0].device_kind.lower()
    except Exception:
        kind = ""
    multi_tc = "7" in kind
    bb = max(1, B // 2) if (multi_tc and B >= 2) else B
    bb = min(bb, 8)
    while B % bb:                           # explicit fallback for awkward B
        bb -= 1
    return bb


# -----------------------------------------------------------------------------
# Wrapper: style affines + demodulation + weight re-layout in XLA, heavy path
# in Pallas.
# -----------------------------------------------------------------------------
def multi_head_attention_forward(params, x, s, *, head_num, batch_block=None):
    """x: (B, N, feat_dim), s: (B, s_dim) -> (B, N, out_dim)."""
    B, N, Cin = x.shape
    f32 = jnp.float32
    wk = params["wk"].astype(f32)           # (HID, Cin)
    wo = params["wo"].astype(f32)           # (Cout, HID)
    HID, Cout = wk.shape[0], wo.shape[0]
    H = head_num
    HD = HID // H
    scale_k = 1.0 / math.sqrt(Cin)
    scale_o = 1.0 / math.sqrt(HID)

    if batch_block is None:
        batch_block = _pick_batch_block(B)
    assert B % batch_block == 0
    grid = (B // batch_block,)

    s32 = s.astype(f32)
    # Style affines and demodulation for all B at once (tiny XLA matmuls).
    style_k = s32 @ params["akw"].astype(f32).T + params["akb"].astype(f32)   # (B, Cin)
    style_o = s32 @ params["aow"].astype(f32).T + params["aob"].astype(f32)   # (B, HID)
    demod_k = lax.rsqrt(scale_k ** 2 * (style_k ** 2 @ (wk ** 2).T) + 1e-8)   # (B, HID)
    demod_o = lax.rsqrt(scale_o ** 2 * (style_o ** 2 @ (wo ** 2).T) + 1e-8)   # (B, Cout)

    inv_sqrt_hd = 1.0 / math.sqrt(HD)
    rows_kqv = jnp.stack(
        [demod_k * inv_sqrt_hd,             # q column scale (1/sqrt(hd) folded in)
         demod_k,                           # k column scale
         demod_k * style_o],                # v column scale (o_mapping modulation folded)
        axis=1).astype(f32)                 # (B, 3, HID)
    rowo = demod_o.reshape(B, 1, Cout)      # (B, 1, Cout)

    # Batch-invariant, pre-scaled, bf16 weights (resident across grid steps).
    wk_t = (scale_k * wk).T.astype(jnp.bfloat16)      # (Cin, HID)
    wo_t = (scale_o * wo).T.astype(jnp.bfloat16)      # (HID, Cout)

    x_bf = x.astype(jnp.bfloat16)                      # halve the input DMA
    stk_bf = style_k.reshape(B, 1, Cin).astype(jnp.bfloat16)

    # Rough VMEM working set; only raise the scoped limit when the smallest
    # default (16 MiB on v5e) would be exceeded.  Cap below v7x's 64 MiB.
    est = (2 * batch_block * N * Cin * 2            # x double buffer (bf16)
           + 2 * batch_block * N * Cout * 4         # out double buffer (f32)
           + 2 * (Cin * HID + HID * Cout) * 2       # weights (bf16, double-buffered)
           + N * HID * 4 + 3 * N * HID * 2          # kqv + q/k/v
           + 3 * N * N * 4                          # scores / exp live copies
           + 2 * N * HID * 4 + N * Cout * 4)        # head outputs + concat + out
    cp_kwargs = {"dimension_semantics": ("parallel",)}
    if est * 3 > (16 << 20):
        cp_kwargs["vmem_limit_bytes"] = int(min(max(est * 3, 32 << 20), 48 << 20))

    kernel = functools.partial(_mha_kernel, batch_block=batch_block,
                               head_num=H, head_dim=HD)
    return pl.pallas_call(
        kernel,
        out_shape=jax.ShapeDtypeStruct((B, N, Cout), jnp.float32),
        grid=grid,
        in_specs=[
            pl.BlockSpec((batch_block, N, Cin), lambda g: (g, 0, 0)),    # x (bf16)
            pl.BlockSpec((batch_block, 1, Cin), lambda g: (g, 0, 0)),    # style_k row
            pl.BlockSpec((batch_block, 3, HID), lambda g: (g, 0, 0)),    # q/k/v scales
            pl.BlockSpec((batch_block, 1, Cout), lambda g: (g, 0, 0)),   # demod_o row
            pl.BlockSpec((Cin, HID), lambda g: (0, 0)),                  # Wk (const)
            pl.BlockSpec((HID, Cout), lambda g: (0, 0)),                 # Wo (const)
        ],
        out_specs=pl.BlockSpec((batch_block, N, Cout), lambda g: (g, 0, 0)),
        compiler_params=pltpu.CompilerParams(**cp_kwargs),
    )(x_bf, stk_bf, rows_kqv, rowo, wk_t, wo_t)


# -----------------------------------------------------------------------------
# Pure-JAX reference (mirrors the PyTorch forward) for a sanity check.
# -----------------------------------------------------------------------------
def _reference_forward(params, x, s, head_num):
    B, N, Cin = x.shape
    HID = params["wk"].shape[0]
    HD = HID // head_num

    def modulated_linear(inp, w, aw, ab, scale):
        style = s @ aw.T + ab                                   # (B, in)
        wmod = w[None] * scale * style[:, None, :]              # (B, out, in)
        wmod = wmod * lax.rsqrt(jnp.sum(wmod * wmod, axis=2, keepdims=True) + 1e-8)
        return jnp.einsum('bnc,boc->bno', inp, wmod)

    kqv = modulated_linear(x, params["wk"], params["akw"], params["akb"],
                           1.0 / math.sqrt(Cin))                # (B, N, HID)
    kqv_h = kqv.reshape(B, N, head_num, HD).transpose(0, 2, 1, 3)
    scores = jnp.einsum('bhnd,bhmd->bhnm', kqv_h, kqv_h) / math.sqrt(HD)
    attn = jax.nn.softmax(scores, axis=-1)
    ao = jnp.einsum('bhnm,bhmd->bhnd', attn, kqv_h)
    ao = ao.transpose(0, 2, 1, 3).reshape(B, N, HID)
    return modulated_linear(ao, params["wo"], params["aow"], params["aob"],
                            1.0 / math.sqrt(HID))


if __name__ == "__main__":
    B = 2
    N = 128            # token count (multiple of 128 -> lane-dense score tiles)
    feat_dim = 128     # lane-dense input/output channels
    s_dim = 16
    head_num = 4
    hidden_dim = 128   # head_dim = 32
    out_dim = feat_dim

    key = jax.random.PRNGKey(0)
    ks = jax.random.split(key, 6)
    params = {
        # k_mapping (ModulatedLinear feat_dim -> hidden_dim, style=s_dim)
        "wk": jax.random.normal(ks[0], (hidden_dim, feat_dim), jnp.float32),
        "akw": 0.1 * jax.random.normal(ks[1], (feat_dim, s_dim), jnp.float32),
        "akb": jnp.ones((1, feat_dim), jnp.float32),       # bias_init=1 style affine
        # o_mapping (ModulatedLinear hidden_dim -> out_dim, style=s_dim)
        "wo": jax.random.normal(ks[2], (out_dim, hidden_dim), jnp.float32),
        "aow": 0.1 * jax.random.normal(ks[3], (hidden_dim, s_dim), jnp.float32),
        "aob": jnp.ones((1, hidden_dim), jnp.float32),
    }
    x = 0.1 * jax.random.normal(ks[4], (B, N, feat_dim), jnp.float32)
    s = jax.random.normal(ks[5], (B, s_dim), jnp.float32)

    fwd = jax.jit(functools.partial(multi_head_attention_forward, head_num=head_num))
    out = fwd(params, x, s)
    jax.block_until_ready(out)

    assert out.shape == (B, N, out_dim)
    assert bool(jnp.all(jnp.isfinite(out)))

    ref = _reference_forward(params, x, s, head_num)
    max_err = float(jnp.max(jnp.abs(out - ref)))
    scale = float(jnp.max(jnp.abs(ref)))
    assert max_err <= 1e-2 + 3e-2 * scale, f"mismatch: {max_err} vs scale {scale}"

    print("KERNEL_OK")
</pallas_src>

<mosaic_0001>
module attributes {stable_mosaic.version = 11 : i64} {
  func.func @_mha_kernel(%arg0: i32, %arg1: memref<2x128x128xbf16, #tpu.memory_space<vmem>>, %arg2: memref<2x1x128xbf16, #tpu.memory_space<vmem>>, %arg3: memref<2x3x128xf32, #tpu.memory_space<vmem>>, %arg4: memref<2x1x128xf32, #tpu.memory_space<vmem>>, %arg5: memref<128x128xbf16, #tpu.memory_space<vmem>>, %arg6: memref<128x128xbf16, #tpu.memory_space<vmem>>, %arg7: memref<2x128x128xf32, #tpu.memory_space<vmem>>) attributes {dimension_semantics = [#tpu.dimension_semantics<parallel>], iteration_bounds = array<i64: 1>, scalar_prefetch = 0 : i64, scratch_operands = 0 : i64, tpu.core_type = #tpu.core_type<tc>, window_params = [{transform_indices = @transform_0, window_bounds = array<i64: 2, 128, 128>}, {transform_indices = @transform_1, window_bounds = array<i64: 2, 1, 128>}, {transform_indices = @transform_2, window_bounds = array<i64: 2, 3, 128>}, {transform_indices = @transform_3, window_bounds = array<i64: 2, 1, 128>}, {pipeline_mode = #tpu.pipeline_mode<synchronous>, transform_indices = @transform_4, window_bounds = array<i64: 128, 128>}, {pipeline_mode = #tpu.pipeline_mode<synchronous>, transform_indices = @transform_5, window_bounds = array<i64: 128, 128>}, {transform_indices = @transform_6, window_bounds = array<i64: 2, 128, 128>}]} {
    %c0 = arith.constant 0 : index
    %c0_0 = arith.constant 0 : index
    %0 = vector.load %arg5[%c0, %c0_0] : memref<128x128xbf16, #tpu.memory_space<vmem>>, vector<128x128xbf16>
    %c0_1 = arith.constant 0 : index
    %c0_2 = arith.constant 0 : index
    %1 = vector.load %arg6[%c0_1, %c0_2] : memref<128x128xbf16, #tpu.memory_space<vmem>>, vector<128x128xbf16>
    %c0_3 = arith.constant 0 : index
    %c0_4 = arith.constant 0 : index
    %c0_5 = arith.constant 0 : index
    %2 = vector.load %arg1[%c0_3, %c0_4, %c0_5] : memref<2x128x128xbf16, #tpu.memory_space<vmem>>, vector<1x128x128xbf16>
    %3 = vector.shape_cast %2 : vector<1x128x128xbf16> to vector<128x128xbf16>
    %c0_6 = arith.constant 0 : index
    %c0_7 = arith.constant 0 : index
    %c0_8 = arith.constant 0 : index
    %4 = vector.load %arg2[%c0_6, %c0_7, %c0_8] : memref<2x1x128xbf16, #tpu.memory_space<vmem>>, vector<1x1x128xbf16>
    %5 = vector.shape_cast %4 : vector<1x1x128xbf16> to vector<1x128xbf16>
    %6 = vector.broadcast %5 : vector<1x128xbf16> to vector<128x128xbf16>
    %7 = arith.mulf %3, %6 : vector<128x128xbf16>
    %cst = arith.constant dense<0.000000e+00> : vector<128x128xf32>
    %8 = tpu.matmul %7, %0, %cst {dimension_numbers = #tpu.dot_dimension_numbers<[1], [0], [0], [1], [0, 0, 1, 1], [], []>} : vector<128x128xbf16>, vector<128x128xbf16>, vector<128x128xf32> -> vector<128x128xf32>
    %c0_9 = arith.constant 0 : index
    %c0_10 = arith.constant 0 : index
    %c0_11 = arith.constant 0 : index
    %9 = vector.load %arg3[%c0_9, %c0_10, %c0_11] : memref<2x3x128xf32, #tpu.memory_space<vmem>>, vector<1x3x128xf32>
    %10 = vector.shape_cast %9 : vector<1x3x128xf32> to vector<3x128xf32>
    %11 = vector.extract_strided_slice %10 {offsets = [0, 0], sizes = [1, 128], strides = [1, 1]} : vector<3x128xf32> to vector<1x128xf32>
    %12 = vector.broadcast %11 : vector<1x128xf32> to vector<128x128xf32>
    %13 = arith.mulf %8, %12 : vector<128x128xf32>
    %14 = arith.truncf %13 : vector<128x128xf32> to vector<128x128xbf16>
    %15 = vector.extract_strided_slice %10 {offsets = [1, 0], sizes = [1, 128], strides = [1, 1]} : vector<3x128xf32> to vector<1x128xf32>
    %16 = vector.broadcast %15 : vector<1x128xf32> to vector<128x128xf32>
    %17 = arith.mulf %8, %16 : vector<128x128xf32>
    %18 = arith.truncf %17 : vector<128x128xf32> to vector<128x128xbf16>
    %19 = vector.extract_strided_slice %10 {offsets = [2, 0], sizes = [1, 128], strides = [1, 1]} : vector<3x128xf32> to vector<1x128xf32>
    %20 = vector.broadcast %19 : vector<1x128xf32> to vector<128x128xf32>
    %21 = arith.mulf %8, %20 : vector<128x128xf32>
    %22 = arith.truncf %21 : vector<128x128xf32> to vector<128x128xbf16>
    %23 = vector.extract_strided_slice %14 {offsets = [0, 0], sizes = [128, 32], strides = [1, 1]} : vector<128x128xbf16> to vector<128x32xbf16>
    %24 = vector.extract_strided_slice %18 {offsets = [0, 0], sizes = [128, 32], strides = [1, 1]} : vector<128x128xbf16> to vector<128x32xbf16>
    %25 = vector.extract_strided_slice %22 {offsets = [0, 0], sizes = [128, 32], strides = [1, 1]} : vector<128x128xbf16> to vector<128x32xbf16>
    %cst_12 = arith.constant dense<0.000000e+00> : vector<128x128xf32>
    %26 = tpu.matmul %23, %24, %cst_12 {dimension_numbers = #tpu.dot_dimension_numbers<[1], [1], [0], [0], [0, 0, 1, 0], [], []>} : vector<128x32xbf16>, vector<128x32xbf16>, vector<128x128xf32> -> vector<128x128xf32>
    %cst_13 = arith.constant dense<0xFF800000> : vector<128xf32>
    %27 = vector.multi_reduction <maximumf>, %26, %cst_13 [1] : vector<128x128xf32> to vector<128xf32>
    %28 = vector.shape_cast %27 : vector<128xf32> to vector<128x1xf32>
    %29 = vector.broadcast %28 : vector<128x1xf32> to vector<128x128xf32>
    %30 = arith.subf %26, %29 : vector<128x128xf32>
    %31 = math.exp %30 : vector<128x128xf32>
    %cst_14 = arith.constant dense<0.000000e+00> : vector<128xf32>
    %32 = vector.multi_reduction <add>, %31, %cst_14 [1] : vector<128x128xf32> to vector<128xf32>
    %33 = vector.shape_cast %32 : vector<128xf32> to vector<128x1xf32>
    %34 = tpu.reciprocal %33 {approx = true} : vector<128x1xf32> -> vector<128x1xf32>
    %35 = vector.broadcast %34 : vector<128x1xf32> to vector<128x128xf32>
    %36 = arith.mulf %31, %35 : vector<128x128xf32>
    %37 = arith.truncf %36 : vector<128x128xf32> to vector<128x128xbf16>
    %cst_15 = arith.constant dense<0.000000e+00> : vector<128x32xf32>
    %38 = tpu.matmul %37, %25, %cst_15 {dimension_numbers = #tpu.dot_dimension_numbers<[1], [0], [0], [1], [0, 0, 1, 1], [], []>} : vector<128x128xbf16>, vector<128x32xbf16>, vector<128x32xf32> -> vector<128x32xf32>
    %39 = vector.extract_strided_slice %14 {offsets = [0, 32], sizes = [128, 32], strides = [1, 1]} : vector<128x128xbf16> to vector<128x32xbf16>
    %40 = vector.extract_strided_slice %18 {offsets = [0, 32], sizes = [128, 32], strides = [1, 1]} : vector<128x128xbf16> to vector<128x32xbf16>
    %41 = vector.extract_strided_slice %22 {offsets = [0, 32], sizes = [128, 32], strides = [1, 1]} : vector<128x128xbf16> to vector<128x32xbf16>
    %cst_16 = arith.constant dense<0.000000e+00> : vector<128x128xf32>
    %42 = tpu.matmul %39, %40, %cst_16 {dimension_numbers = #tpu.dot_dimension_numbers<[1], [1], [0], [0], [0, 0, 1, 0], [], []>} : vector<128x32xbf16>, vector<128x32xbf16>, vector<128x128xf32> -> vector<128x128xf32>
    %cst_17 = arith.constant dense<0xFF800000> : vector<128xf32>
    %43 = vector.multi_reduction <maximumf>, %42, %cst_17 [1] : vector<128x128xf32> to vector<128xf32>
    %44 = vector.shape_cast %43 : vector<128xf32> to vector<128x1xf32>
    %45 = vector.broadcast %44 : vector<128x1xf32> to vector<128x128xf32>
    %46 = arith.subf %42, %45 : vector<128x128xf32>
    %47 = math.exp %46 : vector<128x128xf32>
    %cst_18 = arith.constant dense<0.000000e+00> : vector<128xf32>
    %48 = vector.multi_reduction <add>, %47, %cst_18 [1] : vector<128x128xf32> to vector<128xf32>
    %49 = vector.shape_cast %48 : vector<128xf32> to vector<128x1xf32>
    %50 = tpu.reciprocal %49 {approx = true} : vector<128x1xf32> -> vector<128x1xf32>
    %51 = vector.broadcast %50 : vector<128x1xf32> to vector<128x128xf32>
    %52 = arith.mulf %47, %51 : vector<128x128xf32>
    %53 = arith.truncf %52 : vector<128x128xf32> to vector<128x128xbf16>
    %cst_19 = arith.constant dense<0.000000e+00> : vector<128x32xf32>
    %54 = tpu.matmul %53, %41, %cst_19 {dimension_numbers = #tpu.dot_dimension_numbers<[1], [0], [0], [1], [0, 0, 1, 1], [], []>} : vector<128x128xbf16>, vector<128x32xbf16>, vector<128x32xf32> -> vector<128x32xf32>
    %55 = vector.extract_strided_slice %14 {offsets = [0, 64], sizes = [128, 32], strides = [1, 1]} : vector<128x128xbf16> to vector<128x32xbf16>
    %56 = vector.extract_strided_slice %18 {offsets = [0, 64], sizes = [128, 32], strides = [1, 1]} : vector<128x128xbf16> to vector<128x32xbf16>
    %57 = vector.extract_strided_slice %22 {offsets = [0, 64], sizes = [128, 32], strides = [1, 1]} : vector<128x128xbf16> to vector<128x32xbf16>
    %cst_20 = arith.constant dense<0.000000e+00> : vector<128x128xf32>
    %58 = tpu.matmul %55, %56, %cst_20 {dimension_numbers = #tpu.dot_dimension_numbers<[1], [1], [0], [0], [0, 0, 1, 0], [], []>} : vector<128x32xbf16>, vector<128x32xbf16>, vector<128x128xf32> -> vector<128x128xf32>
    %cst_21 = arith.constant dense<0xFF800000> : vector<128xf32>
    %59 = vector.multi_reduction <maximumf>, %58, %cst_21 [1] : vector<128x128xf32> to vector<128xf32>
    %60 = vector.shape_cast %59 : vector<128xf32> to vector<128x1xf32>
    %61 = vector.broadcast %60 : vector<128x1xf32> to vector<128x128xf32>
    %62 = arith.subf %58, %61 : vector<128x128xf32>
    %63 = math.exp %62 : vector<128x128xf32>
    %cst_22 = arith.constant dense<0.000000e+00> : vector<128xf32>
    %64 = vector.multi_reduction <add>, %63, %cst_22 [1] : vector<128x128xf32> to vector<128xf32>
    %65 = vector.shape_cast %64 : vector<128xf32> to vector<128x1xf32>
    %66 = tpu.reciprocal %65 {approx = true} : vector<128x1xf32> -> vector<128x1xf32>
    %67 = vector.broadcast %66 : vector<128x1xf32> to vector<128x128xf32>
    %68 = arith.mulf %63, %67 : vector<128x128xf32>
    %69 = arith.truncf %68 : vector<128x128xf32> to vector<128x128xbf16>
    %cst_23 = arith.constant dense<0.000000e+00> : vector<128x32xf32>
    %70 = tpu.matmul %69, %57, %cst_23 {dimension_numbers = #tpu.dot_dimension_numbers<[1], [0], [0], [1], [0, 0, 1, 1], [], []>} : vector<128x128xbf16>, vector<128x32xbf16>, vector<128x32xf32> -> vector<128x32xf32>
    %71 = vector.extract_strided_slice %14 {offsets = [0, 96], sizes = [128, 32], strides = [1, 1]} : vector<128x128xbf16> to vector<128x32xbf16>
    %72 = vector.extract_strided_slice %18 {offsets = [0, 96], sizes = [128, 32], strides = [1, 1]} : vector<128x128xbf16> to vector<128x32xbf16>
    %73 = vector.extract_strided_slice %22 {offsets = [0, 96], sizes = [128, 32], strides = [1, 1]} : vector<128x128xbf16> to vector<128x32xbf16>
    %cst_24 = arith.constant dense<0.000000e+00> : vector<128x128xf32>
    %74 = tpu.matmul %71, %72, %cst_24 {dimension_numbers = #tpu.dot_dimension_numbers<[1], [1], [0], [0], [0, 0, 1, 0], [], []>} : vector<128x32xbf16>, vector<128x32xbf16>, vector<128x128xf32> -> vector<128x128xf32>
    %cst_25 = arith.constant dense<0xFF800000> : vector<128xf32>
    %75 = vector.multi_reduction <maximumf>, %74, %cst_25 [1] : vector<128x128xf32> to vector<128xf32>
    %76 = vector.shape_cast %75 : vector<128xf32> to vector<128x1xf32>
    %77 = vector.broadcast %76 : vector<128x1xf32> to vector<128x128xf32>
    %78 = arith.subf %74, %77 : vector<128x128xf32>
    %79 = math.exp %78 : vector<128x128xf32>
    %cst_26 = arith.constant dense<0.000000e+00> : vector<128xf32>
    %80 = vector.multi_reduction <add>, %79, %cst_26 [1] : vector<128x128xf32> to vector<128xf32>
    %81 = vector.shape_cast %80 : vector<128xf32> to vector<128x1xf32>
    %82 = tpu.reciprocal %81 {approx = true} : vector<128x1xf32> -> vector<128x1xf32>
    %83 = vector.broadcast %82 : vector<128x1xf32> to vector<128x128xf32>
    %84 = arith.mulf %79, %83 : vector<128x128xf32>
    %85 = arith.truncf %84 : vector<128x128xf32> to vector<128x128xbf16>
    %cst_27 = arith.constant dense<0.000000e+00> : vector<128x32xf32>
    %86 = tpu.matmul %85, %73, %cst_27 {dimension_numbers = #tpu.dot_dimension_numbers<[1], [0], [0], [1], [0, 0, 1, 1], [], []>} : vector<128x128xbf16>, vector<128x32xbf16>, vector<128x32xf32> -> vector<128x32xf32>
    %87 = tpu.concatenate %38, %54, %70, %86 in 1 : vector<128x32xf32>, vector<128x32xf32>, vector<128x32xf32>, vector<128x32xf32> -> vector<128x128xf32>
    %88 = arith.truncf %87 : vector<128x128xf32> to vector<128x128xbf16>
    %cst_28 = arith.constant dense<0.000000e+00> : vector<128x128xf32>
    %89 = tpu.matmul %88, %1, %cst_28 {dimension_numbers = #tpu.dot_dimension_numbers<[1], [0], [0], [1], [0, 0, 1, 1], [], []>} : vector<128x128xbf16>, vector<128x128xbf16>, vector<128x128xf32> -> vector<128x128xf32>
    %c0_29 = arith.constant 0 : index
    %c0_30 = arith.constant 0 : index
    %c0_31 = arith.constant 0 : index
    %90 = vector.load %arg4[%c0_29, %c0_30, %c0_31] : memref<2x1x128xf32, #tpu.memory_space<vmem>>, vector<1x1x128xf32>
    %91 = vector.shape_cast %90 : vector<1x1x128xf32> to vector<1x128xf32>
    %92 = vector.broadcast %91 : vector<1x128xf32> to vector<128x128xf32>
    %93 = arith.mulf %89, %92 : vector<128x128xf32>
    %c0_32 = arith.constant 0 : index
    %c0_33 = arith.constant 0 : index
    %c0_34 = arith.constant 0 : index
    %94 = vector.load %arg7[%c0_32, %c0_33, %c0_34] : memref<2x128x128xf32, #tpu.memory_space<vmem>>, vector<1x128x128xf32>
    %95 = vector.shape_cast %94 : vector<1x128x128xf32> to vector<128x128xf32>
    %96 = vector.shape_cast %93 : vector<128x128xf32> to vector<1x128x128xf32>
    tpu.vector_store %arg7[%c0_32, %c0_33, %c0_34], %96 {strides = array<i32>} : memref<2x128x128xf32, #tpu.memory_space<vmem>>, vector<1x128x128xf32>,
    %c1 = arith.constant 1 : index
    %c0_35 = arith.constant 0 : index
    %c0_36 = arith.constant 0 : index
    %97 = vector.load %arg1[%c1, %c0_35, %c0_36] : memref<2x128x128xbf16, #tpu.memory_space<vmem>>, vector<1x128x128xbf16>
    %98 = vector.shape_cast %97 : vector<1x128x128xbf16> to vector<128x128xbf16>
    %c1_37 = arith.constant 1 : index
    %c0_38 = arith.constant 0 : index
    %c0_39 = arith.constant 0 : index
    %99 = vector.load %arg2[%c1_37, %c0_38, %c0_39] : memref<2x1x128xbf16, #tpu.memory_space<vmem>>, vector<1x1x128xbf16>
    %100 = vector.shape_cast %99 : vector<1x1x128xbf16> to vector<1x128xbf16>
    %101 = vector.broadcast %100 : vector<1x128xbf16> to vector<128x128xbf16>
    %102 = arith.mulf %98, %101 : vector<128x128xbf16>
    %cst_40 = arith.constant dense<0.000000e+00> : vector<128x128xf32>
    %103 = tpu.matmul %102, %0, %cst_40 {dimension_numbers = #tpu.dot_dimension_numbers<[1], [0], [0], [1], [0, 0, 1, 1], [], []>} : vector<128x128xbf16>, vector<128x128xbf16>, vector<128x128xf32> -> vector<128x128xf32>
    %c1_41 = arith.constant 1 : index
    %c0_42 = arith.constant 0 : index
    %c0_43 = arith.constant 0 : index
    %104 = vector.load %arg3[%c1_41, %c0_42, %c0_43] : memref<2x3x128xf32, #tpu.memory_space<vmem>>, vector<1x3x128xf32>
    %105 = vector.shape_cast %104 : vector<1x3x128xf32> to vector<3x128xf32>
    %106 = vector.extract_strided_slice %105 {offsets = [0, 0], sizes = [1, 128], strides = [1, 1]} : vector<3x128xf32> to vector<1x128xf32>
    %107 = vector.broadcast %106 : vector<1x128xf32> to vector<128x128xf32>
    %108 = arith.mulf %103, %107 : vector<128x128xf32>
    %109 = arith.truncf %108 : vector<128x128xf32> to vector<128x128xbf16>
    %110 = vector.extract_strided_slice %105 {offsets = [1, 0], sizes = [1, 128], strides = [1, 1]} : vector<3x128xf32> to vector<1x128xf32>
    %111 = vector.broadcast %110 : vector<1x128xf32> to vector<128x128xf32>
    %112 = arith.mulf %103, %111 : vector<128x128xf32>
    %113 = arith.truncf %112 : vector<128x128xf32> to vector<128x128xbf16>
    %114 = vector.extract_strided_slice %105 {offsets = [2, 0], sizes = [1, 128], strides = [1, 1]} : vector<3x128xf32> to vector<1x128xf32>
    %115 = vector.broadcast %114 : vector<1x128xf32> to vector<128x128xf32>
    %116 = arith.mulf %103, %115 : vector<128x128xf32>
    %117 = arith.truncf %116 : vector<128x128xf32> to vector<128x128xbf16>
    %118 = vector.extract_strided_slice %109 {offsets = [0, 0], sizes = [128, 32], strides = [1, 1]} : vector<128x128xbf16> to vector<128x32xbf16>
    %119 = vector.extract_strided_slice %113 {offsets = [0, 0], sizes = [128, 32], strides = [1, 1]} : vector<128x128xbf16> to vector<128x32xbf16>
    %120 = vector.extract_strided_slice %117 {offsets = [0, 0], sizes = [128, 32], strides = [1, 1]} : vector<128x128xbf16> to vector<128x32xbf16>
    %cst_44 = arith.constant dense<0.000000e+00> : vector<128x128xf32>
    %121 = tpu.matmul %118, %119, %cst_44 {dimension_numbers = #tpu.dot_dimension_numbers<[1], [1], [0], [0], [0, 0, 1, 0], [], []>} : vector<128x32xbf16>, vector<128x32xbf16>, vector<128x128xf32> -> vector<128x128xf32>
    %cst_45 = arith.constant dense<0xFF800000> : vector<128xf32>
    %122 = vector.multi_reduction <maximumf>, %121, %cst_45 [1] : vector<128x128xf32> to vector<128xf32>
    %123 = vector.shape_cast %122 : vector<128xf32> to vector<128x1xf32>
    %124 = vector.broadcast %123 : vector<128x1xf32> to vector<128x128xf32>
    %125 = arith.subf %121, %124 : vector<128x128xf32>
    %126 = math.exp %125 : vector<128x128xf32>
    %cst_46 = arith.constant dense<0.000000e+00> : vector<128xf32>
    %127 = vector.multi_reduction <add>, %126, %cst_46 [1] : vector<128x128xf32> to vector<128xf32>
    %128 = vector.shape_cast %127 : vector<128xf32> to vector<128x1xf32>
    %129 = tpu.reciprocal %128 {approx = true} : vector<128x1xf32> -> vector<128x1xf32>
    %130 = vector.broadcast %129 : vector<128x1xf32> to vector<128x128xf32>
    %131 = arith.mulf %126, %130 : vector<128x128xf32>
    %132 = arith.truncf %131 : vector<128x128xf32> to vector<128x128xbf16>
    %cst_47 = arith.constant dense<0.000000e+00> : vector<128x32xf32>
    %133 = tpu.matmul %132, %120, %cst_47 {dimension_numbers = #tpu.dot_dimension_numbers<[1], [0], [0], [1], [0, 0, 1, 1], [], []>} : vector<128x128xbf16>, vector<128x32xbf16>, vector<128x32xf32> -> vector<128x32xf32>
    %134 = vector.extract_strided_slice %109 {offsets = [0, 32], sizes = [128, 32], strides = [1, 1]} : vector<128x128xbf16> to vector<128x32xbf16>
    %135 = vector.extract_strided_slice %113 {offsets = [0, 32], sizes = [128, 32], strides = [1, 1]} : vector<128x128xbf16> to vector<128x32xbf16>
    %136 = vector.extract_strided_slice %117 {offsets = [0, 32], sizes = [128, 32], strides = [1, 1]} : vector<128x128xbf16> to vector<128x32xbf16>
    %cst_48 = arith.constant dense<0.000000e+00> : vector<128x128xf32>
    %137 = tpu.matmul %134, %135, %cst_48 {dimension_numbers = #tpu.dot_dimension_numbers<[1], [1], [0], [0], [0, 0, 1, 0], [], []>} : vector<128x32xbf16>, vector<128x32xbf16>, vector<128x128xf32> -> vector<128x128xf32>
    %cst_49 = arith.constant dense<0xFF800000> : vector<128xf32>
    %138 = vector.multi_reduction <maximumf>, %137, %cst_49 [1] : vector<128x128xf32> to vector<128xf32>
    %139 = vector.shape_cast %138 : vector<128xf32> to vector<128x1xf32>
    %140 = vector.broadcast %139 : vector<128x1xf32> to vector<128x128xf32>
    %141 = arith.subf %137, %140 : vector<128x128xf32>
    %142 = math.exp %141 : vector<128x128xf32>
    %cst_50 = arith.constant dense<0.000000e+00> : vector<128xf32>
    %143 = vector.multi_reduction <add>, %142, %cst_50 [1] : vector<128x128xf32> to vector<128xf32>
    %144 = vector.shape_cast %143 : vector<128xf32> to vector<128x1xf32>
    %145 = tpu.reciprocal %144 {approx = true} : vector<128x1xf32> -> vector<128x1xf32>
    %146 = vector.broadcast %145 : vector<128x1xf32> to vector<128x128xf32>
    %147 = arith.mulf %142, %146 : vector<128x128xf32>
    %148 = arith.truncf %147 : vector<128x128xf32> to vector<128x128xbf16>
    %cst_51 = arith.constant dense<0.000000e+00> : vector<128x32xf32>
    %149 = tpu.matmul %148, %136, %cst_51 {dimension_numbers = #tpu.dot_dimension_numbers<[1], [0], [0], [1], [0, 0, 1, 1], [], []>} : vector<128x128xbf16>, vector<128x32xbf16>, vector<128x32xf32> -> vector<128x32xf32>
    %150 = vector.extract_strided_slice %109 {offsets = [0, 64], sizes = [128, 32], strides = [1, 1]} : vector<128x128xbf16> to vector<128x32xbf16>
    %151 = vector.extract_strided_slice %113 {offsets = [0, 64], sizes = [128, 32], strides = [1, 1]} : vector<128x128xbf16> to vector<128x32xbf16>
    %152 = vector.extract_strided_slice %117 {offsets = [0, 64], sizes = [128, 32], strides = [1, 1]} : vector<128x128xbf16> to vector<128x32xbf16>
    %cst_52 = arith.constant dense<0.000000e+00> : vector<128x128xf32>
    %153 = tpu.matmul %150, %151, %cst_52 {dimension_numbers = #tpu.dot_dimension_numbers<[1], [1], [0], [0], [0, 0, 1, 0], [], []>} : vector<128x32xbf16>, vector<128x32xbf16>, vector<128x128xf32> -> vector<128x128xf32>
    %cst_53 = arith.constant dense<0xFF800000> : vector<128xf32>
    %154 = vector.multi_reduction <maximumf>, %153, %cst_53 [1] : vector<128x128xf32> to vector<128xf32>
    %155 = vector.shape_cast %154 : vector<128xf32> to vector<128x1xf32>
    %156 = vector.broadcast %155 : vector<128x1xf32> to vector<128x128xf32>
    %157 = arith.subf %153, %156 : vector<128x128xf32>
    %158 = math.exp %157 : vector<128x128xf32>
    %cst_54 = arith.constant dense<0.000000e+00> : vector<128xf32>
    %159 = vector.multi_reduction <add>, %158, %cst_54 [1] : vector<128x128xf32> to vector<128xf32>
    %160 = vector.shape_cast %159 : vector<128xf32> to vector<128x1xf32>
    %161 = tpu.reciprocal %160 {approx = true} : vector<128x1xf32> -> vector<128x1xf32>
    %162 = vector.broadcast %161 : vector<128x1xf32> to vector<128x128xf32>
    %163 = arith.mulf %158, %162 : vector<128x128xf32>
    %164 = arith.truncf %163 : vector<128x128xf32> to vector<128x128xbf16>
    %cst_55 = arith.constant dense<0.000000e+00> : vector<128x32xf32>
    %165 = tpu.matmul %164, %152, %cst_55 {dimension_numbers = #tpu.dot_dimension_numbers<[1], [0], [0], [1], [0, 0, 1, 1], [], []>} : vector<128x128xbf16>, vector<128x32xbf16>, vector<128x32xf32> -> vector<128x32xf32>
    %166 = vector.extract_strided_slice %109 {offsets = [0, 96], sizes = [128, 32], strides = [1, 1]} : vector<128x128xbf16> to vector<128x32xbf16>
    %167 = vector.extract_strided_slice %113 {offsets = [0, 96], sizes = [128, 32], strides = [1, 1]} : vector<128x128xbf16> to vector<128x32xbf16>
    %168 = vector.extract_strided_slice %117 {offsets = [0, 96], sizes = [128, 32], strides = [1, 1]} : vector<128x128xbf16> to vector<128x32xbf16>
    %cst_56 = arith.constant dense<0.000000e+00> : vector<128x128xf32>
    %169 = tpu.matmul %166, %167, %cst_56 {dimension_numbers = #tpu.dot_dimension_numbers<[1], [1], [0], [0], [0, 0, 1, 0], [], []>} : vector<128x32xbf16>, vector<128x32xbf16>, vector<128x128xf32> -> vector<128x128xf32>
    %cst_57 = arith.constant dense<0xFF800000> : vector<128xf32>
    %170 = vector.multi_reduction <maximumf>, %169, %cst_57 [1] : vector<128x128xf32> to vector<128xf32>
    %171 = vector.shape_cast %170 : vector<128xf32> to vector<128x1xf32>
    %172 = vector.broadcast %171 : vector<128x1xf32> to vector<128x128xf32>
    %173 = arith.subf %169, %172 : vector<128x128xf32>
    %174 = math.exp %173 : vector<128x128xf32>
    %cst_58 = arith.constant dense<0.000000e+00> : vector<128xf32>
    %175 = vector.multi_reduction <add>, %174, %cst_58 [1] : vector<128x128xf32> to vector<128xf32>
    %176 = vector.shape_cast %175 : vector<128xf32> to vector<128x1xf32>
    %177 = tpu.reciprocal %176 {approx = true} : vector<128x1xf32> -> vector<128x1xf32>
    %178 = vector.broadcast %177 : vector<128x1xf32> to vector<128x128xf32>
    %179 = arith.mulf %174, %178 : vector<128x128xf32>
    %180 = arith.truncf %179 : vector<128x128xf32> to vector<128x128xbf16>
    %cst_59 = arith.constant dense<0.000000e+00> : vector<128x32xf32>
    %181 = tpu.matmul %180, %168, %cst_59 {dimension_numbers = #tpu.dot_dimension_numbers<[1], [0], [0], [1], [0, 0, 1, 1], [], []>} : vector<128x128xbf16>, vector<128x32xbf16>, vector<128x32xf32> -> vector<128x32xf32>
    %182 = tpu.concatenate %133, %149, %165, %181 in 1 : vector<128x32xf32>, vector<128x32xf32>, vector<128x32xf32>, vector<128x32xf32> -> vector<128x128xf32>
    %183 = arith.truncf %182 : vector<128x128xf32> to vector<128x128xbf16>
    %cst_60 = arith.constant dense<0.000000e+00> : vector<128x128xf32>
    %184 = tpu.matmul %183, %1, %cst_60 {dimension_numbers = #tpu.dot_dimension_numbers<[1], [0], [0], [1], [0, 0, 1, 1], [], []>} : vector<128x128xbf16>, vector<128x128xbf16>, vector<128x128xf32> -> vector<128x128xf32>
    %c1_61 = arith.constant 1 : index
    %c0_62 = arith.constant 0 : index
    %c0_63 = arith.constant 0 : index
    %185 = vector.load %arg4[%c1_61, %c0_62, %c0_63] : memref<2x1x128xf32, #tpu.memory_space<vmem>>, vector<1x1x128xf32>
    %186 = vector.shape_cast %185 : vector<1x1x128xf32> to vector<1x128xf32>
    %187 = vector.broadcast %186 : vector<1x128xf32> to vector<128x128xf32>
    %188 = arith.mulf %184, %187 : vector<128x128xf32>
    %c1_64 = arith.constant 1 : index
    %c0_65 = arith.constant 0 : index
    %c0_66 = arith.constant 0 : index
    %189 = vector.load %arg7[%c1_64, %c0_65, %c0_66] : memref<2x128x128xf32, #tpu.memory_space<vmem>>, vector<1x128x128xf32>
    %190 = vector.shape_cast %189 : vector<1x128x128xf32> to vector<128x128xf32>
    %191 = vector.shape_cast %188 : vector<128x128xf32> to vector<1x128x128xf32>
    tpu.vector_store %arg7[%c1_64, %c0_65, %c0_66], %191 {strides = array<i32>} : memref<2x128x128xf32, #tpu.memory_space<vmem>>, vector<1x128x128xf32>,
    return
  }
  func.func @transform_0(%arg0: i32) -> (i32, i32, i32) {
    %c0_i32 = arith.constant 0 : i32
    %c0_i32_0 = arith.constant 0 : i32
    %c0_i32_1 = arith.constant 0 : i32
    return %arg0, %c0_i32, %c0_i32_0 : i32, i32, i32
  }
  func.func @transform_1(%arg0: i32) -> (i32, i32, i32) {
    %c0_i32 = arith.constant 0 : i32
    %c0_i32_0 = arith.constant 0 : i32
    %c0_i32_1 = arith.constant 0 : i32
    return %arg0, %c0_i32, %c0_i32_0 : i32, i32, i32
  }
  func.func @transform_2(%arg0: i32) -> (i32, i32, i32) {
    %c0_i32 = arith.constant 0 : i32
    %c0_i32_0 = arith.constant 0 : i32
    %c0_i32_1 = arith.constant 0 : i32
    return %arg0, %c0_i32, %c0_i32_0 : i32, i32, i32
  }
  func.func @transform_3(%arg0: i32) -> (i32, i32, i32) {
    %c0_i32 = arith.constant 0 : i32
    %c0_i32_0 = arith.constant 0 : i32
    %c0_i32_1 = arith.constant 0 : i32
    return %arg0, %c0_i32, %c0_i32_0 : i32, i32, i32
  }
  func.func @transform_4(%arg0: i32) -> (i32, i32) {
    %c0_i32 = arith.constant 0 : i32
    %c0_i32_0 = arith.constant 0 : i32
    %c0_i32_1 = arith.constant 0 : i32
    return %c0_i32, %c0_i32_0 : i32, i32
  }
  func.func @transform_5(%arg0: i32) -> (i32, i32) {
    %c0_i32 = arith.constant 0 : i32
    %c0_i32_0 = arith.constant 0 : i32
    %c0_i32_1 = arith.constant 0 : i32
    return %c0_i32, %c0_i32_0 : i32, i32
  }
  func.func @transform_6(%arg0: i32) -> (i32, i32, i32) {
    %c0_i32 = arith.constant 0 : i32
    %c0_i32_0 = arith.constant 0 : i32
    %c0_i32_1 = arith.constant 0 : i32
    return %arg0, %c0_i32, %c0_i32_0 : i32, i32, i32
  }
}

</mosaic_0001>

<bundles_post_ra>
// kernel: multi_head_attention_forward.1
= control target key start
LH: loop header
LB: loop body
LE: loop exit
PB: predicated region body
PF: predicated region fallthrough
CT: control target
= control target key end

     0   :  { %s8125_s0 = inlined_call_operand.vmem [shape: bf16[2,128,128], index: 0, kind: input, shape index: {}]   ;;  %s8126_s1 = inlined_call_operand.vmem [shape: bf16[2,1,128], index: 1, kind: input, shape index: {}]   ;;  %s8127_s2 = inlined_call_operand.vmem [shape: f32[2,3,128], index: 2, kind: input, shape index: {}]   ;;  %s8128_s3 = inlined_call_operand.vmem [shape: f32[2,1,128], index: 3, kind: input, shape index: {}]   ;;  %s8129_s4 = inlined_call_operand.vmem [shape: bf16[128,128], index: 4, kind: input, shape index: {}]   ;;  %s8130_s5 = inlined_call_operand.vmem [shape: bf16[128,128], index: 5, kind: input, shape index: {}]   ;;  %s8131_s6 = inlined_call_operand.hbm [shape: f32[2,128,128], index: 6, kind: output, shape index: {}]  }
   0x1   :  { %v4396_v0 = vld [vmem:[%s8129_s4 + $0x38] sm:$0xff]  ;;  %v4395_v1 = vld [vmem:[%s8129_s4 + $0x30] sm:$0xff] }
   0x2   :  { %166 = vmatpush.bf16.msra.mxu0 %v4396_v0 }
   0x3   :  { %11 = vsyncpa [#allocation3], 0  ;;  %v4394_v2 = vld [vmem:[%s8129_s4 + $0x28] sm:$0xff]  ;;  %v4393_v3 = vld [vmem:[%s8129_s4 + $0x20] sm:$0xff]  ;;  %s5294_s9 = smov 64   ;;  %s5295_s10 = smov 96  }
   0x4   :  { %v72_v4 = vld [vmem:[%s8126_s1] sm:$0x1]  ;;  %v4392_v6 = vld [vmem:[%s8129_s4 + $0x18] sm:$0xff]  ;;  %v4391_v8 = vld [vmem:[%s8129_s4 + $0x10] sm:$0xff]  ;;  %s5296_s11 = smov 32   ;;  %vm395_vm0 = vcmask 261120  }
   0x5   :  { %v74_v5 = vpack.i.b16 %v72_v4, %v72_v4  ;;  %v4406_v9 = vld [vmem:[%s8125_s0] sm:$0xff]   ;;  %v4390_v13 = vld [vmem:[%s8129_s4 + $0x8] sm:$0xff]  ;;  %v4470_v24 = vld [vmem:[%s8125_s0 + $0x10] sm:$0xff]   ;;  %vm2012_vm1 = vcmask 523264   ;;  %vm2029_vm2 = vcmask 785408   ;;  %s4230_s19 = sshll.u32 %s8131_s6, 4  ;;  %s4231_s19 = int_to_ptr.hbm [resolvable:$true] %s4230_s19 }
   0x6   :  { %167 = vmatpush.bf16.msra.mxu0 %v4395_v1  ;;  %v4407_v10 = vunpack.c.l.bf16 %v4406_v9  ;;  %v4408_v11 = vunpack.c.h.bf16 %v4406_v9  ;;  %v4389_v16 = vld [vmem:[%s8129_s4] sm:$0xff]  ;;  %v4469_v18 = vld [vmem:[%s8125_s0 + $0x8] sm:$0xff]   ;;  %v4415_v25 = vunpack.c.l.bf16 %v4470_v24  ;;  %v4416_v26 = vunpack.c.h.bf16 %v4470_v24  ;;  %v4471_v30 = vld [vmem:[%s8125_s0 + $0x18] sm:$0xff]   ;;  %s5298_s20 = smov 128   ;;  %s5299_s21 = smov 8  }
   0x7   :  { %v76_v7 = vperm.slane %v74_v5, 0  ;;  %v4411_v19 = vunpack.c.l.bf16 %v4469_v18  ;;  %v4412_v20 = vunpack.c.h.bf16 %v4469_v18  ;;  %v4419_v31 = vunpack.c.l.bf16 %v4471_v30  ;;  %v4472_v36 = vld [vmem:[%s8125_s0 + $0x20] sm:$0xff]   ;;  %v4473_v42 = vld [vmem:[%s8125_s0 + $0x28] sm:$0xff]   ;;  %v4474_v48 = vld [vmem:[%s8125_s0 + $0x30] sm:$0xff]  }
   0x8   :  { %v4420_v32 = vunpack.c.h.bf16 %v4471_v30  ;;  %v4423_v37 = vunpack.c.l.bf16 %v4472_v36  ;;  %v4424_v38 = vunpack.c.h.bf16 %v4472_v36  ;;  %v4427_v43 = vunpack.c.l.bf16 %v4473_v42  ;;  %v4475_v54 = vld [vmem:[%s8125_s0 + $0x38] sm:$0xff]   ;;  %v215_v60 = vld [vmem:[%s8127_s2] sm:$0x7] }
   0x9   :  { %v93_v12 = vunpack.c.l.bf16 %v76_v7  ;;  %v4428_v44 = vunpack.c.h.bf16 %v4473_v42  ;;  %v4431_v49 = vunpack.c.l.bf16 %v4474_v48  ;;  %v4432_v50 = vunpack.c.h.bf16 %v4474_v48 }
   0xa   :  { %168 = vmatpush.bf16.msra.mxu0 %v4394_v2  ;;  %v4435_v55 = vunpack.c.l.bf16 %v4475_v54  ;;  %v4436_v56 = vunpack.c.h.bf16 %v4475_v54  ;;  %v5389_v61 = vperm.slane %v215_v60, 2  ;;  %v5391_v63 = vperm.slane %v215_v60, 0 }
   0xb   :  { %v94_v14 = vmul.f32 %v4407_v10, %v93_v12  ;;  %v95_v15 = vmul.f32 %v4408_v11, %v93_v12  ;;  %v96_v21 = vmul.f32 %v4411_v19, %v93_v12  ;;  %v97_v22 = vmul.f32 %v4412_v20, %v93_v12 }
   0xc   :  { %v98_v27 = vmul.f32 %v4415_v25, %v93_v12  ;;  %v99_v28 = vmul.f32 %v4416_v26, %v93_v12  ;;  %v100_v33 = vmul.f32 %v4419_v31, %v93_v12  ;;  %v101_v34 = vmul.f32 %v4420_v32, %v93_v12 }
   0xd   :  { %v110_v17 = vpack.c.bf16 %v95_v15, %v94_v14  ;;  %v111_v23 = vpack.c.bf16 %v97_v22, %v96_v21  ;;  %v102_v39 = vmul.f32 %v4423_v37, %v93_v12  ;;  %v103_v40 = vmul.f32 %v4424_v38, %v93_v12 }
   0xe   :  { %169 = vmatpush.bf16.msra.mxu0 %v4393_v3  ;;  %v112_v29 = vpack.c.bf16 %v99_v28, %v98_v27  ;;  %v113_v35 = vpack.c.bf16 %v101_v34, %v100_v33  ;;  %v104_v45 = vmul.f32 %v4427_v43, %v93_v12  ;;  %v105_v46 = vmul.f32 %v4428_v44, %v93_v12 }
   0xf   :  { %v114_v41 = vpack.c.bf16 %v103_v40, %v102_v39  ;;  %v106_v51 = vmul.f32 %v4431_v49, %v93_v12  ;;  %v107_v52 = vmul.f32 %v4432_v50, %v93_v12  ;;  %v108_v57 = vmul.f32 %v4435_v55, %v93_v12 }
  0x10   :  { %v115_v47 = vpack.c.bf16 %v105_v46, %v104_v45  ;;  %v109_v58 = vmul.f32 %v4436_v56, %v93_v12  ;;  %v5393_v0 = vperm.slane %v215_v60, 1 }
  0x11   :  { %v116_v53 = vpack.c.bf16 %v107_v52, %v106_v51 }
  0x12   :  { %170 = vmatpush.bf16.msra.mxu0 %v4392_v6  ;;  %v117_v59 = vpack.c.bf16 %v109_v58, %v108_v57 }
  0x16   :  { %171 = vmatpush.bf16.msra.mxu0 %v4391_v8 }
  0x1a   :  { %172 = vmatpush.bf16.msra.mxu0 %v4390_v13 }
  0x1e   :  { %173 = vmatpush.bf16.msra.mxu0 %v4389_v16 }
  0x21   :  { %174 = vmatmul.bf16.vlgmr.msra.gmra.mxu0 %v110_v17 }
  0x31   :  { %179 = vmatmul.bf16.gmra.mxu0 %v111_v23 }
  0x41   :  { %184 = vmatmul.bf16.gmra.mxu0 %v112_v29 }
  0x51   :  { %189 = vmatmul.bf16.gmra.mxu0 %v113_v35 }
  0x61   :  { %194 = vmatmul.bf16.gmra.mxu0 %v114_v41 }
  0x71   :  { %199 = vmatmul.bf16.gmra.mxu0 %v115_v47 }
  0x81   :  { %204 = vmatmul.bf16.gmra.mxu0 %v116_v53 }
  0x91   :  { %209 = vmatmul.bf16.gmra.mxu0 %v117_v59 }
  0x9e   :  { %v175_v62 = vpop.f32.mrf.mxu0 }
  0x9f   :  { %v283_v1 = vmul.f32 %v5389_v61, %v175_v62  ;;  %v217_v2 = vmul.f32 %v5391_v63, %v175_v62  ;;  %v250_v3 = vmul.f32 %v5393_v0, %v175_v62 }
  0xa1   :  { %v233_v4 = vpack.c.bf16 %v217_v2, %v217_v2  ;;  %v266_v5 = vpack.c.bf16 %v250_v3, %v250_v3  ;;  %v299_v7 = vpack.c.bf16 %v283_v1, %v283_v1 }
  0xa3   :  { %v331_v14 = vunpack.c.l.b16 %v233_v4  ;;  %v371_v15 = vunpack.c.l.b16 %v266_v5  ;;  %v661_v16 = vunpack.c.l.b16 %v299_v7 }
  0xa6   :  { %v177_v6 = vpop.f32.mrf.mxu0 }
  0xa7   :  { %v218_v8 = vmul.f32 %v5391_v63, %v177_v6  ;;  %v251_v9 = vmul.f32 %v5393_v0, %v177_v6  ;;  %v284_v10 = vmul.f32 %v5389_v61, %v177_v6 }
  0xa9   :  { %v234_v11 = vpack.c.bf16 %v218_v8, %v218_v8  ;;  %v267_v12 = vpack.c.bf16 %v251_v9, %v251_v9  ;;  %v300_v13 = vpack.c.bf16 %v284_v10, %v284_v10 }
  0xab   :  { %v332_v17 = vunpack.c.l.b16 %v234_v11  ;;  %v372_v18 = vunpack.c.l.b16 %v267_v12  ;;  %v662_v19 = vunpack.c.l.b16 %v300_v13 }
  0xad   :  { %v5401_v20 = vpack.c.b16 %v372_v18, %v371_v15  ;;  %v5403_v21 = vpack.c.b16 %v332_v17, %v331_v14  ;;  %v5405_v22 = vpack.c.b16 %v662_v19, %v661_v16 }
  0xae   :  { %v180_v23 = vpop.f32.mrf.mxu0 }
  0xaf   :  { %v285_v24 = vmul.f32 %v5389_v61, %v180_v23  ;;  %1112 = vrot.lane.b32.xlu0 %v5401_v20, %s5294_s9  ;;  %1096 = vrot.lane.b32.xlu2 %v5403_v21, %s5294_s9  ;;  %v219_v25 = vmul.f32 %v5391_v63, %v180_v23  ;;  %v252_v26 = vmul.f32 %v5393_v0, %v180_v23 }
  0xb1   :  { %v235_v27 = vpack.c.bf16 %v219_v25, %v219_v25  ;;  %v268_v28 = vpack.c.bf16 %v252_v26, %v252_v26  ;;  %v301_v29 = vpack.c.bf16 %v285_v24, %v285_v24 }
  0xb3   :  { %v333_v37 = vunpack.c.l.b16 %v235_v27  ;;  %v373_v38 = vunpack.c.l.b16 %v268_v28  ;;  %v663_v39 = vunpack.c.l.b16 %v301_v29 }
  0xb6   :  { %v182_v30 = vpop.f32.mrf.mxu0 }
  0xb7   :  { %v220_v31 = vmul.f32 %v5391_v63, %v182_v30  ;;  %v253_v32 = vmul.f32 %v5393_v0, %v182_v30  ;;  %v286_v33 = vmul.f32 %v5389_v61, %v182_v30  ;;  %758 = vrot.lane.b32.xlu0 %v5401_v20, %s5295_s10  ;;  %742 = vrot.lane.b32.xlu2 %v5403_v21, %s5295_s10 }
  0xb9   :  { %v236_v34 = vpack.c.bf16 %v220_v31, %v220_v31  ;;  %v269_v35 = vpack.c.bf16 %v253_v32, %v253_v32  ;;  %v302_v36 = vpack.c.bf16 %v286_v33, %v286_v33 }
  0xbb   :  { %v334_v40 = vunpack.c.l.b16 %v236_v34  ;;  %v374_v41 = vunpack.c.l.b16 %v269_v35  ;;  %v664_v42 = vunpack.c.l.b16 %v302_v36 }
  0xbd   :  { %v5421_v43 = vpack.c.b16 %v374_v41, %v373_v38  ;;  %v5423_v44 = vpack.c.b16 %v334_v40, %v333_v37  ;;  %v5425_v45 = vpack.c.b16 %v664_v42, %v663_v39 }
  0xbe   :  { %v185_v46 = vpop.f32.mrf.mxu0 }
  0xbf   :  { %v287_v47 = vmul.f32 %v5389_v61, %v185_v46  ;;  %1466 = vrot.lane.b32.xlu0 %v5401_v20, %s5296_s11  ;;  %760 = vrot.lane.b32.xlu2 %v5421_v43, %s5295_s10  ;;  %v221_v48 = vmul.f32 %v5391_v63, %v185_v46  ;;  %v254_v49 = vmul.f32 %v5393_v0, %v185_v46 }
  0xc0   :  { %744 = vrot.lane.b32.xlu1 %v5423_v44, %s5295_s10 }
  0xc1   :  { %v237_v50 = vpack.c.bf16 %v221_v48, %v221_v48  ;;  %v270_v51 = vpack.c.bf16 %v254_v49, %v254_v49  ;;  %v303_v52 = vpack.c.bf16 %v287_v47, %v287_v47 }
  0xc3   :  { %v335_v60 = vunpack.c.l.b16 %v237_v50  ;;  %v375_v62 = vunpack.c.l.b16 %v270_v51  ;;  %v665_v1 = vunpack.c.l.b16 %v303_v52 }
  0xc6   :  { %v187_v53 = vpop.f32.mrf.mxu0 }
  0xc7   :  { %v222_v54 = vmul.f32 %v5391_v63, %v187_v53  ;;  %v255_v55 = vmul.f32 %v5393_v0, %v187_v53  ;;  %v288_v56 = vmul.f32 %v5389_v61, %v187_v53  ;;  %1468 = vrot.lane.b32.xlu2 %v5421_v43, %s5296_s11  ;;  %1114 = vrot.lane.b32.xlu0 %v5421_v43, %s5294_s9 }
  0xc9   :  { %v238_v57 = vpack.c.bf16 %v222_v54, %v222_v54  ;;  %v271_v58 = vpack.c.bf16 %v255_v55, %v255_v55  ;;  %v304_v59 = vpack.c.bf16 %v288_v56, %v288_v56 }
  0xcb   :  { %v336_v2 = vunpack.c.l.b16 %v238_v57  ;;  %v376_v3 = vunpack.c.l.b16 %v271_v58  ;;  %v666_v4 = vunpack.c.l.b16 %v304_v59 }
  0xcd   :  { %v5443_v5 = vpack.c.b16 %v376_v3, %v375_v62  ;;  %v5445_v6 = vpack.c.b16 %v336_v2, %v335_v60  ;;  %v5447_v7 = vpack.c.b16 %v666_v4, %v665_v1 }
  0xce   :  { %v190_v8 = vpop.f32.mrf.mxu0 }
  0xcf   :  { %v289_v9 = vmul.f32 %v5389_v61, %v190_v8  ;;  %1098 = vrot.lane.b32.xlu0 %v5423_v44, %s5294_s9  ;;  %1116 = vrot.lane.b32.xlu2 %v5443_v5, %s5294_s9  ;;  %v256_v10 = vmul.f32 %v5393_v0, %v190_v8  ;;  %v223_v19 = vmul.f32 %v5391_v63, %v190_v8 }
  0xd0   :  { %1100 = vrot.lane.b32.xlu1 %v5445_v6, %s5294_s9 }
  0xd1   :  { %v272_v12 = vpack.c.bf16 %v256_v10, %v256_v10  ;;  %v305_v13 = vpack.c.bf16 %v289_v9, %v289_v9  ;;  %v239_v31 = vpack.c.bf16 %v223_v19, %v223_v19 }
  0xd3   :  { %v377_v23 = vunpack.c.l.b16 %v272_v12  ;;  %v667_v24 = vunpack.c.l.b16 %v305_v13  ;;  %v337_v36 = vunpack.c.l.b16 %v239_v31 }
  0xd6   :  { %v192_v11 = vpop.f32.mrf.mxu0 }
  0xd7   :  { %v257_v14 = vmul.f32 %v5393_v0, %v192_v11  ;;  %v290_v15 = vmul.f32 %v5389_v61, %v192_v11  ;;  %762 = vrot.lane.b32.xlu0 %v5443_v5, %s5295_s10  ;;  %v224_v16 = vmul.f32 %v5391_v63, %v192_v11 }
  0xd9   :  { %v273_v17 = vpack.c.bf16 %v257_v14, %v257_v14  ;;  %v306_v18 = vpack.c.bf16 %v290_v15, %v290_v15  ;;  %v240_v27 = vpack.c.bf16 %v224_v16, %v224_v16 }
  0xdb   :  { %v378_v25 = vunpack.c.l.b16 %v273_v17  ;;  %v668_v26 = vunpack.c.l.b16 %v306_v18  ;;  %v338_v33 = vunpack.c.l.b16 %v240_v27 }
  0xdd   :  { %v5463_v28 = vpack.c.b16 %v378_v25, %v377_v23  ;;  %v5465_v29 = vpack.c.b16 %v668_v26, %v667_v24  ;;  %v5476_v37 = vpack.c.b16 %v338_v33, %v337_v36 }
  0xde   :  { %v195_v30 = vpop.f32.mrf.mxu0 }
  0xdf   :  { %v291_v32 = vmul.f32 %v5389_v61, %v195_v30  ;;  %746 = vrot.lane.b32.xlu0 %v5445_v6, %s5295_s10  ;;  %764 = vrot.lane.b32.xlu2 %v5463_v28, %s5295_s10  ;;  %v225_v34 = vmul.f32 %v5391_v63, %v195_v30  ;;  %v258_v35 = vmul.f32 %v5393_v0, %v195_v30 }
  0xe0   :  { %1118 = vrot.lane.b32.xlu1 %v5463_v28, %s5294_s9 }
  0xe1   :  { %v241_v38 = vpack.c.bf16 %v225_v34, %v225_v34  ;;  %v274_v39 = vpack.c.bf16 %v258_v35, %v258_v35  ;;  %v307_v40 = vpack.c.bf16 %v291_v32, %v291_v32 }
  0xe3   :  { %v339_v51 = vunpack.c.l.b16 %v241_v38  ;;  %v379_v52 = vunpack.c.l.b16 %v274_v39  ;;  %v669_v53 = vunpack.c.l.b16 %v307_v40 }
  0xe6   :  { %v197_v41 = vpop.f32.mrf.mxu0 }
  0xe7   :  { %v226_v42 = vmul.f32 %v5391_v63, %v197_v41  ;;  %v259_v46 = vmul.f32 %v5393_v0, %v197_v41  ;;  %v292_v47 = vmul.f32 %v5389_v61, %v197_v41  ;;  %1470 = vrot.lane.b32.xlu0 %v5443_v5, %s5296_s11  ;;  %748 = vrot.lane.b32.xlu2 %v5476_v37, %s5295_s10 }
  0xe8   :  { %1102 = vrot.lane.b32.xlu1 %v5476_v37, %s5294_s9 }
  0xe9   :  { %v242_v48 = vpack.c.bf16 %v226_v42, %v226_v42  ;;  %v275_v49 = vpack.c.bf16 %v259_v46, %v259_v46  ;;  %v308_v50 = vpack.c.bf16 %v292_v47, %v292_v47 }
  0xeb   :  { %v340_v54 = vunpack.c.l.b16 %v242_v48  ;;  %v380_v55 = vunpack.c.l.b16 %v275_v49  ;;  %v670_v56 = vunpack.c.l.b16 %v308_v50 }
  0xed   :  { %v5487_v57 = vpack.c.b16 %v380_v55, %v379_v52  ;;  %v5489_v58 = vpack.c.b16 %v340_v54, %v339_v51  ;;  %v5491_v59 = vpack.c.b16 %v670_v56, %v669_v53 }
  0xee   :  { %v5493_v60 = vpop.f32.mrf.mxu0 }
  0xef   :  { %1472 = vrot.lane.b32.xlu2 %v5463_v28, %s5296_s11  ;;  %1104 = vrot.lane.b32.xlu0 %v5489_v58, %s5294_s9  ;;  %v227_v62 = vmul.f32 %v5391_v63, %v5493_v60  ;;  %v260_v1 = vmul.f32 %v5393_v0, %v5493_v60 }
  0xf0   :  { %1120 = vrot.lane.b32.xlu1 %v5487_v57, %s5294_s9 }
  0xf1   :  { %v243_v2 = vpack.c.bf16 %v227_v62, %v227_v62  ;;  %v276_v4 = vpack.c.bf16 %v260_v1, %v260_v1 }
  0xf3   :  { %v341_v12 = vunpack.c.l.b16 %v243_v2  ;;  %v381_v13 = vunpack.c.l.b16 %v276_v4 }
  0xf6   :  { %v202_v3 = vpop.f32.mrf.mxu0 }
  0xf7   :  { %v228_v8 = vmul.f32 %v5391_v63, %v202_v3  ;;  %v261_v9 = vmul.f32 %v5393_v0, %v202_v3  ;;  %766 = vrot.lane.b32.xlu2 %v5487_v57, %s5295_s10  ;;  %1474 = vrot.lane.b32.xlu0 %v5487_v57, %s5296_s11  ;;  %v294_v62 = vmul.f32 %v5389_v61, %v202_v3 }
  0xf8   :  { %750 = vrot.lane.b32.xlu1 %v5489_v58, %s5295_s10 }
  0xf9   :  { %v244_v10 = vpack.c.bf16 %v228_v8, %v228_v8  ;;  %v277_v11 = vpack.c.bf16 %v261_v9, %v261_v9  ;;  %v310_v3 = vpack.c.bf16 %v294_v62, %v294_v62  ;;  %v421_v62 = vsel %vm395_vm0, %v5401_v20, 0 }
  0xfb   :  { %v342_v14 = vunpack.c.l.b16 %v244_v10  ;;  %v382_v15 = vunpack.c.l.b16 %v277_v11 }
  0xfd   :  { %v5513_v16 = vpack.c.b16 %v382_v15, %v381_v13  ;;  %v5515_v17 = vpack.c.b16 %v342_v14, %v341_v12 }
  0xfe   :  { %v205_v18 = vpop.f32.mrf.mxu0 }
  0xff   :  { %768 = vrot.lane.b32.xlu0 %v5513_v16, %s5295_s10  ;;  %1106 = vrot.lane.b32.xlu2 %v5515_v17, %s5294_s9  ;;  %v262_v19 = vmul.f32 %v5393_v0, %v205_v18  ;;  %v229_v32 = vmul.f32 %v5391_v63, %v205_v18  ;;  %v295_v48 = vmul.f32 %v5389_v61, %v205_v18 }
 0x100   :  { %1122 = vrot.lane.b32.xlu1 %v5513_v16, %s5294_s9 }
 0x101   :  { %v278_v24 = vpack.c.bf16 %v262_v19, %v262_v19  ;;  %v245_v38 = vpack.c.bf16 %v229_v32, %v229_v32  ;;  %v311_v10 = vpack.c.bf16 %v295_v48, %v295_v48 }
 0x103   :  { %v383_v30 = vunpack.c.l.b16 %v278_v24  ;;  %v343_v46 = vunpack.c.l.b16 %v245_v38 }
 0x106   :  { %v207_v23 = vpop.f32.mrf.mxu0 }
 0x107   :  { %v263_v25 = vmul.f32 %v5393_v0, %v207_v23  ;;  %1476 = vrot.lane.b32.xlu2 %v5513_v16, %s5296_s11  ;;  %v230_v27 = vmul.f32 %v5391_v63, %v207_v23  ;;  %v296_v47 = vmul.f32 %v5389_v61, %v207_v23 }
 0x108   :  { %752 = vrot.lane.b32.xlu1 %v5515_v17, %s5295_s10 }
 0x109   :  { %v279_v26 = vpack.c.bf16 %v263_v25, %v263_v25  ;;  %v246_v34 = vpack.c.bf16 %v230_v27, %v230_v27  ;;  %v5531_v36 = vpop.permute.xlu2 %1096  ;;  %v312_v1 = vpack.c.bf16 %v296_v47, %v296_v47 }
 0x10b   :  { %v384_v31 = vunpack.c.l.b16 %v279_v26  ;;  %v344_v39 = vunpack.c.l.b16 %v246_v34  ;;  %v674_v18 = vunpack.c.l.b16 %v312_v1  ;;  %v673_v26 = vunpack.c.l.b16 %v311_v10 }
 0x10d   :  { %v393_v33 = vpack.c.b16 %v384_v31, %v383_v30  ;;  %v5540_v52 = vpack.c.b16 %v344_v39, %v343_v46  ;;  %v5566_v30 = vpack.c.b16 %v674_v18, %v673_v26 }
 0x10e   :  { %v210_v35 = vpop.f32.mrf.mxu0 }
 0x10f   :  { %1124 = vrot.lane.b32.xlu0 %v393_v33, %s5294_s9  ;;  %v231_v40 = vmul.f32 %v5391_v63, %v210_v35  ;;  %v264_v41 = vmul.f32 %v5393_v0, %v210_v35  ;;  %v297_v42 = vmul.f32 %v5389_v61, %v210_v35  ;;  %v439_v35 = vsel %vm395_vm0, %v393_v33, 0 }
 0x110   :  { %770 = vrot.lane.b32.xlu1 %v393_v33, %s5295_s10 }
 0x111   :  { %v247_v49 = vpack.c.bf16 %v231_v40, %v231_v40  ;;  %v280_v50 = vpack.c.bf16 %v264_v41, %v264_v41  ;;  %v313_v53 = vpack.c.bf16 %v297_v42, %v297_v42  ;;  %v5549_v2 = vpop.permute.xlu2 %742  ;;  %v436_v40 = vsel %vm395_vm0, %v5513_v16, 0 }
 0x112   :  { %v433_v42 = vsel %vm395_vm0, %v5487_v57, 0  ;;  %v430_v16 = vsel %vm395_vm0, %v5463_v28, 0 }
 0x113   :  { %v385_v11 = vunpack.c.l.b16 %v280_v50  ;;  %v675_v12 = vunpack.c.l.b16 %v313_v53  ;;  %v427_v50 = vsel %vm395_vm0, %v5443_v5, 0 }
 0x116   :  { %v212_v51 = vpop.f32.mrf.mxu0 }
 0x117   :  { %v232_v54 = vmul.f32 %v5391_v63, %v212_v51  ;;  %v265_v55 = vmul.f32 %v5393_v0, %v212_v51  ;;  %v298_v56 = vmul.f32 %v5389_v61, %v212_v51  ;;  %1478 = vrot.lane.b32.xlu0 %v393_v33, %s5296_s11  ;;  %v293_v63 = vmul.f32 %v5389_v61, %v5493_v60 }
 0x118   :  { %1108 = vrot.lane.b32.xlu1 %v5540_v52, %s5294_s9  ;;  %v345_v0 = vunpack.c.l.b16 %v247_v49  ;;  %v672_v60 = vunpack.c.l.b16 %v310_v3 }
 0x119   :  { %v248_v4 = vpack.c.bf16 %v232_v54, %v232_v54  ;;  %v281_v8 = vpack.c.bf16 %v265_v55, %v265_v55  ;;  %v314_v9 = vpack.c.bf16 %v298_v56, %v298_v56  ;;  %v309_v25 = vpack.c.bf16 %v293_v63, %v293_v63  ;;  %v5568_v32 = vpop.permute.xlu2 %760 }
 0x11a   :  { %v424_v54 = vsel %vm395_vm0, %v5421_v43, 0 }
 0x11b   :  { %v346_v13 = vunpack.c.l.b16 %v248_v4  ;;  %v386_v14 = vunpack.c.l.b16 %v281_v8  ;;  %v676_v15 = vunpack.c.l.b16 %v314_v9  ;;  %v671_v31 = vunpack.c.l.b16 %v309_v25 }
 0x11d   :  { %v5553_v19 = vpack.c.b16 %v676_v15, %v675_v12  ;;  %v394_v23 = vpack.c.b16 %v386_v14, %v385_v11  ;;  %v5555_v24 = vpack.c.b16 %v346_v13, %v345_v0  ;;  %v5571_v34 = vpack.c.b16 %v672_v60, %v671_v31 }
 0x11f   :  { %693 = vmatpush.bf16.msra.mxu2 %v5553_v19  ;;  %1126 = vrot.lane.b32.xlu2 %v394_v23, %s5294_s9  ;;  %v442_v61 = vsel %vm395_vm0, %v394_v23, 0 }
 0x120   :  { %754 = vrot.lane.b32.xlu1 %v5540_v52, %s5295_s10  ;;  %1110 = vrot.lane.b32.xlu0 %v5555_v24, %s5294_s9 }
 0x121   :  { %444 = vmatpush.bf16.xpose.msra.mxu1 %v442_v61  ;;  %v5564_v27 = vpop.permute.xlu0 %1112  ;;  %v5581_v39 = vpop.permute.xlu2 %1468 }
 0x123   :  { %694 = vmatpush.bf16.msra.mxu2 %v5566_v30 }
 0x127   :  { %695 = vmatpush.bf16.msra.mxu2 %v5571_v34  ;;  %772 = vrot.lane.b32.xlu2 %v394_v23, %s5295_s10 }
 0x128   :  { %756 = vrot.lane.b32.xlu1 %v5555_v24, %s5295_s10 }
 0x129   :  { %445 = vmatpush.bf16.xpose.msra.mxu1 %v439_v35  ;;  %v5578_v38 = vpop.permute.xlu0 %758  ;;  %v5590_v33 = vpop.permute.xlu2 %1116 }
 0x12b   :  { %696 = vmatpush.bf16.msra.mxu2 %v5491_v59 }
 0x12f   :  { %697 = vmatpush.bf16.msra.mxu2 %v5465_v29  ;;  %1480 = vrot.lane.b32.xlu2 %v394_v23, %s5296_s11 }
 0x131   :  { %446 = vmatpush.bf16.xpose.msra.mxu1 %v436_v40  ;;  %v5587_v41 = vpop.permute.xlu0 %1466 }
 0x132   :  { %v5602_v49 = vpop.permute.xlu1 %744 }
 0x133   :  { %698 = vmatpush.bf16.msra.mxu2 %v5447_v7 }
 0x137   :  { %699 = vmatpush.bf16.msra.mxu2 %v5425_v45 }
 0x139   :  { %447 = vmatpush.bf16.xpose.msra.mxu1 %v433_v42  ;;  %v5595_v46 = vpop.permute.xlu0 %1114  ;;  %v765_v47 = vpop.permute.xlu2 %764 }
 0x13a   :  { %v808_v42 = vsel %vm395_vm0, %v765_v47, 0  ;;  %v1153_v47 = vsel %vm395_vm0, %v5564_v27, 0 }
 0x13b   :  { %700 = vmatpush.bf16.msra.mxu2 %v5405_v22 }
 0x141   :  { %448 = vmatpush.bf16.xpose.msra.mxu1 %v430_v16  ;;  %v5600_v48 = vpop.permute.xlu0 %1098  ;;  %v5606_v51 = vpop.permute.xlu2 %748  ;;  %v1159_v16 = vsel %vm395_vm0, %v5590_v33, 0 }
 0x142   :  { %v5608_v53 = vpop.permute.xlu1 %1100 }
 0x149   :  { %449 = vmatpush.bf16.xpose.msra.mxu1 %v427_v50  ;;  %v763_v57 = vpop.permute.xlu0 %762  ;;  %v5614_v56 = vpop.permute.xlu2 %1472 }
 0x14a   :  { %v805_v50 = vsel %vm395_vm0, %v763_v57, 0  ;;  %v799_v57 = vsel %vm395_vm0, %v5578_v38, 0 }
 0x151   :  { %450 = vmatpush.bf16.xpose.msra.mxu1 %v424_v54  ;;  %v5612_v55 = vpop.permute.xlu0 %746  ;;  %v767_v4 = vpop.permute.xlu2 %766  ;;  %v1156_v54 = vsel %vm395_vm0, %v5595_v46, 0 }
 0x152   :  { %v1119_v28 = vpop.permute.xlu1 %1118  ;;  %v811_v35 = vsel %vm395_vm0, %v767_v4, 0  ;;  %v1516_v4 = vsel %vm395_vm0, %v5614_v56, 0 }
 0x153   :  { %v1162_v40 = vsel %vm395_vm0, %v1119_v28, 0  ;;  %v802_v28 = vsel %vm395_vm0, %v5568_v32, 0 }
 0x159   :  { %451 = vmatpush.bf16.xpose.msra.mxu1 %v421_v62  ;;  %v5620_v1 = vpop.permute.xlu0 %1470  ;;  %v5626_v9 = vpop.permute.xlu2 %1106 }
 0x15a   :  { %v5618_v5 = vpop.permute.xlu1 %1102 }
 0x160   :  { %4274 = vmatmul.msk.bf16.vlgmr.msra.gmra.mxu1 %vm395_vm0, %v5403_v21 }
 0x161   :  { %v5624_v43 = vpop.permute.xlu0 %1104  ;;  %v1477_v20 = vpop.permute.xlu2 %1476 }
 0x162   :  { %v1121_v8 = vpop.permute.xlu1 %1120  ;;  %v1522_v27 = vsel %vm395_vm0, %v1477_v20, 0 }
 0x163   :  { %v1165_v31 = vsel %vm395_vm0, %v1121_v8, 0  ;;  %v1513_v8 = vsel %vm395_vm0, %v5620_v1, 0 }
 0x169   :  { %v1475_v10 = vpop.permute.xlu0 %1474 }
 0x16a   :  { %v5628_v63 = vpop.permute.xlu1 %750  ;;  %v1519_v38 = vsel %vm395_vm0, %v1475_v10, 0 }
 0x170   :  { %4275 = vmatmul.msk.bf16.gmra.mxu1 %vm395_vm0, %v5423_v44 }
 0x171   :  { %v769_v11 = vpop.permute.xlu0 %768 }
 0x172   :  { %v1123_v0 = vpop.permute.xlu1 %1122  ;;  %v814_v60 = vsel %vm395_vm0, %v769_v11, 0 }
 0x173   :  { %v1168_v61 = vsel %vm395_vm0, %v1123_v0, 0 }
 0x179   :  { %v1127_v12 = vpop.permute.xlu2 %1126 }
 0x17a   :  { %v1174_v13 = vsel %vm395_vm0, %v1127_v12, 0  ;;  %v5633_v14 = vpop.permute.xlu1 %752 }
 0x17b   :  { %1176 = vmatpush.bf16.xpose.msrb.mxu2 %v1174_v13 }
 0x180   :  { %4276 = vmatmul.msk.bf16.gmra.mxu1 %vm395_vm0, %v5445_v6 }
 0x181   :  { %v1125_v15 = vpop.permute.xlu0 %1124  ;;  %v773_v3 = vpop.permute.xlu2 %772 }
 0x182   :  { %v820_v18 = vsel %vm395_vm0, %v773_v3, 0  ;;  %v1171_v23 = vsel %vm395_vm0, %v1125_v15, 0  ;;  %v771_v25 = vpop.permute.xlu1 %770 }
 0x183   :  { %822 = vmatpush.bf16.xpose.msra.mxu3 %v820_v18  ;;  %1177 = vmatpush.bf16.xpose.msrb.mxu2 %v1171_v23  ;;  %v817_v26 = vsel %vm395_vm0, %v771_v25, 0 }
 0x189   :  { %v1481_v33 = vpop.permute.xlu2 %1480  ;;  %v1479_v62 = vpop.permute.xlu0 %1478 }
 0x18a   :  { %v1528_v46 = vsel %vm395_vm0, %v1481_v33, 0  ;;  %v1525_v32 = vsel %vm395_vm0, %v1479_v62, 0 }
 0x18b   :  { %823 = vmatpush.bf16.xpose.msra.mxu3 %v817_v26  ;;  %1178 = vmatpush.bf16.xpose.msrb.mxu2 %v1168_v61 }
 0x190   :  { %4277 = vmatmul.msk.bf16.gmra.mxu1 %vm395_vm0, %v5476_v37 }
 0x192   :  { %v5719_v23 = vpop.permute.xlu0 %1110 }
 0x193   :  { %824 = vmatpush.bf16.xpose.msra.mxu3 %v814_v60  ;;  %1179 = vmatpush.bf16.xpose.msrb.mxu2 %v1165_v31 }
 0x19b   :  { %825 = vmatpush.bf16.xpose.msra.mxu3 %v811_v35  ;;  %1180 = vmatpush.bf16.xpose.msrb.mxu2 %v1162_v40 }
 0x1a0   :  { %4278 = vmatmul.msk.bf16.gmra.mxu1 %vm395_vm0, %v5489_v58 }
 0x1a3   :  { %826 = vmatpush.bf16.xpose.msra.mxu3 %v808_v42  ;;  %1181 = vmatpush.bf16.xpose.msrb.mxu2 %v1159_v16 }
 0x1ab   :  { %827 = vmatpush.bf16.xpose.msra.mxu3 %v805_v50  ;;  %1182 = vmatpush.bf16.xpose.msrb.mxu2 %v1156_v54 }
 0x1b0   :  { %4279 = vmatmul.msk.bf16.gmra.mxu1 %vm395_vm0, %v5515_v17 }
 0x1b3   :  { %828 = vmatpush.bf16.xpose.msra.mxu3 %v802_v28  ;;  %1183 = vmatpush.bf16.xpose.msrb.mxu2 %v1153_v47 }
 0x1bb   :  { %829 = vmatpush.bf16.xpose.msra.mxu3 %v799_v57 }
 0x1c0   :  { %4280 = vmatmul.msk.bf16.gmra.mxu1 %vm395_vm0, %v5540_v52 }
 0x1c2   :  { %4282 = vmatmul.msk.bf16.vlgmr.msra.gmra.mxu3 %vm395_vm0, %v5549_v2 }
 0x1c3   :  { %1530 = vmatpush.bf16.xpose.msrb.mxu3 %v1528_v46 }
 0x1cb   :  { %1531 = vmatpush.bf16.xpose.msrb.mxu3 %v1525_v32 }
 0x1d0   :  { %4281 = vmatmul.msk.bf16.gmra.mxu1 %vm395_vm0, %v5555_v24 }
 0x1d2   :  { %4283 = vmatmul.msk.bf16.gmra.mxu3 %vm395_vm0, %v5602_v49  ;;  %v1510_v49 = vsel %vm395_vm0, %v5581_v39, 0 }
 0x1d3   :  { %1532 = vmatpush.bf16.xpose.msrb.mxu3 %v1522_v27 }
 0x1db   :  { %1533 = vmatpush.bf16.xpose.msrb.mxu3 %v1519_v38 }
 0x1dd   :  { %v453_v2 = vpop.f32.mrf.mxu1 }
 0x1de   :  { %493 = vmax.xlane.f32.xlu0 %v453_v2 }
 0x1e2   :  { %4284 = vmatmul.msk.bf16.gmra.mxu3 %vm395_vm0, %v5612_v55  ;;  %v1507_v55 = vsel %vm395_vm0, %v5587_v41, 0  ;;  %v5700_v41 = vpop.permute.xlu1 %1108 }
 0x1e3   :  { %1534 = vmatpush.bf16.xpose.msrb.mxu3 %v1516_v4 }
 0x1e5   :  { %v455_v20 = vpop.f32.mrf.mxu1 }
 0x1e6   :  { %495 = vmax.xlane.f32.xlu0 %v455_v20 }
 0x1eb   :  { %1535 = vmatpush.bf16.xpose.msrb.mxu3 %v1513_v8 }
 0x1ed   :  { %v5683_v10 = vpop.f32.mrf.mxu1 }
 0x1ee   :  { %497 = vmax.xlane.f32.xlu1 %v5683_v10 }
 0x1f2   :  { %4285 = vmatmul.msk.bf16.gmra.mxu3 %vm395_vm0, %v5606_v51 }
 0x1f3   :  { %1536 = vmatpush.bf16.xpose.msrb.mxu3 %v1510_v49 }
 0x1f5   :  { %v460_v56 = vpop.f32.mrf.mxu1 }
 0x1f6   :  { %499 = vmax.xlane.f32.xlu1 %v460_v56 }
 0x1fb   :  { %1537 = vmatpush.bf16.xpose.msrb.mxu3 %v1507_v55 }
 0x1fd   :  { %v463_v1 = vpop.f32.mrf.mxu1 }
 0x1fe   :  { %501 = vmax.xlane.f32.xlu2 %v463_v1 }
 0x202   :  { %4286 = vmatmul.msk.bf16.gmra.mxu3 %vm395_vm0, %v5628_v63  ;;  %v755_v63 = vpop.permute.xlu1 %754 }
 0x205   :  { %v465_v39 = vpop.f32.mrf.mxu1 }
 0x206   :  { %503 = vmax.xlane.f32.xlu2 %v465_v39 }
 0x20d   :  { %v5692_v0 = vpop.f32.mrf.mxu1 }
 0x20e   :  { %505 = vmax.xlane.f32.xlu0 %v5692_v0 }
 0x212   :  { %4287 = vmatmul.msk.bf16.gmra.mxu3 %vm395_vm0, %v5633_v14  ;;  %v757_v14 = vpop.permute.xlu1 %756 }
 0x215   :  { %v5697_v51 = vpop.f32.mrf.mxu1 }
 0x216   :  { %507 = vmax.xlane.f32.xlu1 %v5697_v51 }
 0x21d   :  { %v5702_v11 = vpop.f32.mrf.mxu1 }
 0x21e   :  { %509 = vmax.xlane.f32.xlu1 %v5702_v11 }
 0x222   :  { %4288 = vmatmul.msk.bf16.gmra.mxu3 %vm395_vm0, %v755_v63 }
 0x225   :  { %v475_v12 = vpop.f32.mrf.mxu1 }
 0x226   :  { %511 = vmax.xlane.f32.xlu2 %v475_v12 }
 0x22d   :  { %v5706_v13 = vpop.f32.mrf.mxu1 }
 0x22e   :  { %513 = vmax.xlane.f32.xlu2 %v5706_v13 }
 0x232   :  { %4289 = vmatmul.msk.bf16.gmra.mxu3 %vm395_vm0, %v757_v14 }
 0x235   :  { %v5710_v15 = vpop.f32.mrf.mxu1 }
 0x236   :  { %515 = vmax.xlane.f32.xlu0 %v5710_v15 }
 0x23d   :  { %v5713_v3 = vpop.f32.mrf.mxu1 }
 0x23e   :  { %517 = vmax.xlane.f32.xlu0 %v5713_v3 }
 0x245   :  { %v5716_v18 = vpop.f32.mrf.mxu1 }
 0x246   :  { %519 = vmax.xlane.f32.xlu1 %v5716_v18 }
 0x24d   :  { %v5721_v25 = vpop.f32.mrf.mxu1 }
 0x24e   :  { %521 = vmax.xlane.f32.xlu1 %v5721_v25 }
 0x251   :  { %v494_v26 = vpop.xlane.xlu0 %493 }
 0x252   :  { %v525_v61 = vsub.f32 %v453_v2, %v494_v26 }
 0x254   :  { %v541_v60 = vmul.f32 1.442695, %v525_v61 }
 0x255   :  { %v5724_v31 = vpop.f32.mrf.mxu1 }
 0x256   :  { %4748 = vpow2.f32 %v541_v60  ;;  %523 = vmax.xlane.f32.xlu2 %v5724_v31 }
 0x259   :  { %v496_v35 = vpop.xlane.xlu0 %495 }
 0x25a   :  { %v526_v40 = vsub.f32 %v455_v20, %v496_v35 }
 0x25c   :  { %v5727_v42 = vpop.eup %4748  ;;  %v543_v16 = vmul.f32 1.442695, %v526_v40 }
 0x25e   :  { %4750 = vpow2.f32 %v543_v16  ;;  %573 = vadd.xlane.f32.xlu2 %v5727_v42 }
 0x261   :  { %v498_v54 = vpop.xlane.xlu1 %497 }
 0x262   :  { %v527_v4 = vsub.f32 %v5683_v10, %v498_v54 }
 0x264   :  { %v5730_v50 = vpop.eup %4750  ;;  %v545_v20 = vmul.f32 1.442695, %v527_v4 }
 0x265   :  { %575 = vadd.xlane.f32.xlu0 %v5730_v50 }
 0x267   :  { %1391 = vrot.lane.b32.xlu1 %v5553_v19, %s5294_s9 }
 0x269   :  { %v500_v28 = vpop.xlane.xlu1 %499 }
 0x26a   :  { %v528_v47 = vsub.f32 %v460_v56, %v500_v28 }
 0x26c   :  { %v547_v57 = vmul.f32 1.442695, %v528_v47 }
 0x26e   :  { %4752 = vpow2.f32 %v547_v57 }
 0x271   :  { %v502_v33 = vpop.xlane.xlu2 %501 }
 0x272   :  { %v529_v46 = vsub.f32 %v463_v1, %v502_v33 }
 0x274   :  { %v549_v32 = vmul.f32 1.442695, %v529_v46  ;;  %v5739_v27 = vpop.eup %4752 }
 0x276   :  { %1452 = vrot.lane.b32.xlu2 %v5423_v44, %s5296_s11  ;;  %4754 = vpow2.f32 %v549_v32 }
 0x279   :  { %1450 = vrot.lane.b32.xlu0 %v5403_v21, %s5296_s11  ;;  %v504_v62 = vpop.xlane.xlu2 %503 }
 0x27a   :  { %v530_v38 = vsub.f32 %v465_v39, %v504_v62 }
 0x27c   :  { %v551_v44 = vmul.f32 1.442695, %v530_v38  ;;  %v5743_v21 = vpop.eup %4754 }
 0x27e   :  { %4756 = vpow2.f32 %v551_v44  ;;  %v5787_v44 = vpop.f32.mrf.mxu3 }
 0x27f   :  { %4758 = vpow2.f32 %v545_v20 }
 0x281   :  { %v506_v2 = vpop.xlane.xlu0 %505 }
 0x282   :  { %v531_v49 = vsub.f32 %v5692_v0, %v506_v2 }
 0x284   :  { %v553_v1 = vmul.f32 1.442695, %v531_v49  ;;  %v5748_v14 = vpop.eup %4756 }
 0x285   :  { %v5751_v61 = vpop.eup %4758 }
 0x286   :  { %v5791_v20 = vpop.f32.mrf.mxu3 }
 0x289   :  { %v508_v8 = vpop.xlane.xlu1 %507 }
 0x28a   :  { %v532_v39 = vsub.f32 %v5697_v51, %v508_v8 }
 0x28c   :  { %v555_v10 = vmul.f32 1.442695, %v532_v39 }
 0x291   :  { %579 = vadd.xlane.f32.xlu1 %v5739_v27  ;;  %v510_v26 = vpop.xlane.xlu1 %509 }
 0x299   :  { %v512_v55 = vpop.xlane.xlu2 %511  ;;  %581 = vadd.xlane.f32.xlu1 %v5743_v21 }
 0x29a   :  { %v534_v56 = vsub.f32 %v475_v12, %v512_v55  ;;  %v533_v12 = vsub.f32 %v5702_v11, %v510_v26 }
 0x29c   :  { %v559_v63 = vmul.f32 1.442695, %v534_v56  ;;  %v557_v60 = vmul.f32 1.442695, %v533_v12 }
 0x29e   :  { %4760 = vpow2.f32 %v559_v63 }
 0x29f   :  { %583 = vadd.xlane.f32.xlu2 %v5748_v14  ;;  %4762 = vpow2.f32 %v553_v1 }
 0x2a0   :  { %4764 = vpow2.f32 %v555_v10 }
 0x2a1   :  { %v514_v35 = vpop.xlane.xlu2 %513  ;;  %4766 = vpow2.f32 %v557_v60 }
 0x2a2   :  { %v535_v16 = vsub.f32 %v5706_v13, %v514_v35 }
 0x2a3   :  { %577 = vadd.xlane.f32.xlu0 %v5751_v61 }
 0x2a4   :  { %v5754_v0 = vpop.eup %4760  ;;  %v561_v54 = vmul.f32 1.442695, %v535_v16 }
 0x2a5   :  { %591 = vadd.xlane.f32.xlu1 %v5754_v0  ;;  %v5758_v51 = vpop.eup %4762 }
 0x2a6   :  { %v5761_v40 = vpop.eup %4764  ;;  %4768 = vpow2.f32 %v561_v54 }
 0x2a7   :  { %585 = vadd.xlane.f32.xlu2 %v5758_v51  ;;  %v5765_v28 = vpop.eup %4766 }
 0x2a9   :  { %v516_v47 = vpop.xlane.xlu0 %515 }
 0x2aa   :  { %v536_v49 = vsub.f32 %v5710_v15, %v516_v47 }
 0x2ab   :  { %587 = vadd.xlane.f32.xlu0 %v5761_v40 }
 0x2ac   :  { %v5768_v11 = vpop.eup %4768  ;;  %v563_v39 = vmul.f32 1.442695, %v536_v49 }
 0x2b1   :  { %v518_v57 = vpop.xlane.xlu0 %517 }
 0x2b2   :  { %v537_v55 = vsub.f32 %v5713_v3, %v518_v57 }
 0x2b3   :  { %589 = vadd.xlane.f32.xlu0 %v5765_v28 }
 0x2b4   :  { %v565_v63 = vmul.f32 1.442695, %v537_v55 }
 0x2b9   :  { %v520_v13 = vpop.xlane.xlu1 %519 }
 0x2ba   :  { %v538_v56 = vsub.f32 %v5716_v18, %v520_v13 }
 0x2bb   :  { %593 = vadd.xlane.f32.xlu0 %v5768_v11 }
 0x2bc   :  { %v567_v10 = vmul.f32 1.442695, %v538_v56 }
 0x2be   :  { %1385 = vrot.lane.b32.xlu1 %v5491_v59, %s5294_s9 }
 0x2bf   :  { %1389 = vrot.lane.b32.xlu2 %v5566_v30, %s5294_s9 }
 0x2c1   :  { %v5785_v46 = vpop.xlane.xlu1 %521 }
 0x2c6   :  { %1383 = vrot.lane.b32.xlu1 %v5465_v29, %s5294_s9 }
 0x2c7   :  { %1387 = vrot.lane.b32.xlu2 %v5571_v34, %s5294_s9 }
 0x2c9   :  { %v524_v33 = vpop.xlane.xlu2 %523 }
 0x2ca   :  { %v540_v60 = vsub.f32 %v5724_v31, %v524_v33 }
 0x2cc   :  { %v571_v35 = vmul.f32 1.442695, %v540_v60 }
 0x2ce   :  { %1456 = vrot.lane.b32.xlu1 %v5476_v37, %s5296_s11 }
 0x2cf   :  { %1454 = vrot.lane.b32.xlu0 %v5445_v6, %s5296_s11  ;;  %1381 = vrot.lane.b32.xlu2 %v5447_v7, %s5294_s9 }
 0x2d1   :  { %v574_v62 = vpop.xlane.xlu2 %573 }
 0x2d2   :  { %4770 = vrcp.f32 %v574_v62 }
 0x2d8   :  { %v576_v32 = vpop.xlane.xlu0 %575  ;;  %v4771_v4 = vpop.eup %4770 }
 0x2d9   :  { %4772 = vrcp.f32 %v576_v32  ;;  %v1392_v38 = vpop.permute.xlu1 %1391  ;;  %v621_v37 = vmul.f32 %v4771_v4, %v5727_v42  ;;  %v5797_v42 = vpop.f32.mrf.mxu3 }
 0x2da   :  { %1401 = vmatpush.bf16.msrb.mxu1 %v1392_v38  ;;  %4774 = vpow2.f32 %v563_v39  ;;  %v1453_v18 = vpop.permute.xlu2 %1452 }
 0x2db   :  { %4776 = vpow2.f32 %v565_v63 }
 0x2dc   :  { %4778 = vpow2.f32 %v567_v10 }
 0x2dd   :  { %4780 = vpow2.f32 %v571_v35 }
 0x2df   :  { %v4773_v2 = vpop.eup %4772 }
 0x2e0   :  { %v622_v6 = vmul.f32 %v4773_v2, %v5730_v50  ;;  %v5799_v50 = vpop.eup %4774 }
 0x2e1   :  { %v5801_v26 = vpop.eup %4776  ;;  %v5808_v3 = vpop.f32.mrf.mxu3 }
 0x2e2   :  { %v637_v8 = vpack.c.bf16 %v622_v6, %v621_v37  ;;  %v5803_v15 = vpop.eup %4778 }
 0x2e3   :  { %v5823_v57 = vpop.eup %4780 }
 0x2e4   :  { %701 = vmatmul.bf16.vlgmr.msra.gmra.mxu2 %v637_v8 }
 0x2e9   :  { %v5813_v12 = vpop.f32.mrf.mxu3 }
 0x2eb   :  { %v1451_v1 = vpop.permute.xlu0 %1450 }
 0x2ec   :  { %4298 = vmatmul.msk.bf16.vlgmr.msrb.gmra.mxu3 %vm395_vm0, %v1451_v1 }
 0x2f1   :  { %v5818_v16 = vpop.f32.mrf.mxu3 }
 0x2f8   :  { %595 = vadd.xlane.f32.xlu1 %v5799_v50  ;;  %597 = vadd.xlane.f32.xlu2 %v5801_v26 }
 0x2f9   :  { %599 = vadd.xlane.f32.xlu0 %v5803_v15 }
 0x2fc   :  { %4299 = vmatmul.msk.bf16.gmra.mxu3 %vm395_vm0, %v1453_v18 }
 0x300   :  { %875 = vmax.xlane.f32.xlu2 %v5797_v42 }
 0x301   :  { %871 = vmax.xlane.f32.xlu0 %v5787_v44 }
 0x304   :  { %v580_v54 = vpop.xlane.xlu1 %579 }
 0x305   :  { %4782 = vrcp.f32 %v580_v54 }
 0x308   :  { %877 = vmax.xlane.f32.xlu2 %v5808_v3 }
 0x309   :  { %873 = vmax.xlane.f32.xlu0 %v5791_v20 }
 0x30b   :  { %v4783_v33 = vpop.eup %4782 }
 0x30c   :  { %v624_v38 = vmul.f32 %v4783_v33, %v5739_v27  ;;  %v582_v4 = vpop.xlane.xlu1 %581 }
 0x310   :  { %881 = vmax.xlane.f32.xlu2 %v5818_v16 }
 0x311   :  { %1379 = vrot.lane.b32.xlu1 %v5425_v45, %s5294_s9 }
 0x312   :  { %v584_v47 = vpop.xlane.xlu2 %583 }
 0x316   :  { %v578_v13 = vpop.xlane.xlu0 %577 }
 0x317   :  { %4784 = vrcp.f32 %v578_v13 }
 0x318   :  { %603 = vadd.xlane.f32.xlu2 %v5823_v57  ;;  %4786 = vrcp.f32 %v584_v47  ;;  %v592_v8 = vpop.xlane.xlu1 %591 }
 0x319   :  { %4788 = vrcp.f32 %v582_v4 }
 0x31a   :  { %v586_v31 = vpop.xlane.xlu2 %585 }
 0x31d   :  { %v4785_v62 = vpop.eup %4784  ;;  %1377 = vrot.lane.b32.xlu0 %v5405_v22, %s5294_s9 }
 0x31e   :  { %v623_v32 = vmul.f32 %v4785_v62, %v5751_v61  ;;  %v588_v6 = vpop.xlane.xlu0 %587  ;;  %v4787_v49 = vpop.eup %4786  ;;  %v539_v61 = vsub.f32 %v5721_v25, %v5785_v46 }
 0x31f   :  { %v4789_v56 = vpop.eup %4788  ;;  %v626_v27 = vmul.f32 %v4787_v49, %v5748_v14  ;;  %4790 = vrcp.f32 %v588_v6 }
 0x320   :  { %v638_v2 = vpack.c.bf16 %v624_v38, %v623_v32  ;;  %v625_v1 = vmul.f32 %v4789_v56, %v5743_v21  ;;  %v569_v63 = vmul.f32 1.442695, %v539_v61  ;;  %v5847_v32 = vpop.f32.mrf.mxu3 }
 0x322   :  { %706 = vmatmul.bf16.gmra.mxu2 %v638_v2  ;;  %v1390_v37 = vpop.permute.xlu2 %1389  ;;  %4792 = vpow2.f32 %v569_v63 }
 0x323   :  { %1402 = vmatpush.bf16.msrb.mxu1 %v1390_v37  ;;  %4794 = vrcp.f32 %v586_v31 }
 0x325   :  { %1460 = vrot.lane.b32.xlu0 %v5515_v17, %s5296_s11  ;;  %v639_v17 = vpack.c.bf16 %v626_v27, %v625_v1  ;;  %v4791_v46 = vpop.eup %4790 }
 0x326   :  { %v590_v39 = vpop.xlane.xlu0 %589  ;;  %v628_v35 = vmul.f32 %v4791_v46, %v5761_v40 }
 0x327   :  { %4796 = vrcp.f32 %v590_v39 }
 0x328   :  { %v5840_v18 = vpop.eup %4792  ;;  %4798 = vrcp.f32 %v592_v8 }
 0x329   :  { %v4795_v60 = vpop.eup %4794 }
 0x32a   :  { %v1388_v55 = vpop.permute.xlu2 %1387  ;;  %v627_v54 = vmul.f32 %v4795_v60, %v5758_v51  ;;  %v5854_v51 = vpop.f32.mrf.mxu3 }
 0x32b   :  { %1403 = vmatpush.bf16.msrb.mxu1 %v1388_v55 }
 0x32c   :  { %v640_v47 = vpack.c.bf16 %v628_v35, %v627_v54  ;;  %v5261_v35 = vld [vmem:[%s8129_s4 + $0x30] sm:$0xff] }
 0x32d   :  { %1037 = vrot.lane.b32.xlu0 %v5553_v19, %s5295_s10  ;;  %v4797_v31 = vpop.eup %4796 }
 0x32e   :  { %v594_v14 = vpop.xlane.xlu0 %593  ;;  %v4799_v33 = vpop.eup %4798  ;;  %v629_v62 = vmul.f32 %v4797_v31, %v5765_v28  ;;  %v5263_v31 = vld [vmem:[%s8129_s4 + $0x20] sm:$0xff] }
 0x32f   :  { %v630_v38 = vmul.f32 %v4799_v33, %v5754_v0  ;;  %4800 = vrcp.f32 %v594_v14 }
 0x330   :  { %v1386_v10 = vpop.permute.xlu1 %1385  ;;  %1033 = vrot.lane.b32.xlu2 %v5571_v34, %s5295_s10 }
 0x331   :  { %1404 = vmatpush.bf16.msrb.mxu1 %v1386_v10  ;;  %v641_v4 = vpack.c.bf16 %v630_v38, %v629_v62 }
 0x332   :  { %711 = vmatmul.bf16.gmra.mxu2 %v639_v17  ;;  %v1382_v21 = vpop.permute.xlu2 %1381  ;;  %v5865_v55 = vpop.f32.mrf.mxu3 }
 0x335   :  { %v4801_v0 = vpop.eup %4800 }
 0x338   :  { %v1384_v25 = vpop.permute.xlu1 %1383 }
 0x339   :  { %1405 = vmatpush.bf16.msrb.mxu1 %v1384_v25 }
 0x33a   :  { %v5868_v1 = vpop.f32.mrf.mxu3 }
 0x33b   :  { %601 = vadd.xlane.f32.xlu1 %v5840_v18 }
 0x33d   :  { %1406 = vmatpush.bf16.msrb.mxu1 %v1382_v21  ;;  %v5260_v21 = vld [vmem:[%s8129_s4 + $0x38] sm:$0xff] }
 0x340   :  { %v1457_v40 = vpop.permute.xlu1 %1456 }
 0x341   :  { %v1455_v13 = vpop.permute.xlu0 %1454 }
 0x342   :  { %716 = vmatmul.bf16.gmra.mxu2 %v640_v47  ;;  %4300 = vmatmul.msk.bf16.gmra.mxu3 %vm395_vm0, %v1455_v13  ;;  %v5872_v17 = vpop.f32.mrf.mxu3 }
 0x352   :  { %721 = vmatmul.bf16.gmra.mxu2 %v641_v4  ;;  %4301 = vmatmul.msk.bf16.gmra.mxu3 %vm395_vm0, %v1457_v40  ;;  %v5264_v40 = vld [vmem:[%s8129_s4 + $0x18] sm:$0xff] }
 0x354   :  { %1458 = vrot.lane.b32.xlu1 %v5489_v58, %s5296_s11  ;;  %v631_v58 = vmul.f32 %v4801_v0, %v5768_v11 }
 0x357   :  { %883 = vmax.xlane.f32.xlu0 %v5847_v32 }
 0x359   :  { %885 = vmax.xlane.f32.xlu2 %v5854_v51 }
 0x36b   :  { %1029 = vrot.lane.b32.xlu0 %v5465_v29, %s5295_s10  ;;  %v596_v28 = vpop.xlane.xlu1 %595  ;;  %v598_v8 = vpop.xlane.xlu2 %597 }
 0x36c   :  { %4802 = vrcp.f32 %v596_v28  ;;  %v600_v37 = vpop.xlane.xlu0 %599  ;;  %v5265_v28 = vld [vmem:[%s8129_s4 + $0x10] sm:$0xff] }
 0x36d   :  { %4804 = vrcp.f32 %v598_v8 }
 0x36e   :  { %4806 = vrcp.f32 %v600_v37 }
 0x371   :  { %1023 = vrot.lane.b32.xlu2 %v5405_v22, %s5295_s10 }
 0x372   :  { %v4803_v2 = vpop.eup %4802 }
 0x373   :  { %1025 = vrot.lane.b32.xlu0 %v5425_v45, %s5295_s10  ;;  %v632_v6 = vmul.f32 %v4803_v2, %v5799_v50  ;;  %v4805_v56 = vpop.eup %4804  ;;  %v876_v46 = vpop.xlane.xlu2 %875  ;;  %v5266_v2 = vld [vmem:[%s8129_s4 + $0x8] sm:$0xff] }
 0x374   :  { %v872_v61 = vpop.xlane.xlu0 %871  ;;  %v4807_v27 = vpop.eup %4806  ;;  %v633_v39 = vmul.f32 %v4805_v56, %v5801_v26  ;;  %v905_v56 = vsub.f32 %v5797_v42, %v876_v46 }
 0x375   :  { %v642_v49 = vpack.c.bf16 %v632_v6, %v631_v58  ;;  %v634_v11 = vmul.f32 %v4807_v27, %v5803_v15  ;;  %v903_v25 = vsub.f32 %v5787_v44, %v872_v61  ;;  %v5879_v15 = vpop.f32.mrf.mxu3  ;;  %v5267_v58 = vld [vmem:[%s8129_s4] sm:$0xff] }
 0x377   :  { %726 = vmatmul.bf16.gmra.mxu2 %v642_v49  ;;  %v643_v50 = vpack.c.bf16 %v634_v11, %v633_v39  ;;  %v919_v14 = vmul.f32 1.442695, %v903_v25  ;;  %v5931_v39 = vpop.f32.mrf.mxu2 }
 0x378   :  { %8163 = vst [vmem:[#allocation5_spill] sm:$0xff] %v5931_v39 }
 0x379   :  { %4808 = vpow2.f32 %v919_v14 }
 0x37b   :  { %v5884_v44 = vpop.xlane.xlu2 %877 }
 0x37c   :  { %v874_v10 = vpop.xlane.xlu0 %873  ;;  %v906_v14 = vsub.f32 %v5808_v3, %v5884_v44 }
 0x37d   :  { %v904_v26 = vsub.f32 %v5791_v20, %v874_v10  ;;  %v5262_v20 = vld [vmem:[%s8129_s4 + $0x28] sm:$0xff]  ;;  %v5898_v33 = vpop.f32.mrf.mxu3 }
 0x37e   :  { %879 = vmax.xlane.f32.xlu1 %v5813_v12 }
 0x37f   :  { %v921_v54 = vmul.f32 1.442695, %v904_v26  ;;  %v5888_v13 = vpop.eup %4808  ;;  %v5938_v10 = vpop.f32.mrf.mxu2 }
 0x380   :  { %8164 = vst [vmem:[#allocation6_spill] sm:$0xff] %v5938_v10 }
 0x381   :  { %4810 = vpow2.f32 %v921_v54 }
 0x383   :  { %v1380_v63 = vpop.permute.xlu1 %1379  ;;  %v882_v38 = vpop.xlane.xlu2 %881 }
 0x384   :  { %1407 = vmatpush.bf16.msrb.mxu1 %v1380_v63  ;;  %v923_v63 = vmul.f32 1.442695, %v905_v56  ;;  %v908_v26 = vsub.f32 %v5818_v16, %v882_v38 }
 0x385   :  { %v5914_v0 = vpop.f32.mrf.mxu3 }
 0x387   :  { %731 = vmatmul.bf16.gmra.mxu2 %v643_v50  ;;  %v5902_v4 = vpop.eup %4810 }
 0x38b   :  { %v604_v37 = vpop.xlane.xlu2 %603 }
 0x38c   :  { %4812 = vrcp.f32 %v604_v37 }
 0x38f   :  { %v1378_v60 = vpop.permute.xlu0 %1377 }
 0x390   :  { %1408 = vmatpush.bf16.msrb.mxu1 %v1378_v60 }
 0x392   :  { %v4813_v8 = vpop.eup %4812 }
 0x393   :  { %v636_v27 = vmul.f32 %v4813_v8, %v5823_v57  ;;  %v1034_v60 = vpop.permute.xlu2 %1033 }
 0x394   :  { %2251 = vmatpush.bf16.msra.mxu1 %v5260_v21 }
 0x397   :  { %v1461_v47 = vpop.permute.xlu0 %1460  ;;  %1035 = vrot.lane.b32.xlu1 %v5566_v30, %s5295_s10 }
 0x398   :  { %2252 = vmatpush.bf16.msra.mxu1 %v5261_v35 }
 0x39a   :  { %951 = vadd.xlane.f32.xlu2 %v5888_v13 }
 0x39c   :  { %2253 = vmatpush.bf16.msra.mxu1 %v5262_v20  ;;  %v929_v20 = vmul.f32 1.442695, %v908_v26 }
 0x39d   :  { %887 = vmax.xlane.f32.xlu0 %v5865_v55 }
 0x39f   :  { %v1038_v62 = vpop.permute.xlu0 %1037  ;;  %1031 = vrot.lane.b32.xlu1 %v5491_v59, %s5295_s10 }
 0x3a0   :  { %2254 = vmatpush.bf16.msra.mxu1 %v5263_v31  ;;  %1047 = vmatpush.bf16.msrb.mxu0 %v1038_v62 }
 0x3a2   :  { %953 = vadd.xlane.f32.xlu2 %v5902_v4 }
 0x3a4   :  { %2255 = vmatpush.bf16.msra.mxu1 %v5264_v40 }
 0x3a5   :  { %889 = vmax.xlane.f32.xlu0 %v5868_v1 }
 0x3a7   :  { %1462 = vrot.lane.b32.xlu1 %v5540_v52, %s5296_s11  ;;  %v5925_v52 = vpop.f32.mrf.mxu3 }
 0x3a8   :  { %2256 = vmatpush.bf16.msra.mxu1 %v5265_v28 }
 0x3ac   :  { %2257 = vmatpush.bf16.msra.mxu1 %v5266_v2 }
 0x3ad   :  { %893 = vmax.xlane.f32.xlu0 %v5879_v15 }
 0x3ae   :  { %v602_v6 = vpop.xlane.xlu1 %601 }
 0x3af   :  { %4814 = vrcp.f32 %v602_v6  ;;  %1027 = vrot.lane.b32.xlu1 %v5447_v7, %s5295_s10  ;;  %v5935_v50 = vpop.f32.mrf.mxu3 }
 0x3b0   :  { %2258 = vmatpush.bf16.msra.mxu1 %v5267_v58  ;;  %4816 = vpow2.f32 %v923_v63 }
 0x3b5   :  { %v4815_v49 = vpop.eup %4814  ;;  %897 = vmax.xlane.f32.xlu0 %v5914_v0 }
 0x3b6   :  { %v635_v61 = vmul.f32 %v4815_v49, %v5840_v18  ;;  %v5940_v42 = vpop.eup %4816  ;;  %v5944_v18 = vpop.f32.mrf.mxu2 }
 0x3b7   :  { %1464 = vrot.lane.b32.xlu1 %v5555_v24, %s5296_s11  ;;  %8165 = vst [vmem:[#allocation7_spill] sm:$0xff] %v5944_v18 }
 0x3b8   :  { %v644_v11 = vpack.c.bf16 %v636_v27, %v635_v61 }
 0x3ba   :  { %736 = vmatmul.bf16.gmra.mxu2 %v644_v11 }
 0x3bd   :  { %901 = vmax.xlane.f32.xlu0 %v5935_v50 }
 0x3be   :  { %v5948_v24 = vpop.f32.mrf.mxu2 }
 0x3bf   :  { %8166 = vst [vmem:[#allocation8_spill] sm:$0xff] %v5948_v24 }
 0x3c5   :  { %955 = vadd.xlane.f32.xlu0 %v5940_v42 }
 0x3c6   :  { %v1459_v57 = vpop.permute.xlu1 %1458  ;;  %v5953_v25 = vpop.f32.mrf.mxu2 }
 0x3c7   :  { %4302 = vmatmul.msk.bf16.gmra.mxu3 %vm395_vm0, %v1459_v57  ;;  %8167 = vst [vmem:[#allocation9_spill] sm:$0xff] %v5953_v25 }
 0x3ca   :  { %4290 = vmatmul.msk.bf16.vlgmr.msrb.gmra.mxu2 %vm395_vm0, %v5531_v36  ;;  %v925_v36 = vmul.f32 1.442695, %v906_v14  ;;  %v884_v54 = vpop.xlane.xlu0 %883 }
 0x3cb   :  { %v909_v3 = vsub.f32 %v5847_v32, %v884_v54 }
 0x3cc   :  { %4818 = vpow2.f32 %v925_v36  ;;  %v886_v44 = vpop.xlane.xlu2 %885 }
 0x3cd   :  { %v931_v31 = vmul.f32 1.442695, %v909_v3  ;;  %v910_v62 = vsub.f32 %v5854_v51, %v886_v44 }
 0x3ce   :  { %v5956_v46 = vpop.f32.mrf.mxu2 }
 0x3cf   :  { %8168 = vst [vmem:[#allocation10_spill] sm:$0xff] %v5956_v46  ;;  %v933_v32 = vmul.f32 1.442695, %v910_v62 }
 0x3d4   :  { %v1024_v37 = vpop.permute.xlu2 %1023 }
 0x3d6   :  { %v5963_v21 = vpop.f32.mrf.mxu2 }
 0x3d7   :  { %4303 = vmatmul.msk.bf16.gmra.mxu3 %vm395_vm0, %v1461_v47  ;;  %8169 = vst [vmem:[#allocation11_spill] sm:$0xff] %v5963_v21 }
 0x3da   :  { %4291 = vmatmul.msk.bf16.gmra.mxu2 %vm395_vm0, %v5600_v48 }
 0x3dd   :  { %v1030_v38 = vpop.permute.xlu0 %1029 }
 0x3de   :  { %v5975_v16 = vpop.f32.mrf.mxu2 }
 0x3df   :  { %8170 = vst [vmem:[#allocation12_spill] sm:$0xff] %v5975_v16 }
 0x3e1   :  { %891 = vmax.xlane.f32.xlu1 %v5872_v17 }
 0x3e5   :  { %v1026_v2 = vpop.permute.xlu0 %1025 }
 0x3e6   :  { %v5985_v51 = vpop.f32.mrf.mxu2 }
 0x3e7   :  { %8171 = vst [vmem:[#allocation13_spill] sm:$0xff] %v5985_v51 }
 0x3e9   :  { %895 = vmax.xlane.f32.xlu1 %v5898_v33 }
 0x3ea   :  { %4292 = vmatmul.msk.bf16.gmra.mxu2 %vm395_vm0, %v5608_v53  ;;  %v5969_v53 = vpop.eup %4818 }
 0x3ee   :  { %v5993_v6 = vpop.f32.mrf.mxu2 }
 0x3ef   :  { %8172 = vst [vmem:[#allocation14_spill] sm:$0xff] %v5993_v6 }
 0x3f1   :  { %899 = vmax.xlane.f32.xlu1 %v5925_v52  ;;  %v880_v48 = vpop.xlane.xlu1 %879 }
 0x3f2   :  { %v907_v35 = vsub.f32 %v5813_v12, %v880_v48 }
 0x3f4   :  { %v927_v47 = vmul.f32 1.442695, %v907_v35 }
 0x3f6   :  { %4820 = vpow2.f32 %v927_v47 }
 0x3f7   :  { %4822 = vpow2.f32 %v929_v20 }
 0x3f8   :  { %4824 = vpow2.f32 %v931_v31 }
 0x3f9   :  { %957 = vadd.xlane.f32.xlu1 %v5969_v53  ;;  %4826 = vpow2.f32 %v933_v32 }
 0x3fa   :  { %4293 = vmatmul.msk.bf16.gmra.mxu2 %vm395_vm0, %v5618_v5  ;;  %v5996_v11 = vpop.f32.mrf.mxu2 }
 0x3fb   :  { %8173 = vst [vmem:[#allocation15_spill] sm:$0xff] %v5996_v11 }
 0x3fc   :  { %v5977_v12 = vpop.eup %4820 }
 0x3fd   :  { %959 = vadd.xlane.f32.xlu2 %v5977_v12  ;;  %v5980_v40 = vpop.eup %4822 }
 0x3fe   :  { %v5983_v28 = vpop.eup %4824 }
 0x3ff   :  { %v5988_v5 = vpop.eup %4826 }
 0x401   :  { %961 = vadd.xlane.f32.xlu1 %v5980_v40 }
 0x405   :  { %963 = vadd.xlane.f32.xlu2 %v5983_v28 }
 0x409   :  { %v1036_v58 = vpop.permute.xlu1 %1035  ;;  %965 = vadd.xlane.f32.xlu1 %v5988_v5 }
 0x40a   :  { %1048 = vmatpush.bf16.msrb.mxu0 %v1036_v58  ;;  %4294 = vmatmul.msk.bf16.gmra.mxu2 %vm395_vm0, %v5624_v43 }
 0x40d   :  { %v952_v49 = vpop.xlane.xlu2 %951 }
 0x40e   :  { %1049 = vmatpush.bf16.msrb.mxu0 %v1034_v60  ;;  %v6005_v60 = vpop.f32.mrf.mxu2 }
 0x40f   :  { %8174 = vst [vmem:[#allocation16_spill] sm:$0xff] %v6005_v60 }
 0x410   :  { %v888_v8 = vpop.xlane.xlu0 %887 }
 0x411   :  { %v911_v56 = vsub.f32 %v5865_v55, %v888_v8  ;;  %v1032_v61 = vpop.permute.xlu1 %1031 }
 0x412   :  { %1050 = vmatpush.bf16.msrb.mxu0 %v1032_v61 }
 0x413   :  { %v935_v27 = vmul.f32 1.442695, %v911_v56 }
 0x415   :  { %4828 = vpow2.f32 %v935_v27  ;;  %v954_v36 = vpop.xlane.xlu2 %953 }
 0x416   :  { %1051 = vmatpush.bf16.msrb.mxu0 %v1030_v38  ;;  %v6014_v20 = vpop.f32.mrf.mxu2 }
 0x417   :  { %8175 = vst [vmem:[#allocation17_spill] sm:$0xff] %v6014_v20 }
 0x418   :  { %v890_v63 = vpop.xlane.xlu0 %889 }
 0x419   :  { %v912_v57 = vsub.f32 %v5868_v1, %v890_v63  ;;  %v1463_v14 = vpop.permute.xlu1 %1462 }
 0x41a   :  { %4295 = vmatmul.msk.bf16.gmra.mxu2 %vm395_vm0, %v5626_v9  ;;  %4304 = vmatmul.msk.bf16.gmra.mxu3 %vm395_vm0, %v1463_v14 }
 0x41b   :  { %v6002_v43 = vpop.eup %4828  ;;  %v937_v55 = vmul.f32 1.442695, %v912_v57 }
 0x41c   :  { %967 = vadd.xlane.f32.xlu2 %v6002_v43 }
 0x41d   :  { %4830 = vpow2.f32 %v937_v55 }
 0x41e   :  { %4832 = vrcp.f32 %v954_v36  ;;  %v6017_v44 = vpop.f32.mrf.mxu2 }
 0x41f   :  { %4834 = vrcp.f32 %v952_v49  ;;  %8176 = vst [vmem:[#allocation18_spill] sm:$0xff] %v6017_v44 }
 0x421   :  { %v1028_v48 = vpop.permute.xlu1 %1027 }
 0x422   :  { %1052 = vmatpush.bf16.msrb.mxu0 %v1028_v48 }
 0x423   :  { %v6007_v1 = vpop.eup %4830 }
 0x424   :  { %v4833_v26 = vpop.eup %4832  ;;  %969 = vadd.xlane.f32.xlu1 %v6007_v1 }
 0x425   :  { %v4835_v9 = vpop.eup %4834  ;;  %v1000_v35 = vmul.f32 %v4833_v26, %v5902_v4 }
 0x426   :  { %1053 = vmatpush.bf16.msrb.mxu0 %v1026_v2  ;;  %v999_v47 = vmul.f32 %v4835_v9, %v5888_v13  ;;  %v6025_v13 = vpop.xlane.xlu0 %893 }
 0x428   :  { %v1015_v3 = vpack.c.bf16 %v1000_v35, %v999_v47 }
 0x429   :  { %v1465_v54 = vpop.permute.xlu1 %1464 }
 0x42a   :  { %1054 = vmatpush.bf16.msrb.mxu0 %v1024_v37  ;;  %4296 = vmatmul.msk.bf16.gmra.mxu2 %vm395_vm0, %v5700_v41 }
 0x42b   :  { %4305 = vmatmul.msk.bf16.gmra.mxu3 %vm395_vm0, %v1465_v54 }
 0x42d   :  { %1055 = vmatmul.bf16.vlgmr.msrb.gmra.mxu0 %v1015_v3 }
 0x42e   :  { %v6030_v41 = vpop.xlane.xlu0 %897 }
 0x436   :  { %v6041_v37 = vpop.xlane.xlu0 %901 }
 0x43a   :  { %4297 = vmatmul.msk.bf16.gmra.mxu2 %vm395_vm0, %v5719_v23 }
 0x43d   :  { %v6021_v31 = vpop.f32.mrf.mxu2 }
 0x43e   :  { %8177 = vst [vmem:[#allocation19_spill] sm:$0xff] %v6021_v31  ;;  %v956_v49 = vpop.xlane.xlu0 %955 }
 0x43f   :  { %4836 = vrcp.f32 %v956_v49 }
 0x445   :  { %v6023_v4 = vpop.f32.mrf.mxu2  ;;  %v4837_v27 = vpop.eup %4836 }
 0x446   :  { %8178 = vst [vmem:[#allocation20_spill] sm:$0xff] %v6023_v4  ;;  %v1001_v57 = vmul.f32 %v4837_v27, %v5940_v42 }
 0x44d   :  { %v6027_v62 = vpop.f32.mrf.mxu2 }
 0x44e   :  { %1225 = vmax.xlane.f32.xlu1 %v6027_v62 }
 0x454   :  { %v6032_v32 = vpop.xlane.xlu1 %891 }
 0x455   :  { %v6034_v38 = vpop.f32.mrf.mxu2 }
 0x456   :  { %1227 = vmax.xlane.f32.xlu2 %v6034_v38 }
 0x45c   :  { %v6037_v2 = vpop.xlane.xlu1 %895 }
 0x45d   :  { %v6039_v23 = vpop.f32.mrf.mxu2 }
 0x45e   :  { %1229 = vmax.xlane.f32.xlu0 %v6039_v23 }
 0x464   :  { %v6044_v58 = vpop.xlane.xlu1 %899 }
 0x465   :  { %v6046_v8 = vpop.f32.mrf.mxu2 }
 0x466   :  { %1231 = vmax.xlane.f32.xlu1 %v6046_v8 }
 0x46c   :  { %v958_v56 = vpop.xlane.xlu1 %957 }
 0x46d   :  { %4838 = vrcp.f32 %v958_v56  ;;  %v6049_v61 = vpop.f32.mrf.mxu2 }
 0x46e   :  { %1233 = vmax.xlane.f32.xlu1 %v6049_v61 }
 0x470   :  { %v960_v26 = vpop.xlane.xlu2 %959 }
 0x473   :  { %v4839_v63 = vpop.eup %4838 }
 0x474   :  { %v1002_v14 = vmul.f32 %v4839_v63, %v5969_v53  ;;  %v962_v55 = vpop.xlane.xlu1 %961 }
 0x475   :  { %v6054_v36 = vpop.f32.mrf.mxu2  ;;  %4840 = vrcp.f32 %v962_v55 }
 0x476   :  { %1235 = vmax.xlane.f32.xlu0 %v6054_v36  ;;  %v1016_v48 = vpack.c.bf16 %v1002_v14, %v1001_v57  ;;  %4842 = vrcp.f32 %v960_v26 }
 0x478   :  { %1060 = vmatmul.bf16.gmra.mxu0 %v1016_v48  ;;  %v964_v56 = vpop.xlane.xlu2 %963 }
 0x47b   :  { %v4841_v35 = vpop.eup %4840 }
 0x47c   :  { %v4843_v54 = vpop.eup %4842  ;;  %v1004_v42 = vmul.f32 %v4841_v35, %v5980_v40  ;;  %v966_v3 = vpop.xlane.xlu1 %965 }
 0x47d   :  { %v6057_v9 = vpop.f32.mrf.mxu2  ;;  %v1003_v53 = vmul.f32 %v4843_v54, %v5977_v12  ;;  %4844 = vrcp.f32 %v966_v3 }
 0x47e   :  { %1237 = vmax.xlane.f32.xlu0 %v6057_v9  ;;  %4846 = vrcp.f32 %v964_v56 }
 0x47f   :  { %v1017_v49 = vpack.c.bf16 %v1004_v42, %v1003_v53 }
 0x483   :  { %v4845_v63 = vpop.eup %4844 }
 0x484   :  { %v4847_v57 = vpop.eup %4846  ;;  %v1006_v40 = vmul.f32 %v4845_v63, %v5988_v5  ;;  %v6087_v63 = vpop.f32.mrf.mxu3 }
 0x485   :  { %v6062_v47 = vpop.f32.mrf.mxu2  ;;  %v1005_v12 = vmul.f32 %v4847_v57, %v5983_v28 }
 0x486   :  { %1239 = vmax.xlane.f32.xlu2 %v6062_v47 }
 0x487   :  { %v1018_v55 = vpack.c.bf16 %v1006_v40, %v1005_v12 }
 0x488   :  { %1065 = vmatmul.bf16.gmra.mxu0 %v1017_v49 }
 0x48c   :  { %v6093_v40 = vpop.f32.mrf.mxu3 }
 0x48d   :  { %v6065_v27 = vpop.f32.mrf.mxu2 }
 0x48e   :  { %1241 = vmax.xlane.f32.xlu2 %v6065_v27 }
 0x48f   :  { %v968_v26 = vpop.xlane.xlu2 %967 }
 0x495   :  { %v6070_v14 = vpop.f32.mrf.mxu2 }
 0x496   :  { %1243 = vmax.xlane.f32.xlu0 %v6070_v14 }
 0x497   :  { %v970_v48 = vpop.xlane.xlu1 %969 }
 0x498   :  { %1070 = vmatmul.bf16.gmra.mxu0 %v1018_v55  ;;  %4848 = vrcp.f32 %v970_v48  ;;  %v913_v55 = vsub.f32 %v5872_v17, %v6032_v32  ;;  %v914_v32 = vsub.f32 %v5879_v15, %v6025_v13 }
 0x499   :  { %4850 = vrcp.f32 %v968_v26  ;;  %v916_v26 = vsub.f32 %v5914_v0, %v6030_v41 }
 0x49d   :  { %v6073_v35 = vpop.f32.mrf.mxu2 }
 0x49e   :  { %1245 = vmax.xlane.f32.xlu0 %v6073_v35  ;;  %v4849_v54 = vpop.eup %4848 }
 0x49f   :  { %v4851_v42 = vpop.eup %4850  ;;  %v1008_v5 = vmul.f32 %v4849_v54, %v6007_v1  ;;  %v939_v54 = vmul.f32 1.442695, %v913_v55  ;;  %v917_v55 = vsub.f32 %v5925_v52, %v6044_v58 }
 0x4a0   :  { %v1007_v28 = vmul.f32 %v4851_v42, %v6002_v43 }
 0x4a1   :  { %v947_v15 = vmul.f32 1.442695, %v917_v55 }
 0x4a2   :  { %v1019_v3 = vpack.c.bf16 %v1008_v5, %v1007_v28  ;;  %v945_v5 = vmul.f32 1.442695, %v916_v26 }
 0x4a5   :  { %v6078_v53 = vpop.f32.mrf.mxu2 }
 0x4a6   :  { %1247 = vmax.xlane.f32.xlu2 %v6078_v53 }
 0x4a8   :  { %1075 = vmatmul.bf16.gmra.mxu0 %v1019_v3 }
 0x4ad   :  { %v6081_v49 = vpop.f32.mrf.mxu2 }
 0x4ae   :  { %1249 = vmax.xlane.f32.xlu0 %v6081_v49 }
 0x4b5   :  { %v6084_v56 = vpop.f32.mrf.mxu2 }
 0x4b6   :  { %1251 = vmax.xlane.f32.xlu2 %v6084_v56 }
 0x4bd   :  { %v6089_v57 = vpop.f32.mrf.mxu2 }
 0x4be   :  { %1253 = vmax.xlane.f32.xlu2 %v6089_v57 }
 0x4c1   :  { %v1226_v43 = vpop.xlane.xlu1 %1225 }
 0x4c2   :  { %v1257_v1 = vsub.f32 %v6027_v62, %v1226_v43  ;;  %v6106_v43 = vpop.f32.mrf.mxu3 }
 0x4c4   :  { %v1273_v12 = vmul.f32 1.442695, %v1257_v1 }
 0x4c5   :  { %v6097_v48 = vpop.f32.mrf.mxu2 }
 0x4c6   :  { %4852 = vpow2.f32 %v1273_v12  ;;  %1581 = vmax.xlane.f32.xlu2 %v6093_v40  ;;  %1255 = vmax.xlane.f32.xlu0 %v6097_v48  ;;  %v915_v12 = vsub.f32 %v5898_v33, %v6037_v2 }
 0x4c7   :  { %4854 = vpow2.f32 %v939_v54 }
 0x4c8   :  { %v943_v26 = vmul.f32 1.442695, %v915_v12 }
 0x4c9   :  { %v1228_v42 = vpop.xlane.xlu2 %1227 }
 0x4ca   :  { %v1258_v62 = vsub.f32 %v6034_v38, %v1228_v42  ;;  %v941_v38 = vmul.f32 1.442695, %v914_v32  ;;  %v6121_v1 = vpop.f32.mrf.mxu3  ;;  %v918_v32 = vsub.f32 %v5935_v50, %v6041_v37 }
 0x4cc   :  { %v6104_v28 = vpop.eup %4852  ;;  %v1275_v3 = vmul.f32 1.442695, %v1258_v62 }
 0x4cd   :  { %1305 = vadd.xlane.f32.xlu1 %v6104_v28  ;;  %v6110_v17 = vpop.eup %4854 }
 0x4ce   :  { %4856 = vpow2.f32 %v1275_v3  ;;  %1583 = vmax.xlane.f32.xlu2 %v6106_v43 }
 0x4cf   :  { %4858 = vpow2.f32 %v945_v5 }
 0x4d0   :  { %4860 = vpow2.f32 %v941_v38 }
 0x4d1   :  { %v1230_v54 = vpop.xlane.xlu0 %1229  ;;  %4862 = vpow2.f32 %v943_v26 }
 0x4d2   :  { %v6131_v62 = vpop.f32.mrf.mxu3  ;;  %4864 = vpow2.f32 %v947_v15  ;;  %v1259_v33 = vsub.f32 %v6039_v23, %v1230_v54  ;;  %v949_v23 = vmul.f32 1.442695, %v918_v32 }
 0x4d4   :  { %v6112_v0 = vpop.eup %4856  ;;  %v1277_v5 = vmul.f32 1.442695, %v1259_v33 }
 0x4d5   :  { %v6114_v41 = vpop.eup %4858  ;;  %971 = vadd.xlane.f32.xlu1 %v6110_v17  ;;  %1307 = vadd.xlane.f32.xlu0 %v6112_v0 }
 0x4d6   :  { %977 = vadd.xlane.f32.xlu2 %v6114_v41  ;;  %v6129_v13 = vpop.eup %4860  ;;  %4866 = vpow2.f32 %v1277_v5 }
 0x4d7   :  { %v6136_v3 = vpop.eup %4862  ;;  %4868 = vpow2.f32 %v949_v23 }
 0x4d8   :  { %v6138_v58 = vpop.eup %4864 }
 0x4d9   :  { %v1232_v42 = vpop.xlane.xlu1 %1231 }
 0x4da   :  { %v6149_v54 = vpop.f32.mrf.mxu3 }
 0x4dc   :  { %v6147_v26 = vpop.eup %4866 }
 0x4dd   :  { %1585 = vmax.xlane.f32.xlu1 %v6121_v1  ;;  %1579 = vmax.xlane.f32.xlu0 %v6087_v63 }
 0x4e1   :  { %v1234_v52 = vpop.xlane.xlu1 %1233 }
 0x4e2   :  { %v1261_v38 = vsub.f32 %v6049_v61, %v1234_v52 }
 0x4e4   :  { %v1281_v12 = vmul.f32 1.442695, %v1261_v38 }
 0x4e5   :  { %1587 = vmax.xlane.f32.xlu1 %v6131_v62  ;;  %973 = vadd.xlane.f32.xlu0 %v6129_v13 }
 0x4e6   :  { %4870 = vpow2.f32 %v1281_v12 }
 0x4e9   :  { %v1236_v2 = vpop.xlane.xlu0 %1235 }
 0x4ea   :  { %v1262_v23 = vsub.f32 %v6054_v36, %v1236_v2 }
 0x4ed   :  { %979 = vadd.xlane.f32.xlu1 %v6138_v58  ;;  %975 = vadd.xlane.f32.xlu0 %v6136_v3 }
 0x4ee   :  { %1745 = vrot.lane.b32.xlu2 %v5553_v19, %s5296_s11  ;;  %v6155_v19 = vpop.eup %4868 }
 0x4ef   :  { %v6157_v33 = vpop.eup %4870 }
 0x4f1   :  { %v1238_v55 = vpop.xlane.xlu0 %1237 }
 0x4f2   :  { %v1263_v50 = vsub.f32 %v6057_v9, %v1238_v55 }
 0x4f4   :  { %v1285_v37 = vmul.f32 1.442695, %v1263_v50  ;;  %v1283_v50 = vmul.f32 1.442695, %v1262_v23 }
 0x4f5   :  { %1309 = vadd.xlane.f32.xlu1 %v6147_v26  ;;  %1589 = vmax.xlane.f32.xlu0 %v6149_v54 }
 0x4f6   :  { %4872 = vpow2.f32 %v1285_v37 }
 0x4f9   :  { %v1240_v61 = vpop.xlane.xlu2 %1239 }
 0x4fa   :  { %v1264_v15 = vsub.f32 %v6062_v47, %v1240_v61  ;;  %v1260_v47 = vsub.f32 %v6046_v8, %v1232_v42 }
 0x4fc   :  { %v1287_v5 = vmul.f32 1.442695, %v1264_v15  ;;  %v6161_v9 = vpop.eup %4872  ;;  %v1279_v38 = vmul.f32 1.442695, %v1260_v47 }
 0x4fd   :  { %1313 = vadd.xlane.f32.xlu1 %v6157_v33  ;;  %981 = vadd.xlane.f32.xlu0 %v6155_v19 }
 0x4fe   :  { %4874 = vpow2.f32 %v1287_v5 }
 0x4ff   :  { %4876 = vpow2.f32 %v1279_v38 }
 0x501   :  { %v1242_v61 = vpop.xlane.xlu2 %1241 }
 0x504   :  { %v6163_v52 = vpop.eup %4874 }
 0x505   :  { %1317 = vadd.xlane.f32.xlu1 %v6161_v9  ;;  %1319 = vadd.xlane.f32.xlu0 %v6163_v52  ;;  %v6170_v15 = vpop.eup %4876 }
 0x509   :  { %v1244_v32 = vpop.xlane.xlu0 %1243 }
 0x50a   :  { %v1266_v5 = vsub.f32 %v6070_v14, %v1244_v32 }
 0x50c   :  { %v1291_v42 = vmul.f32 1.442695, %v1266_v5 }
 0x511   :  { %v1246_v12 = vpop.xlane.xlu0 %1245 }
 0x512   :  { %v1267_v55 = vsub.f32 %v6073_v35, %v1246_v12 }
 0x514   :  { %v1293_v37 = vmul.f32 1.442695, %v1267_v55 }
 0x516   :  { %4878 = vpow2.f32 %v1293_v37 }
 0x517   :  { %1311 = vadd.xlane.f32.xlu2 %v6170_v15  ;;  %4880 = vpow2.f32 %v1283_v50 }
 0x518   :  { %4882 = vpow2.f32 %v1291_v42 }
 0x519   :  { %v1248_v47 = vpop.xlane.xlu2 %1247 }
 0x51a   :  { %v1268_v35 = vsub.f32 %v6078_v53, %v1248_v47 }
 0x51c   :  { %v6174_v8 = vpop.eup %4878  ;;  %v1295_v14 = vmul.f32 1.442695, %v1268_v35 }
 0x51d   :  { %1325 = vadd.xlane.f32.xlu0 %v6174_v8  ;;  %v6177_v36 = vpop.eup %4880 }
 0x51e   :  { %1743 = vrot.lane.b32.xlu1 %v5566_v30, %s5296_s11  ;;  %v6184_v23 = vpop.eup %4882 }
 0x51f   :  { %1315 = vadd.xlane.f32.xlu2 %v6177_v36 }
 0x521   :  { %v1250_v2 = vpop.xlane.xlu0 %1249 }
 0x522   :  { %v1269_v38 = vsub.f32 %v6081_v49, %v1250_v2 }
 0x524   :  { %v1297_v32 = vmul.f32 1.442695, %v1269_v38 }
 0x526   :  { %4884 = vpow2.f32 %v1297_v32 }
 0x527   :  { %1323 = vadd.xlane.f32.xlu2 %v6184_v23  ;;  %4886 = vpow2.f32 %v1295_v14 }
 0x529   :  { %v1252_v12 = vpop.xlane.xlu2 %1251 }
 0x52a   :  { %v1270_v55 = vsub.f32 %v6084_v56, %v1252_v12  ;;  %v1265_v56 = vsub.f32 %v6065_v27, %v1242_v61 }
 0x52c   :  { %v6188_v30 = vpop.eup %4884  ;;  %v1299_v50 = vmul.f32 1.442695, %v1270_v55  ;;  %v1289_v2 = vmul.f32 1.442695, %v1265_v56 }
 0x52d   :  { %1329 = vadd.xlane.f32.xlu0 %v6188_v30  ;;  %v6191_v53 = vpop.eup %4886 }
 0x52e   :  { %4888 = vpow2.f32 %v1299_v50 }
 0x52f   :  { %1327 = vadd.xlane.f32.xlu2 %v6191_v53 }
 0x531   :  { %v1254_v49 = vpop.xlane.xlu2 %1253 }
 0x532   :  { %v1271_v37 = vsub.f32 %v6089_v57, %v1254_v49 }
 0x534   :  { %v1301_v5 = vmul.f32 1.442695, %v1271_v37  ;;  %v6195_v42 = vpop.eup %4888 }
 0x536   :  { %4890 = vpow2.f32 %v1301_v5 }
 0x537   :  { %1331 = vadd.xlane.f32.xlu2 %v6195_v42  ;;  %4892 = vpow2.f32 %v1289_v2 }
 0x539   :  { %v6199_v47 = vpop.xlane.xlu2 %1581  ;;  %v1256_v38 = vpop.xlane.xlu0 %1255 }
 0x53c   :  { %v6201_v35 = vpop.eup %4890 }
 0x53d   :  { %1333 = vadd.xlane.f32.xlu0 %v6201_v35  ;;  %v6206_v32 = vpop.eup %4892 }
 0x540   :  { %v1306_v57 = vpop.xlane.xlu1 %1305 }
 0x541   :  { %v6204_v14 = vpop.xlane.xlu2 %1583  ;;  %4894 = vrcp.f32 %v1306_v57 }
 0x547   :  { %v4895_v61 = vpop.eup %4894 }
 0x548   :  { %v1308_v12 = vpop.xlane.xlu0 %1307  ;;  %1321 = vadd.xlane.f32.xlu1 %v6206_v32  ;;  %v972_v27 = vpop.xlane.xlu1 %971  ;;  %v1353_v5 = vmul.f32 %v4895_v61, %v6104_v28 }
 0x549   :  { %v978_v55 = vpop.xlane.xlu2 %977  ;;  %4896 = vrcp.f32 %v1308_v12 }
 0x54a   :  { %4898 = vrcp.f32 %v972_v27  ;;  %v1272_v27 = vsub.f32 %v6097_v48, %v1256_v38  ;;  %v1612_v48 = vsub.f32 %v6093_v40, %v6199_v47 }
 0x54f   :  { %1739 = vrot.lane.b32.xlu2 %v5491_v59, %s5296_s11  ;;  %v4897_v50 = vpop.eup %4896 }
 0x550   :  { %v1580_v49 = vpop.xlane.xlu0 %1579  ;;  %v1354_v56 = vmul.f32 %v4897_v50, %v6112_v0  ;;  %v6215_v57 = vpop.xlane.xlu1 %1585 }
 0x551   :  { %1741 = vrot.lane.b32.xlu0 %v5571_v34, %s5296_s11  ;;  %v1746_v37 = vpop.permute.xlu2 %1745  ;;  %v4899_v31 = vpop.eup %4898 }
 0x552   :  { %1755 = vmatpush.bf16.msra.mxu0 %v1746_v37  ;;  %v1369_v2 = vpack.c.bf16 %v1354_v56, %v1353_v5  ;;  %v1009_v34 = vmul.f32 %v4899_v31, %v6110_v17  ;;  %v1303_v5 = vmul.f32 1.442695, %v1272_v27  ;;  %v6227_v31 = vpop.f32.mrf.mxu3 }
 0x554   :  { %1409 = vmatmul.bf16.vlgmr.msrb.gmra.mxu1 %v1369_v2  ;;  %v1629_v2 = vmul.f32 1.442695, %v1612_v48 }
 0x558   :  { %v974_v12 = vpop.xlane.xlu0 %973  ;;  %v6217_v4 = vpop.xlane.xlu1 %1587 }
 0x559   :  { %4900 = vrcp.f32 %v974_v12 }
 0x55a   :  { %v6235_v38 = vpop.f32.mrf.mxu3 }
 0x55f   :  { %v4901_v59 = vpop.eup %4900 }
 0x560   :  { %v976_v20 = vpop.xlane.xlu0 %975  ;;  %v1010_v44 = vmul.f32 %v4901_v59, %v6129_v13  ;;  %v980_v61 = vpop.xlane.xlu1 %979 }
 0x561   :  { %1737 = vrot.lane.b32.xlu1 %v5465_v29, %s5296_s11  ;;  %4902 = vrcp.f32 %v976_v20 }
 0x562   :  { %v1020_v28 = vpack.c.bf16 %v1010_v44, %v1009_v34  ;;  %4904 = vrcp.f32 %v978_v55 }
 0x563   :  { %4906 = vpow2.f32 %v1303_v5 }
 0x564   :  { %1080 = vmatmul.bf16.gmra.mxu0 %v1020_v28 }
 0x567   :  { %v4903_v50 = vpop.eup %4902 }
 0x568   :  { %v6223_v0 = vpop.xlane.xlu0 %1589  ;;  %v4905_v37 = vpop.eup %4904  ;;  %v1011_v56 = vmul.f32 %v4903_v50, %v6136_v3 }
 0x569   :  { %v1012_v17 = vmul.f32 %v4905_v37, %v6114_v41  ;;  %v1310_v13 = vpop.xlane.xlu1 %1309  ;;  %v6230_v20 = vpop.eup %4906  ;;  %v1611_v41 = vsub.f32 %v6087_v63, %v1580_v49 }
 0x56b   :  { %v1021_v44 = vpack.c.bf16 %v1012_v17, %v1011_v56  ;;  %v1627_v34 = vmul.f32 1.442695, %v1611_v41 }
 0x570   :  { %v982_v29 = vpop.xlane.xlu0 %981 }
 0x571   :  { %4908 = vrcp.f32 %v982_v29  ;;  %v1314_v12 = vpop.xlane.xlu1 %1313 }
 0x572   :  { %4910 = vrcp.f32 %v980_v61 }
 0x573   :  { %4912 = vpow2.f32 %v1629_v2 }
 0x574   :  { %1085 = vmatmul.bf16.gmra.mxu0 %v1021_v44  ;;  %4914 = vpow2.f32 %v1627_v34 }
 0x575   :  { %4916 = vrcp.f32 %v1310_v13 }
 0x577   :  { %v4909_v3 = vpop.eup %4908 }
 0x578   :  { %1335 = vadd.xlane.f32.xlu2 %v6230_v20  ;;  %v4911_v55 = vpop.eup %4910  ;;  %v1014_v59 = vmul.f32 %v4909_v3, %v6155_v19  ;;  %v1320_v13 = vpop.xlane.xlu0 %1319 }
 0x579   :  { %v1013_v28 = vmul.f32 %v4911_v55, %v6138_v58  ;;  %v6242_v40 = vpop.eup %4912  ;;  %v1318_v47 = vpop.xlane.xlu1 %1317 }
 0x57a   :  { %v6245_v63 = vpop.eup %4914 }
 0x57b   :  { %1593 = vmax.xlane.f32.xlu0 %v6235_v38  ;;  %v1022_v27 = vpack.c.bf16 %v1014_v59, %v1013_v28  ;;  %v4917_v19 = vpop.eup %4916 }
 0x57c   :  { %v1355_v50 = vmul.f32 %v4917_v19, %v6147_v26 }
 0x580   :  { %1591 = vmax.xlane.f32.xlu2 %v6227_v31 }
 0x584   :  { %1090 = vmatmul.bf16.gmra.mxu0 %v1022_v27 }
 0x588   :  { %1661 = vadd.xlane.f32.xlu2 %v6242_v40 }
 0x58a   :  { %v1312_v49 = vpop.xlane.xlu2 %1311 }
 0x58b   :  { %4918 = vrcp.f32 %v1312_v49  ;;  %1659 = vadd.xlane.f32.xlu1 %v6245_v63 }
 0x58f   :  { %1735 = vrot.lane.b32.xlu0 %v5447_v7, %s5296_s11 }
 0x590   :  { %v1744_v58 = vpop.permute.xlu1 %1743  ;;  %v1326_v3 = vpop.xlane.xlu0 %1325 }
 0x591   :  { %v4919_v61 = vpop.eup %4918  ;;  %1756 = vmatpush.bf16.msra.mxu0 %v1744_v58 }
 0x592   :  { %v1356_v37 = vmul.f32 %v4919_v61, %v6170_v15  ;;  %v1316_v5 = vpop.xlane.xlu2 %1315  ;;  %v6258_v15 = vpop.f32.mrf.mxu3 }
 0x593   :  { %4920 = vrcp.f32 %v1316_v5 }
 0x594   :  { %v1370_v56 = vpack.c.bf16 %v1356_v37, %v1355_v50  ;;  %4922 = vrcp.f32 %v1314_v12 }
 0x595   :  { %4924 = vrcp.f32 %v1318_v47 }
 0x596   :  { %1414 = vmatmul.bf16.gmra.mxu1 %v1370_v56  ;;  %4926 = vrcp.f32 %v1320_v13 }
 0x599   :  { %v4921_v17 = vpop.eup %4920 }
 0x59a   :  { %v4923_v29 = vpop.eup %4922  ;;  %v1358_v44 = vmul.f32 %v4921_v17, %v6177_v36  ;;  %v1324_v48 = vpop.xlane.xlu2 %1323  ;;  %v1614_v36 = vsub.f32 %v6121_v1, %v6215_v57  ;;  %v1613_v1 = vsub.f32 %v6106_v43, %v6204_v14  ;;  %v1615_v57 = vsub.f32 %v6131_v62, %v6217_v4 }
 0x59b   :  { %v1357_v7 = vmul.f32 %v4923_v29, %v6157_v33  ;;  %v4925_v41 = vpop.eup %4924  ;;  %v6260_v2 = vpop.f32.mrf.mxu3  ;;  %v1616_v43 = vsub.f32 %v6149_v54, %v6223_v0 }
 0x59c   :  { %v4927_v55 = vpop.eup %4926  ;;  %v1633_v34 = vmul.f32 1.442695, %v1614_v36  ;;  %v1631_v58 = vmul.f32 1.442695, %v1613_v1  ;;  %v1635_v56 = vmul.f32 1.442695, %v1615_v57 }
 0x59d   :  { %v1371_v26 = vpack.c.bf16 %v1358_v44, %v1357_v7  ;;  %v1360_v33 = vmul.f32 %v4927_v55, %v6163_v52  ;;  %v1637_v4 = vmul.f32 1.442695, %v1616_v43 }
 0x59e   :  { %4928 = vpow2.f32 %v1633_v34 }
 0x59f   :  { %4930 = vrcp.f32 %v1324_v48 }
 0x5a0   :  { %1733 = vrot.lane.b32.xlu2 %v5425_v45, %s5296_s11  ;;  %v1359_v45 = vmul.f32 %v4925_v41, %v6161_v9 }
 0x5a2   :  { %v1328_v12 = vpop.xlane.xlu2 %1327  ;;  %v1372_v59 = vpack.c.bf16 %v1360_v33, %v1359_v45 }
 0x5a3   :  { %v6267_v28 = vpop.f32.mrf.mxu3 }
 0x5a4   :  { %1731 = vrot.lane.b32.xlu1 %v5405_v22, %s5296_s11  ;;  %v1330_v22 = vpop.xlane.xlu0 %1329  ;;  %v6269_v49 = vpop.eup %4928 }
 0x5a5   :  { %v4931_v52 = vpop.eup %4930 }
 0x5a6   :  { %1419 = vmatmul.bf16.gmra.mxu1 %v1371_v26  ;;  %v1362_v37 = vmul.f32 %v4931_v52, %v6184_v23 }
 0x5aa   :  { %v1332_v9 = vpop.xlane.xlu2 %1331 }
 0x5ab   :  { %v6278_v5 = vpop.f32.mrf.mxu3 }
 0x5b0   :  { %v1334_v27 = vpop.xlane.xlu0 %1333 }
 0x5b2   :  { %v1740_v14 = vpop.permute.xlu2 %1739 }
 0x5b3   :  { %v6284_v62 = vpop.f32.mrf.mxu3 }
 0x5b6   :  { %1424 = vmatmul.bf16.gmra.mxu1 %v1372_v59 }
 0x5b9   :  { %1595 = vmax.xlane.f32.xlu0 %v6258_v15 }
 0x5bb   :  { %v1322_v47 = vpop.xlane.xlu1 %1321  ;;  %v6297_v48 = vpop.f32.mrf.mxu3 }
 0x5bc   :  { %4932 = vrcp.f32 %v1322_v47 }
 0x5bd   :  { %4934 = vpow2.f32 %v1631_v58 }
 0x5be   :  { %4936 = vrcp.f32 %v1328_v12 }
 0x5bf   :  { %4938 = vpow2.f32 %v1635_v56 }
 0x5c0   :  { %4940 = vrcp.f32 %v1326_v3 }
 0x5c1   :  { %1665 = vadd.xlane.f32.xlu0 %v6269_v49  ;;  %4942 = vpow2.f32 %v1637_v4 }
 0x5c2   :  { %v4933_v19 = vpop.eup %4932  ;;  %4944 = vrcp.f32 %v1332_v9 }
 0x5c3   :  { %v1742_v61 = vpop.permute.xlu0 %1741  ;;  %v1361_v50 = vmul.f32 %v4933_v19, %v6206_v32  ;;  %v6286_v23 = vpop.eup %4934  ;;  %4946 = vrcp.f32 %v1330_v22 }
 0x5c4   :  { %1757 = vmatpush.bf16.msra.mxu0 %v1742_v61  ;;  %v4937_v32 = vpop.eup %4936  ;;  %v6302_v41 = vpop.f32.mrf.mxu3  ;;  %4948 = vrcp.f32 %v1334_v27  ;;  %v4354_v27 = vld [vmem:[%s8126_s1 + $0x1] sm:$0x1] }
 0x5c5   :  { %v1373_v17 = vpack.c.bf16 %v1362_v37, %v1361_v50  ;;  %v6289_v29 = vpop.eup %4938  ;;  %v1364_v0 = vmul.f32 %v4937_v32, %v6191_v53  ;;  %v6322_v50 = vpop.f32.mrf.mxu0 }
 0x5c6   :  { %v4941_v54 = vpop.eup %4940 }
 0x5c7   :  { %1429 = vmatmul.bf16.gmra.mxu1 %v1373_v17  ;;  %v1363_v7 = vmul.f32 %v4941_v54, %v6174_v8  ;;  %v6295_v13 = vpop.eup %4942 }
 0x5c8   :  { %1758 = vmatpush.bf16.msra.mxu0 %v1740_v14  ;;  %v4945_v3 = vpop.eup %4944 }
 0x5c9   :  { %1599 = vmax.xlane.f32.xlu0 %v6267_v28  ;;  %1597 = vmax.xlane.f32.xlu2 %v6260_v2  ;;  %v1374_v26 = vpack.c.bf16 %v1364_v0, %v1363_v7  ;;  %v4947_v53 = vpop.eup %4946  ;;  %v1366_v8 = vmul.f32 %v4945_v3, %v6195_v42 }
 0x5ca   :  { %v1365_v55 = vmul.f32 %v4947_v53, %v6188_v30  ;;  %v4949_v59 = vpop.eup %4948 }
 0x5cb   :  { %v1367_v9 = vmul.f32 %v4949_v59, %v6201_v35  ;;  %v4476_v35 = vld [vmem:[%s8125_s0 + $0x40] sm:$0xff]  }
 0x5cc   :  { %v1375_v45 = vpack.c.bf16 %v1366_v8, %v1365_v55  ;;  %v6331_v54 = vpop.f32.mrf.mxu3 }
 0x5cd   :  { %v6333_v0 = vpop.f32.mrf.mxu0 }
 0x5ce   :  { %1663 = vadd.xlane.f32.xlu1 %v6286_v23 }
 0x5d1   :  { %1667 = vadd.xlane.f32.xlu0 %v6289_v29  ;;  %1601 = vmax.xlane.f32.xlu2 %v6278_v5  ;;  %v6329_v43 = vpop.f32.mrf.mxu1 }
 0x5d3   :  { %v1738_v44 = vpop.permute.xlu1 %1737 }
 0x5d4   :  { %1759 = vmatpush.bf16.msra.mxu0 %v1738_v44 }
 0x5d5   :  { %v6341_v8 = vpop.f32.mrf.mxu0 }
 0x5d6   :  { %1669 = vadd.xlane.f32.xlu1 %v6295_v13 }
 0x5d7   :  { %1434 = vmatmul.bf16.gmra.mxu1 %v1374_v26  ;;  %v4477_v26 = vld [vmem:[%s8125_s0 + $0x48] sm:$0xff]  }
 0x5d8   :  { %v4443_v3 = vunpack.c.l.bf16 %v4477_v26  ;;  %v4444_v53 = vunpack.c.h.bf16 %v4477_v26 }
 0x5d9   :  { %1605 = vmax.xlane.f32.xlu0 %v6297_v48  ;;  %1603 = vmax.xlane.f32.xlu2 %v6284_v62  ;;  %v6336_v7 = vpop.f32.mrf.mxu1 }
 0x5e1   :  { %1607 = vmax.xlane.f32.xlu0 %v6302_v41 }
 0x5e7   :  { %1439 = vmatmul.bf16.gmra.mxu1 %v1375_v45 }
 0x5eb   :  { %v1336_v33 = vpop.xlane.xlu2 %1335 }
 0x5ec   :  { %4950 = vrcp.f32 %v1336_v33 }
 0x5ee   :  { %v1594_v36 = vpop.xlane.xlu0 %1593 }
 0x5ef   :  { %v1618_v12 = vsub.f32 %v6235_v38, %v1594_v36  ;;  %v2207_v38 = vpack.i.b16 %v4354_v27, %v4354_v27 }
 0x5f1   :  { %v1641_v22 = vmul.f32 1.442695, %v1618_v12  ;;  %v2209_v19 = vperm.slane %v2207_v38, 0 }
 0x5f2   :  { %v4951_v34 = vpop.eup %4950 }
 0x5f3   :  { %4952 = vpow2.f32 %v1641_v22  ;;  %v1592_v47 = vpop.xlane.xlu2 %1591  ;;  %v1368_v1 = vmul.f32 %v4951_v34, %v6230_v20  ;;  %v4440_v20 = vunpack.c.h.bf16 %v4476_v35  ;;  %v6320_v61 = vunpack.c.l.bf16 %v2209_v19 }
 0x5f4   :  { %v1617_v42 = vsub.f32 %v6227_v31, %v1592_v47  ;;  %v4439_v31 = vunpack.c.l.bf16 %v4476_v35 }
 0x5f5   :  { %v1376_v30 = vpack.c.bf16 %v1368_v1, %v1367_v9  ;;  %v2228_v17 = vmul.f32 %v4440_v20, %v6320_v61  ;;  %v2229_v55 = vmul.f32 %v4443_v3, %v6320_v61  ;;  %v2230_v45 = vmul.f32 %v4444_v53, %v6320_v61  ;;  %v6349_v1 = vpop.f32.mrf.mxu0  ;;  %v4479_v20 = vld [vmem:[%s8125_s0 + $0x58] sm:$0xff]  }
 0x5f6   :  { %v1639_v52 = vmul.f32 1.442695, %v1617_v42  ;;  %v2227_v56 = vmul.f32 %v4439_v31, %v6320_v61 }
 0x5f7   :  { %1444 = vmatmul.bf16.gmra.mxu1 %v1376_v30  ;;  %v2244_v59 = vpack.c.bf16 %v2230_v45, %v2229_v55  ;;  %v4478_v30 = vld [vmem:[%s8125_s0 + $0x50] sm:$0xff]  }
 0x5f8   :  { %4954 = vpow2.f32 %v1639_v52  ;;  %v2243_v4 = vpack.c.bf16 %v2228_v17, %v2227_v56  ;;  %v4447_v27 = vunpack.c.l.bf16 %v4478_v30 }
 0x5f9   :  { %v6314_v57 = vpop.eup %4952 }
 0x5fa   :  { %1673 = vadd.xlane.f32.xlu2 %v6314_v57 }
 0x5fb   :  { %v1662_v58 = vpop.xlane.xlu2 %1661 }
 0x5fd   :  { %v6360_v19 = vpop.f32.mrf.mxu0 }
 0x5fe   :  { %v6324_v37 = vpop.eup %4954  ;;  %v1660_v44 = vpop.xlane.xlu1 %1659 }
 0x5ff   :  { %1671 = vadd.xlane.f32.xlu1 %v6324_v37  ;;  %4956 = vrcp.f32 %v1660_v44 }
 0x600   :  { %4958 = vrcp.f32 %v1662_v58 }
 0x601   :  { %v1736_v14 = vpop.permute.xlu0 %1735 }
 0x602   :  { %1760 = vmatpush.bf16.msra.mxu0 %v1736_v14  ;;  %v4451_v14 = vunpack.c.l.bf16 %v4479_v20 }
 0x603   :  { %v1734_v32 = vpop.permute.xlu2 %1733 }
 0x604   :  { %v2233_v3 = vmul.f32 %v4451_v14, %v6320_v61 }
 0x605   :  { %v4957_v33 = vpop.eup %4956 }
 0x606   :  { %1761 = vmatpush.bf16.msra.mxu0 %v1734_v32  ;;  %v4959_v36 = vpop.eup %4958  ;;  %v1707_v22 = vmul.f32 %v4957_v33, %v6245_v63  ;;  %v4448_v63 = vunpack.c.h.bf16 %v4478_v30  ;;  %v6371_v32 = vpop.f32.mrf.mxu0 }
 0x607   :  { %1609 = vmax.xlane.f32.xlu1 %v6331_v54  ;;  %2259 = vmatmul.bf16.vlgmr.msra.gmra.mxu1 %v2243_v4  ;;  %v1708_v34 = vmul.f32 %v4959_v36, %v6242_v40  ;;  %v2231_v40 = vmul.f32 %v4447_v27, %v6320_v61  ;;  %v4452_v4 = vunpack.c.h.bf16 %v4479_v20 }
 0x608   :  { %v2232_v38 = vmul.f32 %v4448_v63, %v6320_v61 }
 0x609   :  { %v1723_v9 = vpack.c.bf16 %v1708_v34, %v1707_v22  ;;  %v2234_v53 = vmul.f32 %v4452_v4, %v6320_v61 }
 0x60a   :  { %v2245_v35 = vpack.c.bf16 %v2232_v38, %v2231_v40 }
 0x60b   :  { %v2246_v45 = vpack.c.bf16 %v2234_v53, %v2233_v3 }
 0x613   :  { %v6345_v12 = vpop.f32.mrf.mxu1 }
 0x616   :  { %v1732_v47 = vpop.permute.xlu1 %1731 }
 0x617   :  { %1762 = vmatpush.bf16.msra.mxu0 %v1732_v47  ;;  %2264 = vmatmul.bf16.gmra.mxu1 %v2244_v59  ;;  %v6380_v59 = vpop.f32.mrf.mxu0 }
 0x61a   :  { %1763 = vmatmul.bf16.vlgmr.msra.gmra.mxu0 %v1723_v9 }
 0x61b   :  { %v6351_v42 = vpop.f32.mrf.mxu1 }
 0x61f   :  { %v6394_v14 = vpop.f32.mrf.mxu0 }
 0x623   :  { %v6362_v58 = vpop.f32.mrf.mxu1 }
 0x627   :  { %2269 = vmatmul.bf16.gmra.mxu1 %v2245_v35 }
 0x62b   :  { %v6364_v31 = vpop.f32.mrf.mxu1 }
 0x62c   :  { %v1596_v17 = vpop.xlane.xlu0 %1595 }
 0x62d   :  { %v1619_v44 = vsub.f32 %v6258_v15, %v1596_v17  ;;  %v4480_v15 = vld [vmem:[%s8125_s0 + $0x60] sm:$0xff]  }
 0x62e   :  { %v4455_v30 = vunpack.c.l.bf16 %v4480_v15  ;;  %v4456_v27 = vunpack.c.h.bf16 %v4480_v15 }
 0x62f   :  { %v1643_v26 = vmul.f32 1.442695, %v1619_v44 }
 0x630   :  { %v2235_v20 = vmul.f32 %v4455_v30, %v6320_v61  ;;  %v2236_v17 = vmul.f32 %v4456_v27, %v6320_v61  ;;  %v6407_v27 = vpop.f32.mrf.mxu0 }
 0x631   :  { %4960 = vpow2.f32 %v1643_v26 }
 0x632   :  { %v2247_v44 = vpack.c.bf16 %v2236_v17, %v2235_v20 }
 0x633   :  { %v6376_v55 = vpop.f32.mrf.mxu1 }
 0x634   :  { %v1666_v33 = vpop.xlane.xlu0 %1665 }
 0x635   :  { %4962 = vrcp.f32 %v1666_v33 }
 0x637   :  { %v6378_v36 = vpop.eup %4960  ;;  %2274 = vmatmul.bf16.gmra.mxu1 %v2246_v45 }
 0x638   :  { %1675 = vadd.xlane.f32.xlu2 %v6378_v36 }
 0x63b   :  { %v6383_v22 = vpop.f32.mrf.mxu1  ;;  %v4963_v53 = vpop.eup %4962 }
 0x63c   :  { %v1600_v47 = vpop.xlane.xlu0 %1599  ;;  %v1598_v9 = vpop.xlane.xlu2 %1597  ;;  %v1710_v30 = vmul.f32 %v4963_v53, %v6269_v49 }
 0x63d   :  { %v1621_v63 = vsub.f32 %v6267_v28, %v1600_v47  ;;  %v1620_v40 = vsub.f32 %v6260_v2, %v1598_v9 }
 0x63f   :  { %v1647_v38 = vmul.f32 1.442695, %v1621_v63  ;;  %v1645_v35 = vmul.f32 1.442695, %v1620_v40 }
 0x641   :  { %4964 = vpow2.f32 %v1647_v38  ;;  %v1664_v4 = vpop.xlane.xlu1 %1663 }
 0x642   :  { %4966 = vpow2.f32 %v1645_v35 }
 0x643   :  { %4968 = vrcp.f32 %v1664_v4 }
 0x644   :  { %v1668_v26 = vpop.xlane.xlu0 %1667  ;;  %v6396_v3 = vpop.f32.mrf.mxu1 }
 0x645   :  { %v1602_v28 = vpop.xlane.xlu2 %1601 }
 0x646   :  { %v1622_v2 = vsub.f32 %v6278_v5, %v1602_v28  ;;  %v4481_v5 = vld [vmem:[%s8125_s0 + $0x68] sm:$0xff]  }
 0x647   :  { %v6399_v45 = vpop.eup %4964  ;;  %2279 = vmatmul.bf16.gmra.mxu1 %v2247_v44  ;;  %v4459_v20 = vunpack.c.l.bf16 %v4481_v5  ;;  %v4460_v17 = vunpack.c.h.bf16 %v4481_v5 }
 0x648   :  { %v6401_v15 = vpop.eup %4966  ;;  %v1649_v33 = vmul.f32 1.442695, %v1622_v2  ;;  %1679 = vadd.xlane.f32.xlu1 %v6399_v45 }
 0x649   :  { %v4969_v47 = vpop.eup %4968  ;;  %1677 = vadd.xlane.f32.xlu0 %v6401_v15  ;;  %v1670_v63 = vpop.xlane.xlu1 %1669  ;;  %v2237_v28 = vmul.f32 %v4459_v20, %v6320_v61  ;;  %v2238_v53 = vmul.f32 %v4460_v17, %v6320_v61 }
 0x64a   :  { %4970 = vpow2.f32 %v1649_v33  ;;  %v1709_v9 = vmul.f32 %v4969_v47, %v6286_v23 }
 0x64b   :  { %4972 = vrcp.f32 %v1670_v63  ;;  %v2248_v47 = vpack.c.bf16 %v2238_v53, %v2237_v28 }
 0x64c   :  { %v1606_v40 = vpop.xlane.xlu0 %1605  ;;  %v6412_v38 = vpop.f32.mrf.mxu1  ;;  %v1724_v35 = vpack.c.bf16 %v1710_v30, %v1709_v9  ;;  %4974 = vrcp.f32 %v1668_v26 }
 0x64d   :  { %v1624_v4 = vsub.f32 %v6297_v48, %v1606_v40  ;;  %v1604_v44 = vpop.xlane.xlu2 %1603  ;;  %v6423_v30 = vpop.f32.mrf.mxu0 }
 0x64e   :  { %v1623_v23 = vsub.f32 %v6284_v62, %v1604_v44  ;;  %1768 = vmatmul.bf16.gmra.mxu0 %v1724_v35 }
 0x64f   :  { %v1653_v49 = vmul.f32 1.442695, %v1624_v4 }
 0x650   :  { %v6418_v2 = vpop.eup %4970  ;;  %v1651_v33 = vmul.f32 1.442695, %v1623_v23 }
 0x651   :  { %4976 = vpow2.f32 %v1653_v49  ;;  %1681 = vadd.xlane.f32.xlu2 %v6418_v2  ;;  %v4973_v62 = vpop.eup %4972 }
 0x652   :  { %4978 = vpow2.f32 %v1651_v33  ;;  %v4975_v5 = vpop.eup %4974  ;;  %v1712_v20 = vmul.f32 %v4973_v62, %v6295_v13  ;;  %v4483_v62 = vld [vmem:[%s8125_s0 + $0x78] sm:$0xff]  }
 0x653   :  { %v1711_v17 = vmul.f32 %v4975_v5, %v6289_v29  ;;  %v4467_v5 = vunpack.c.l.bf16 %v4483_v62 }
 0x654   :  { %v1608_v48 = vpop.xlane.xlu0 %1607  ;;  %v6421_v9 = vpop.f32.mrf.mxu1 }
 0x655   :  { %v1625_v63 = vsub.f32 %v6302_v41, %v1608_v48  ;;  %v4482_v41 = vld [vmem:[%s8125_s0 + $0x70] sm:$0xff]   ;;  %v1725_v44 = vpack.c.bf16 %v1712_v20, %v1711_v17  ;;  %v6439_v28 = vpop.f32.mrf.mxu0  ;;  %v4506_v17 = vpack.i.bf16 %v6333_v0, %v6322_v50 }
 0x656   :  { %v4463_v23 = vunpack.c.l.bf16 %v4482_v41  ;;  %v4464_v49 = vunpack.c.h.bf16 %v4482_v41  ;;  %v2241_v41 = vmul.f32 %v4467_v5, %v6320_v61 }
 0x657   :  { %v6426_v40 = vpop.eup %4976  ;;  %v1655_v35 = vmul.f32 1.442695, %v1625_v63  ;;  %2284 = vmatmul.bf16.gmra.mxu1 %v2248_v47 }
 0x658   :  { %v6428_v26 = vpop.eup %4978  ;;  %1685 = vadd.xlane.f32.xlu1 %v6426_v40  ;;  %v2239_v13 = vmul.f32 %v4463_v23, %v6320_v61  ;;  %v2240_v33 = vmul.f32 %v4464_v49, %v6320_v61 }
 0x659   :  { %4980 = vpow2.f32 %v1655_v35  ;;  %1683 = vadd.xlane.f32.xlu0 %v6428_v26  ;;  %v4468_v35 = vunpack.c.h.bf16 %v4483_v62 }
 0x65a   :  { %v2249_v29 = vpack.c.bf16 %v2240_v33, %v2239_v13 }
 0x65c   :  { %v6437_v4 = vpop.f32.mrf.mxu1 }
 0x65d   :  { %v6448_v48 = vpop.f32.mrf.mxu0 }
 0x65e   :  { %1773 = vmatmul.bf16.gmra.mxu0 %v1725_v44  ;;  %v2242_v44 = vmul.f32 %v4468_v35, %v6320_v61 }
 0x65f   :  { %v6441_v53 = vpop.eup %4980 }
 0x660   :  { %1687 = vadd.xlane.f32.xlu2 %v6441_v53  ;;  %v2250_v13 = vpack.c.bf16 %v2242_v44, %v2241_v41 }
 0x664   :  { %v6446_v47 = vpop.f32.mrf.mxu1 }
 0x665   :  { %v6459_v23 = vpop.f32.mrf.mxu0 }
 0x667   :  { %2289 = vmatmul.bf16.gmra.mxu1 %v2249_v29  ;;  %v4516_v29 = vpack.i.bf16 %v6349_v1, %v6341_v8  ;;  %v4526_v8 = vpack.i.bf16 %v6371_v32, %v6360_v19  ;;  %v4546_v19 = vpack.i.bf16 %v6423_v30, %v6407_v27 }
 0x66c   :  { %v6453_v63 = vpop.f32.mrf.mxu1 }
 0x66d   :  { %v1674_v20 = vpop.xlane.xlu2 %1673  ;;  %v6469_v35 = vpop.f32.mrf.mxu0 }
 0x66e   :  { %4982 = vrcp.f32 %v1674_v20 }
 0x671   :  { %4507 = vrot.lane.b32.xlu1 %v4506_v17, %s5296_s11 }
 0x672   :  { %v1672_v49 = vpop.xlane.xlu1 %1671 }
 0x673   :  { %4984 = vrcp.f32 %v1672_v49 }
 0x674   :  { %v6462_v33 = vpop.f32.mrf.mxu1  ;;  %v4983_v62 = vpop.eup %4982 }
 0x675   :  { %v1714_v5 = vmul.f32 %v4983_v62, %v6314_v57  ;;  %v6481_v57 = vpop.f32.mrf.mxu0 }
 0x677   :  { %2294 = vmatmul.bf16.gmra.mxu1 %v2250_v13 }
 0x678   :  { %4517 = vrot.lane.b32.xlu2 %v4516_v29, %s5296_s11 }
 0x679   :  { %v4985_v50 = vpop.eup %4984 }
 0x67a   :  { %v1610_v0 = vpop.xlane.xlu1 %1609  ;;  %v1713_v61 = vmul.f32 %v4985_v50, %v6324_v37 }
 0x67b   :  { %v1626_v20 = vsub.f32 %v6331_v54, %v1610_v0  ;;  %v4536_v54 = vpack.i.bf16 %v6394_v14, %v6380_v59 }
 0x67c   :  { %v6472_v17 = vpop.f32.mrf.mxu1  ;;  %v1726_v41 = vpack.c.bf16 %v1714_v5, %v1713_v61 }
 0x67d   :  { %v1657_v44 = vmul.f32 1.442695, %v1626_v20  ;;  %v6491_v32 = vpop.f32.mrf.mxu0 }
 0x67e   :  { %1778 = vmatmul.bf16.gmra.mxu0 %v1726_v41 }
 0x67f   :  { %4986 = vpow2.f32 %v1657_v44 }
 0x680   :  { %4527 = vrot.lane.b32.xlu2 %v4526_v8, %s5296_s11 }
 0x684   :  { %v6477_v1 = vpop.f32.mrf.mxu1 }
 0x685   :  { %v6479_v37 = vpop.eup %4986 }
 0x686   :  { %1689 = vadd.xlane.f32.xlu0 %v6479_v37 }
 0x688   :  { %4537 = vrot.lane.b32.xlu2 %v4536_v54, %s5296_s11 }
 0x68c   :  { %v6487_v49 = vpop.f32.mrf.mxu1 }
 0x690   :  { %4547 = vrot.lane.b32.xlu2 %v4546_v19, %s5296_s11 }
 0x694   :  { %v6494_v13 = vpop.f32.mrf.mxu1 }
 0x697   :  { %v1764_v29 = vpop.f32.mrf.mxu0 }
 0x69c   :  { %v6496_v62 = vpop.f32.mrf.mxu1 }
 0x69f   :  { %v1766_v50 = vpop.f32.mrf.mxu0 }
 0x6a0   :  { %v4511_v59 = vpack.i.bf16 %v1766_v50, %v1764_v29 }
 0x6a2   :  { %4512 = vrot.lane.b32.xlu0 %v4511_v59, %s5295_s10 }
 0x6a4   :  { %v6499_v14 = vpop.f32.mrf.mxu1 }
 0x6ab   :  { %v1676_v27 = vpop.xlane.xlu2 %1675 }
 0x6ac   :  { %v6501_v0 = vpop.f32.mrf.mxu1  ;;  %4988 = vrcp.f32 %v1676_v27 }
 0x6b2   :  { %v4989_v20 = vpop.eup %4988 }
 0x6b3   :  { %v1715_v44 = vmul.f32 %v4989_v20, %v6378_v36 }
 0x6b4   :  { %v6503_v61 = vpop.f32.mrf.mxu1 }
 0x6bb   :  { %v1680_v50 = vpop.xlane.xlu1 %1679 }
 0x6bc   :  { %v1678_v30 = vpop.xlane.xlu0 %1677  ;;  %v6505_v5 = vpop.f32.mrf.mxu1 }
 0x6bd   :  { %4990 = vrcp.f32 %v1678_v30 }
 0x6c3   :  { %v4991_v41 = vpop.eup %4990 }
 0x6c4   :  { %v1716_v8 = vmul.f32 %v4991_v41, %v6401_v15  ;;  %v6509_v54 = vpop.f32.mrf.mxu1  ;;  %v1682_v19 = vpop.xlane.xlu2 %1681 }
 0x6c5   :  { %4992 = vrcp.f32 %v1682_v19 }
 0x6c6   :  { %v1727_v29 = vpack.c.bf16 %v1716_v8, %v1715_v44  ;;  %4994 = vrcp.f32 %v1680_v50 }
 0x6c8   :  { %1783 = vmatmul.bf16.gmra.mxu0 %v1727_v29 }
 0x6cb   :  { %v1769_v59 = vpop.f32.mrf.mxu0  ;;  %v4993_v34 = vpop.eup %4992 }
 0x6cc   :  { %v6511_v27 = vpop.f32.mrf.mxu1  ;;  %v4995_v56 = vpop.eup %4994  ;;  %v1718_v30 = vmul.f32 %v4993_v34, %v6418_v2 }
 0x6cd   :  { %v1717_v36 = vmul.f32 %v4995_v56, %v6399_v45  ;;  %v1686_v20 = vpop.xlane.xlu1 %1685  ;;  %v1684_v41 = vpop.xlane.xlu0 %1683 }
 0x6ce   :  { %4996 = vrcp.f32 %v1686_v20 }
 0x6cf   :  { %v1728_v44 = vpack.c.bf16 %v1718_v30, %v1717_v36  ;;  %4998 = vrcp.f32 %v1684_v41  ;;  %v6530_v30 = vld [vmem:[%s8127_s2 + $0x4] sm:$0x7] }
 0x6d0   :  { %v6533_v36 = vperm.slane %v6530_v30, 1 }
 0x6d3   :  { %v1771_v52 = vpop.f32.mrf.mxu0 }
 0x6d4   :  { %v4521_v11 = vpack.i.bf16 %v1771_v52, %v1769_v59  ;;  %v6515_v15 = vpop.f32.mrf.mxu1  ;;  %v4997_v29 = vpop.eup %4996 }
 0x6d5   :  { %v4999_v50 = vpop.eup %4998  ;;  %v1720_v52 = vmul.f32 %v4997_v29, %v6426_v40  ;;  %v1688_v40 = vpop.xlane.xlu2 %1687  ;;  %v2346_v16 = vmul.f32 %v6533_v36, %v6515_v15 }
 0x6d6   :  { %4522 = vrot.lane.b32.xlu0 %v4521_v11, %s5295_s10  ;;  %v1719_v34 = vmul.f32 %v4999_v50, %v6428_v26  ;;  %5000 = vrcp.f32 %v1688_v40 }
 0x6d8   :  { %1788 = vmatmul.bf16.gmra.mxu0 %v1728_v44  ;;  %v1729_v11 = vpack.c.bf16 %v1720_v52, %v1719_v34 }
 0x6db   :  { %v1774_v8 = vpop.f32.mrf.mxu0 }
 0x6dc   :  { %v6518_v19 = vpop.f32.mrf.mxu1 }
 0x6e3   :  { %v1776_v56 = vpop.f32.mrf.mxu0 }
 0x6e4   :  { %v4531_v45 = vpack.i.bf16 %v1776_v56, %v1774_v8  ;;  %v6522_v2 = vpop.f32.mrf.mxu1  ;;  %v5001_v56 = vpop.eup %5000 }
 0x6e5   :  { %v2348_v8 = vmul.f32 %v6533_v36, %v6522_v2 }
 0x6e6   :  { %4532 = vrot.lane.b32.xlu0 %v4531_v45, %s5295_s10 }
 0x6e7   :  { %v2364_v45 = vpack.c.bf16 %v2348_v8, %v2348_v8 }
 0x6e8   :  { %1793 = vmatmul.bf16.gmra.mxu0 %v1729_v11 }
 0x6e9   :  { %v2469_v25 = vunpack.c.l.b16 %v2364_v45 }
 0x6ec   :  { %v6525_v59 = vpop.f32.mrf.mxu1 }
 0x6ed   :  { %v2349_v29 = vmul.f32 %v6533_v36, %v6525_v59 }
 0x6ef   :  { %v2365_v11 = vpack.c.bf16 %v2349_v29, %v2349_v29 }
 0x6f1   :  { %v2470_v24 = vunpack.c.l.b16 %v2365_v11 }
 0x6f4   :  { %v6535_v26 = vpop.f32.mrf.mxu1 }
 0x6f5   :  { %8179 = vst [vmem:[#allocation21_spill] sm:$0xff] %v6535_v26  ;;  %v2350_v20 = vmul.f32 %v6533_v36, %v6535_v26 }
 0x6f7   :  { %v2366_v50 = vpack.c.bf16 %v2350_v20, %v2350_v20  ;;  %v2347_v20 = vmul.f32 %v6533_v36, %v6518_v19 }
 0x6f9   :  { %v1690_v41 = vpop.xlane.xlu0 %1689  ;;  %v2471_v60 = vunpack.c.l.b16 %v2366_v50  ;;  %v6558_v50 = vpack.c.b16 %v2470_v24, %v2469_v25  ;;  %v2342_v24 = vmul.f32 %v6533_v36, %v6503_v61  ;;  %v2343_v25 = vmul.f32 %v6533_v36, %v6505_v5 }
 0x6fa   :  { %5002 = vrcp.f32 %v1690_v41  ;;  %v1721_v41 = vmul.f32 %v5001_v56, %v6441_v53 }
 0x6fb   :  { %v1779_v44 = vpop.f32.mrf.mxu0  ;;  %8182 = vst [vmem:[#allocation24_spill] sm:$0xff] %v6558_v50 }
 0x6fc   :  { %v6543_v34 = vpop.f32.mrf.mxu1 }
 0x6fd   :  { %8180 = vst [vmem:[#allocation22_spill] sm:$0xff] %v6543_v34  ;;  %v2351_v52 = vmul.f32 %v6533_v36, %v6543_v34 }
 0x6ff   :  { %v2367_v40 = vpack.c.bf16 %v2351_v52, %v2351_v52  ;;  %v2344_v52 = vmul.f32 %v6533_v36, %v6509_v54 }
 0x700   :  { %v5003_v51 = vpop.eup %5002 }
 0x701   :  { %v1722_v6 = vmul.f32 %v5003_v51, %v6479_v37  ;;  %v2472_v21 = vunpack.c.l.b16 %v2367_v40  ;;  %v2362_v51 = vpack.c.bf16 %v2346_v16, %v2346_v16  ;;  %v2363_v37 = vpack.c.bf16 %v2347_v20, %v2347_v20 }
 0x702   :  { %v2358_v40 = vpack.c.bf16 %v2342_v24, %v2342_v24 }
 0x703   :  { %v1781_v46 = vpop.f32.mrf.mxu0  ;;  %v1730_v18 = vpack.c.bf16 %v1722_v6, %v1721_v41  ;;  %v6553_v8 = vpack.c.b16 %v2472_v21, %v2471_v60  ;;  %v2345_v6 = vmul.f32 %v6533_v36, %v6511_v27  ;;  %v2467_v21 = vunpack.c.l.b16 %v2362_v51 }
 0x704   :  { %v4541_v29 = vpack.i.bf16 %v1781_v46, %v1779_v44  ;;  %v2468_v60 = vunpack.c.l.b16 %v2363_v37  ;;  %v2360_v46 = vpack.c.bf16 %v2344_v52, %v2344_v52  ;;  %v2359_v41 = vpack.c.bf16 %v2343_v25, %v2343_v25 }
 0x705   :  { %8181 = vst [vmem:[#allocation23_spill] sm:$0xff] %v6553_v8  ;;  %1798 = vmatmul.bf16.gmra.mxu0 %v1730_v18  ;;  %v2527_v53 = vsel %vm395_vm0, %v6553_v8, 0  ;;  %v2524_v18 = vsel %vm395_vm0, %v6558_v50, 0  ;;  %v2361_v44 = vpack.c.bf16 %v2345_v6, %v2345_v6  ;;  %v2341_v51 = vmul.f32 %v6533_v36, %v6501_v0 }
 0x706   :  { %4542 = vrot.lane.b32.xlu0 %v4541_v29, %s5295_s10  ;;  %2529 = vmatpush.bf16.xpose.msra.mxu3 %v2527_v53  ;;  %v6566_v56 = vpack.c.b16 %v2468_v60, %v2467_v21  ;;  %v2465_v16 = vunpack.c.l.b16 %v2360_v46  ;;  %v6577_v29 = vperm.slane %v6530_v30, 2  ;;  %v2340_v53 = vmul.f32 %v6533_v36, %v6499_v14 }
 0x707   :  { %v2466_v45 = vunpack.c.l.b16 %v2361_v44  ;;  %v2463_v37 = vunpack.c.l.b16 %v2358_v40  ;;  %v2464_v52 = vunpack.c.l.b16 %v2359_v41  ;;  %v2357_v46 = vpack.c.bf16 %v2341_v51, %v2341_v51 }
 0x708   :  { %8183 = vst [vmem:[#allocation25_spill] sm:$0xff] %v6566_v56  ;;  %v2521_v11 = vsel %vm395_vm0, %v6566_v56, 0  ;;  %v2383_v21 = vmul.f32 %v6577_v29, %v6535_v26  ;;  %v2384_v60 = vmul.f32 %v6577_v29, %v6543_v34  ;;  %v2339_v40 = vmul.f32 %v6533_v36, %v6496_v62 }
 0x709   :  { %v6574_v20 = vpack.c.b16 %v2466_v45, %v2465_v16  ;;  %v6589_v44 = vpack.c.b16 %v2464_v52, %v2463_v37  ;;  %v2338_v16 = vmul.f32 %v6533_v36, %v6494_v13  ;;  %v2381_v45 = vmul.f32 %v6577_v29, %v6522_v2 }
 0x70a   :  { %v2399_v24 = vpack.c.bf16 %v2383_v21, %v2383_v21  ;;  %v2400_v25 = vpack.c.bf16 %v2384_v60, %v2384_v60  ;;  %v2379_v51 = vmul.f32 %v6577_v29, %v6515_v15  ;;  %v2380_v37 = vmul.f32 %v6577_v29, %v6518_v19 }
 0x70b   :  { %8184 = vst [vmem:[#allocation26_spill] sm:$0xff] %v6574_v20  ;;  %v2518_v6 = vsel %vm395_vm0, %v6574_v20, 0  ;;  %v2397_v60 = vpack.c.bf16 %v2381_v45, %v2381_v45  ;;  %v2354_v39 = vpack.c.bf16 %v2338_v16, %v2338_v16  ;;  %v2355_v10 = vpack.c.bf16 %v2339_v40, %v2339_v40 }
 0x70c   :  { %8185 = vst [vmem:[#allocation27_spill] sm:$0xff] %v6589_v44  ;;  %v2760_v52 = vunpack.c.l.b16 %v2399_v24  ;;  %v2761_v21 = vunpack.c.l.b16 %v2400_v25  ;;  %v2377_v56 = vmul.f32 %v6577_v29, %v6509_v54  ;;  %v2336_v24 = vmul.f32 %v6533_v36, %v6477_v1 }
 0x70d   :  { %v2758_v25 = vunpack.c.l.b16 %v2397_v60  ;;  %v2337_v16 = vmul.f32 %v6533_v36, %v6487_v49  ;;  %v2460_v40 = vunpack.c.l.b16 %v2355_v10  ;;  %v6629_v60 = vperm.slane %v6530_v30, 0 }
 0x70e   :  { %2530 = vmatpush.bf16.xpose.msra.mxu3 %v2524_v18  ;;  %v2356_v18 = vpack.c.bf16 %v2340_v53, %v2340_v53  ;;  %v2515_v53 = vsel %vm395_vm0, %v6589_v44, 0  ;;  %v2378_v44 = vmul.f32 %v6577_v29, %v6511_v27  ;;  %v6611_v20 = vpack.c.b16 %v2761_v21, %v2760_v52 }
 0x70f   :  { %v2393_v52 = vpack.c.bf16 %v2377_v56, %v2377_v56  ;;  %v2353_v10 = vpack.c.bf16 %v2337_v16, %v2337_v16  ;;  %v2373_v56 = vmul.f32 %v6577_v29, %v6499_v14  ;;  %v2371_v16 = vmul.f32 %v6577_v29, %v6494_v13 }
 0x710   :  { %v2461_v41 = vunpack.c.l.b16 %v2356_v18  ;;  %v2395_v18 = vpack.c.bf16 %v2379_v51, %v2379_v51  ;;  %8186 = vst [vmem:[#allocation28_spill] sm:$0xff] %v6611_v20  ;;  %2778 = vmatpush.bf16.msrb.mxu0 %v6611_v20  ;;  %v2375_v51 = vmul.f32 %v6577_v29, %v6503_v61 }
 0x711   :  { %v2754_v34 = vunpack.c.l.b16 %v2393_v52 }
 0x716   :  { %2531 = vmatpush.bf16.xpose.msra.mxu3 %v2521_v11  ;;  %v2382_v11 = vmul.f32 %v6577_v29, %v6525_v59 }
 0x718   :  { %v2398_v8 = vpack.c.bf16 %v2382_v11, %v2382_v11  ;;  %v2459_v11 = vunpack.c.l.b16 %v2354_v39  ;;  %v2352_v39 = vpack.c.bf16 %v2336_v24, %v2336_v24 }
 0x71a   :  { %v2759_v45 = vunpack.c.l.b16 %v2398_v8  ;;  %v2394_v8 = vpack.c.bf16 %v2378_v44, %v2378_v44  ;;  %v6626_v36 = vpack.c.b16 %v2460_v40, %v2459_v11  ;;  %v2374_v44 = vmul.f32 %v6577_v29, %v6501_v0 }
 0x71b   :  { %v2457_v24 = vunpack.c.l.b16 %v2352_v39  ;;  %v2372_v11 = vmul.f32 %v6577_v29, %v6496_v62  ;;  %v2304_v40 = vmul.f32 %v6629_v60, %v6487_v49  ;;  %v2387_v39 = vpack.c.bf16 %v2371_v16, %v2371_v16 }
 0x71c   :  { %v6624_v21 = vpack.c.b16 %v2759_v45, %v2758_v25  ;;  %v2755_v26 = vunpack.c.l.b16 %v2394_v8  ;;  %v2458_v25 = vunpack.c.l.b16 %v2353_v10  ;;  %v2509_v30 = vsel %vm395_vm0, %v6626_v36, 0 }
 0x71d   :  { %v2303_v45 = vmul.f32 %v6629_v60, %v6477_v1  ;;  %v2369_v8 = vmul.f32 %v6577_v29, %v6477_v1  ;;  %v2388_v10 = vpack.c.bf16 %v2372_v11, %v2372_v11 }
 0x71e   :  { %2532 = vmatpush.bf16.xpose.msra.mxu3 %v2518_v6  ;;  %v2462_v6 = vunpack.c.l.b16 %v2357_v46  ;;  %v2396_v46 = vpack.c.bf16 %v2380_v37, %v2380_v37  ;;  %v2376_v37 = vmul.f32 %v6577_v29, %v6505_v5  ;;  %8187 = vst [vmem:[#allocation29_spill] sm:$0xff] %v6624_v21  ;;  %2779 = vmatpush.bf16.msrb.mxu0 %v6624_v21 }
 0x71f   :  { %v6651_v52 = vpack.c.b16 %v2458_v25, %v2457_v24  ;;  %v2319_v21 = vpack.c.bf16 %v2303_v45, %v2303_v45  ;;  %v2749_v24 = vunpack.c.l.b16 %v2388_v10  ;;  %v2385_v1 = vpack.c.bf16 %v2369_v8, %v2369_v8 }
 0x720   :  { %v6605_v50 = vpack.c.b16 %v2462_v6, %v2461_v41  ;;  %v2756_v6 = vunpack.c.l.b16 %v2395_v18  ;;  %v2392_v20 = vpack.c.bf16 %v2376_v37, %v2376_v37  ;;  %v2390_v37 = vpack.c.bf16 %v2374_v44, %v2374_v44 }
 0x721   :  { %v2748_v44 = vunpack.c.l.b16 %v2387_v39  ;;  %v2417_v25 = vunpack.c.l.b16 %v2319_v21  ;;  %v2306_v21 = vmul.f32 %v6629_v60, %v6496_v62  ;;  %v2307_v62 = vmul.f32 %v6629_v60, %v6499_v14 }
 0x722   :  { %v2512_v41 = vsel %vm395_vm0, %v6605_v50, 0 }
 0x726   :  { %2533 = vmatpush.bf16.xpose.msra.mxu3 %v2515_v53  ;;  %v2757_v53 = vunpack.c.l.b16 %v2396_v46  ;;  %v2391_v46 = vpack.c.bf16 %v2375_v51, %v2375_v51  ;;  %v2389_v51 = vpack.c.bf16 %v2373_v56, %v2373_v56  ;;  %v2506_v56 = vsel %vm395_vm0, %v6651_v52, 0 }
 0x728   :  { %v6632_v18 = vpack.c.b16 %v2757_v53, %v2756_v6  ;;  %v2753_v6 = vunpack.c.l.b16 %v2392_v20  ;;  %v6649_v53 = vpack.c.b16 %v2755_v26, %v2754_v34  ;;  %v2750_v26 = vunpack.c.l.b16 %v2389_v51 }
 0x729   :  { %v2751_v34 = vunpack.c.l.b16 %v2390_v37  ;;  %v2322_v37 = vpack.c.bf16 %v2306_v21, %v2306_v21 }
 0x72a   :  { %8188 = vst [vmem:[#allocation30_spill] sm:$0xff] %v6632_v18  ;;  %2780 = vmatpush.bf16.msrb.mxu0 %v6632_v18  ;;  %v2320_v18 = vpack.c.bf16 %v2304_v40, %v2304_v40 }
 0x72b   :  { %v6663_v45 = vpack.c.b16 %v2751_v34, %v2750_v26  ;;  %v2420_v39 = vunpack.c.l.b16 %v2322_v37  ;;  %v2308_v26 = vmul.f32 %v6629_v60, %v6501_v0  ;;  %v2309_v0 = vmul.f32 %v6629_v60, %v6503_v61 }
 0x72c   :  { %v2418_v16 = vunpack.c.l.b16 %v2320_v18  ;;  %v8192_v61 = vpack.i.bf16 %v6351_v42, %v6345_v12  ;;  %v8193_v12 = vpack.i.bf16 %v6364_v31, %v6362_v58  ;;  %v4606_v31 = vpack.i.bf16 %v6412_v38, %v6396_v3 }
 0x72d   :  { %8189 = vst [vmem:[#allocation31_spill] sm:$0xff] %v6663_v45  ;;  %v4621_v3 = vpack.i.bf16 %v6472_v17, %v6462_v33  ;;  %v2315_v33 = vmul.f32 %v6629_v60, %v6522_v2  ;;  %v2316_v17 = vmul.f32 %v6629_v60, %v6525_v59  ;;  %v6781_v59 = vld [vmem:[%s8130_s5 + $0x30] sm:$0xff] }
 0x72e   :  { %2534 = vmatpush.bf16.xpose.msra.mxu3 %v2512_v41  ;;  %v2752_v41 = vunpack.c.l.b16 %v2391_v46  ;;  %2781 = vmatpush.bf16.msrb.mxu0 %v6649_v53  ;;  %v2370_v46 = vmul.f32 %v6577_v29, %v6487_v49  ;;  %v6666_v49 = vpack.c.b16 %v2749_v24, %v2748_v44  ;;  %v2746_v29 = vunpack.c.l.b16 %v2385_v1 }
 0x72f   :  { %v6668_v11 = vpack.c.b16 %v2418_v16, %v2417_v25  ;;  %v2323_v44 = vpack.c.bf16 %v2307_v62, %v2307_v62  ;;  %v2324_v24 = vpack.c.bf16 %v2308_v26, %v2308_v26 }
 0x730   :  { %v6658_v20 = vpack.c.b16 %v2753_v6, %v2752_v41  ;;  %8190 = vst [vmem:[#allocation32_spill] sm:$0xff] %v6666_v49  ;;  %v2305_v41 = vmul.f32 %v6629_v60, %v6494_v13 }
 0x731   :  { %v2421_v1 = vunpack.c.l.b16 %v2323_v44  ;;  %v2422_v25 = vunpack.c.l.b16 %v2324_v24  ;;  %v6799_v24 = vld [vmem:[%s8130_s5 + $0x28] sm:$0xff] }
 0x732   :  { %2782 = vmatpush.bf16.msrb.mxu0 %v6658_v20  ;;  %v2321_v51 = vpack.c.bf16 %v2305_v41, %v2305_v41 }
 0x733   :  { %v6693_v14 = vpack.c.b16 %v2422_v25, %v2421_v1  ;;  %v8195_v1 = vld [vmem:[#allocation21_spill] sm:$0xff] }
 0x734   :  { %v2419_v8 = vunpack.c.l.b16 %v2321_v51  ;;  %v2317_v25 = vmul.f32 %v6629_v60, %v8195_v1 }
 0x736   :  { %2535 = vmatpush.bf16.xpose.msra.mxu3 %v2509_v30  ;;  %v2386_v30 = vpack.c.bf16 %v2370_v46, %v2370_v46  ;;  %2783 = vmatpush.bf16.msrb.mxu0 %v6663_v45  ;;  %v6681_v13 = vpack.c.b16 %v2420_v39, %v2419_v8  ;;  %v4576_v8 = vpack.i.bf16 %v6491_v32, %v6481_v57 }
 0x737   :  { %v4611_v32 = vpack.i.bf16 %v6437_v4, %v6421_v9  ;;  %v4616_v4 = vpack.i.bf16 %v6453_v63, %v6446_v47  ;;  %v2331_v47 = vpack.c.bf16 %v2315_v33, %v2315_v33  ;;  %v2332_v63 = vpack.c.bf16 %v2316_v17, %v2316_v17 }
 0x738   :  { %v2747_v40 = vunpack.c.l.b16 %v2386_v30 }
 0x739   :  { %v2429_v2 = vunpack.c.l.b16 %v2331_v47 }
 0x73a   :  { %2784 = vmatpush.bf16.msrb.mxu0 %v6666_v49  ;;  %v6677_v6 = vpack.c.b16 %v2747_v40, %v2746_v29  ;;  %v2310_v29 = vmul.f32 %v6629_v60, %v6505_v5 }
 0x73c   :  { %8191 = vst [vmem:[#allocation33_spill] sm:$0xff] %v6677_v6  ;;  %v2326_v41 = vpack.c.bf16 %v2310_v29, %v2310_v29 }
 0x73e   :  { %2536 = vmatpush.bf16.xpose.msra.mxu3 %v2506_v56  ;;  %2785 = vmatpush.bf16.msrb.mxu0 %v6677_v6  ;;  %v4556_v56 = vpack.i.bf16 %v6448_v48, %v6439_v28  ;;  %v4566_v28 = vpack.i.bf16 %v6469_v35, %v6459_v23  ;;  %v2325_v48 = vpack.c.bf16 %v2309_v0, %v2309_v0 }
 0x73f   :  { %v2311_v23 = vmul.f32 %v6629_v60, %v6509_v54  ;;  %v2312_v35 = vmul.f32 %v6629_v60, %v6511_v27  ;;  %v4586_v27 = vpack.i.bf16 %v6336_v7, %v6329_v43  ;;  %v2313_v43 = vmul.f32 %v6629_v60, %v6515_v15 }
 0x740   :  { %v2423_v21 = vunpack.c.l.b16 %v2325_v48  ;;  %v2314_v7 = vmul.f32 %v6629_v60, %v6518_v19  ;;  %v6775_v19 = vld [vmem:[%s8130_s5 + $0x38] sm:$0xff]  ;;  %v2333_v0 = vpack.c.bf16 %v2317_v25, %v2317_v25 }
 0x741   :  { %v2327_v42 = vpack.c.bf16 %v2311_v23, %v2311_v23  ;;  %v2328_v39 = vpack.c.bf16 %v2312_v35, %v2312_v35  ;;  %v2329_v62 = vpack.c.bf16 %v2313_v43, %v2313_v43  ;;  %2102 = vmatpush.bf16.msra.mxu2 %v6775_v19  ;;  %v6853_v23 = vld [vmem:[%s8130_s5] sm:$0xff]  ;;  %v8201_v43 = vld [vmem:[#allocation6_spill] sm:$0xff] }
 0x742   :  { %v2330_v26 = vpack.c.bf16 %v2314_v7, %v2314_v7  ;;  %v2431_v48 = vunpack.c.l.b16 %v2333_v0  ;;  %v8204_v0 = vld [vmem:[#allocation8_spill] sm:$0xff] }
 0x743   :  { %v2426_v54 = vunpack.c.l.b16 %v2328_v39  ;;  %v2427_v38 = vunpack.c.l.b16 %v2329_v62  ;;  %v4513_v39 = vpop.permute.xlu0 %4512 }
 0x744   :  { %v2428_v9 = vunpack.c.l.b16 %v2330_v26  ;;  %v4515_v62 = vunpack.i.h.bf16 %v4513_v39  ;;  %v4514_v26 = vunpack.i.l.bf16 %v4513_v39 }
 0x745   :  { %v1784_v18 = vpop.f32.mrf.mxu0  ;;  %4356 = vmatmul.msk.bf16.vlgmr.msra.gmra.mxu3 %vm395_vm0, %v6668_v11  ;;  %2103 = vmatpush.bf16.msra.mxu2 %v6781_v59 }
 0x746   :  { %v6754_v15 = vpack.c.b16 %v2428_v9, %v2427_v38 }
 0x749   :  { %2104 = vmatpush.bf16.msra.mxu2 %v6799_v24 }
 0x74d   :  { %v1786_v10 = vpop.f32.mrf.mxu0 }
 0x74e   :  { %v4551_v46 = vpack.i.bf16 %v1786_v10, %v1784_v18  ;;  %v2424_v18 = vunpack.c.l.b16 %v2326_v41  ;;  %v2425_v10 = vunpack.c.l.b16 %v2327_v42 }
 0x750   :  { %4552 = vrot.lane.b32.xlu0 %v4551_v46, %s5295_s10  ;;  %v6709_v5 = vpack.c.b16 %v2424_v18, %v2423_v21  ;;  %v8194_v46 = vpack.i.bf16 %v6383_v22, %v6376_v55  ;;  %v6731_v57 = vpack.c.b16 %v2426_v54, %v2425_v10  ;;  %v6829_v21 = vld [vmem:[%s8130_s5 + $0x10] sm:$0xff]  ;;  %v4523_v10 = vpop.permute.xlu0 %4522 }
 0x751   :  { %v8198_v18 = vld [vmem:[#allocation27_spill] sm:$0xff] }
 0x755   :  { %v1789_v34 = vpop.f32.mrf.mxu0  ;;  %4357 = vmatmul.msk.bf16.gmra.mxu3 %vm395_vm0, %v6681_v13 }
 0x758   :  { %4557 = vrot.lane.b32.xlu0 %v4556_v56, %s5296_s11  ;;  %v6783_v56 = vpop.permute.xlu2 %4517 }
 0x759   :  { %v4519_v1 = vunpack.i.l.bf16 %v6783_v56 }
 0x75d   :  { %v1791_v30 = vpop.f32.mrf.mxu0 }
 0x75e   :  { %v4561_v16 = vpack.i.bf16 %v1791_v30, %v1789_v34  ;;  %v2430_v34 = vunpack.c.l.b16 %v2332_v63  ;;  %v8196_v30 = vld [vmem:[#allocation22_spill] sm:$0xff] }
 0x760   :  { %4562 = vrot.lane.b32.xlu1 %v4561_v16, %s5295_s10  ;;  %v6787_v44 = vpack.c.b16 %v2430_v34, %v2429_v2  ;;  %v2318_v16 = vmul.f32 %v6629_v60, %v8196_v30  ;;  %v8197_v60 = vld [vmem:[#allocation26_spill] sm:$0xff]  ;;  %v4520_v34 = vunpack.i.h.bf16 %v6783_v56 }
 0x762   :  { %v2334_v29 = vpack.c.bf16 %v2318_v16, %v2318_v16 }
 0x764   :  { %v2432_v41 = vunpack.c.l.b16 %v2334_v29  ;;  %v1999_v29 = vsel %vm395_vm0, %v8204_v0, %v4520_v34 }
 0x765   :  { %v1794_v40 = vpop.f32.mrf.mxu0  ;;  %4358 = vmatmul.msk.bf16.gmra.mxu3 %vm395_vm0, %v6693_v14 }
 0x768   :  { %4567 = vrot.lane.b32.xlu1 %v4566_v28, %s5296_s11  ;;  %v6823_v28 = vld [vmem:[%s8130_s5 + $0x18] sm:$0xff] }
 0x76d   :  { %v1796_v51 = vpop.f32.mrf.mxu0 }
 0x76e   :  { %v4571_v37 = vpack.i.bf16 %v1796_v51, %v1794_v40  ;;  %v6813_v40 = vpop.permute.xlu2 %4527  ;;  %v6833_v51 = vpack.c.b16 %v2432_v41, %v2431_v48  ;;  %v8206_v41 = vld [vmem:[#allocation23_spill] sm:$0xff] }
 0x770   :  { %4592 = vrot.lane.b32.xlu1 %v8192_v61, %s5294_s9  ;;  %4572 = vrot.lane.b32.xlu2 %v4571_v37, %s5295_s10  ;;  %v6847_v61 = vld [vmem:[%s8130_s5 + $0x8] sm:$0xff] }
 0x775   :  { %4359 = vmatmul.msk.bf16.gmra.mxu3 %vm395_vm0, %v6709_v5 }
 0x776   :  { %v6838_v37 = vpop.permute.xlu2 %4537 }
 0x778   :  { %4597 = vrot.lane.b32.xlu1 %v8193_v12, %s5294_s9  ;;  %4577 = vrot.lane.b32.xlu2 %v4576_v8, %s5296_s11  ;;  %v8199_v8 = vld [vmem:[#allocation25_spill] sm:$0xff]  ;;  %v4508_v12 = vpop.permute.xlu1 %4507 }
 0x779   :  { %v4510_v54 = vunpack.i.h.bf16 %v4508_v12 }
 0x77b   :  { %v1997_v7 = vsel %vm395_vm0, %v8201_v43, %v4510_v54 }
 0x77e   :  { %v6862_v35 = vpop.permute.xlu2 %4547 }
 0x780   :  { %4602 = vrot.lane.b32.xlu1 %v8194_v46, %s5294_s9  ;;  %4587 = vrot.lane.b32.xlu2 %v4586_v27, %s5294_s9  ;;  %v4509_v27 = vunpack.i.l.bf16 %v4508_v12  ;;  %v8200_v46 = vld [vmem:[#allocation24_spill] sm:$0xff]  ;;  %v4524_v12 = vunpack.i.l.bf16 %v4523_v10 }
 0x782   :  { %v1799_v58 = vpop.f32.mrf.mxu0 }
 0x785   :  { %4360 = vmatmul.msk.bf16.gmra.mxu3 %vm395_vm0, %v6731_v57 }
 0x788   :  { %4607 = vrot.lane.b32.xlu1 %v4606_v31, %s5294_s9  ;;  %4612 = vrot.lane.b32.xlu2 %v4611_v32, %s5294_s9 }
 0x78a   :  { %v1801_v55 = vpop.f32.mrf.mxu0 }
 0x78b   :  { %v4581_v22 = vpack.i.bf16 %v1801_v55, %v1799_v58  ;;  %v8202_v55 = vld [vmem:[#allocation5_spill] sm:$0xff] }
 0x78d   :  { %4582 = vrot.lane.b32.xlu0 %v4581_v22, %s5295_s10  ;;  %v1996_v22 = vsel %vm395_vm0, %v8202_v55, %v4509_v27  ;;  %v4529_v55 = vunpack.i.l.bf16 %v6813_v40 }
 0x790   :  { %4622 = vrot.lane.b32.xlu1 %v4621_v3, %s5294_s9  ;;  %3197 = vrot.lane.b32.xlu2 %v6651_v52, %s5294_s9  ;;  %v4533_v3 = vpop.permute.xlu0 %4532 }
 0x791   :  { %v4535_v34 = vunpack.i.h.bf16 %v4533_v3 }
 0x795   :  { %4617 = vrot.lane.b32.xlu0 %v4616_v4, %s5294_s9  ;;  %4361 = vmatmul.msk.bf16.gmra.mxu3 %vm395_vm0, %v6754_v15 }
 0x798   :  { %2843 = vrot.lane.b32.xlu1 %v6651_v52, %s5295_s10  ;;  %3181 = vrot.lane.b32.xlu2 %v6668_v11, %s5294_s9  ;;  %v6910_v25 = vpop.permute.xlu0 %4542 }
 0x79d   :  { %2827 = vrot.lane.b32.xlu0 %v6668_v11, %s5295_s10 }
 0x7a0   :  { %3199 = vrot.lane.b32.xlu1 %v6626_v36, %s5294_s9  ;;  %2845 = vrot.lane.b32.xlu2 %v6626_v36, %s5295_s10 }
 0x7a5   :  { %2847 = vrot.lane.b32.xlu0 %v6605_v50, %s5295_s10  ;;  %4362 = vmatmul.msk.bf16.gmra.mxu3 %vm395_vm0, %v6787_v44 }
 0x7a8   :  { %3553 = vrot.lane.b32.xlu1 %v6626_v36, %s5296_s11  ;;  %2829 = vrot.lane.b32.xlu2 %v6681_v13, %s5295_s10  ;;  %v6809_v36 = vld [vmem:[%s8130_s5 + $0x20] sm:$0xff] }
 0x7a9   :  { %2105 = vmatpush.bf16.msra.mxu2 %v6809_v36 }
 0x7ad   :  { %2833 = vrot.lane.b32.xlu0 %v6709_v5, %s5295_s10  ;;  %2106 = vmatpush.bf16.msra.mxu2 %v6823_v28 }
 0x7b0   :  { %2831 = vrot.lane.b32.xlu1 %v6693_v14, %s5295_s10  ;;  %2851 = vrot.lane.b32.xlu2 %v8197_v60, %s5295_s10 }
 0x7b1   :  { %2107 = vmatpush.bf16.msra.mxu2 %v6829_v21 }
 0x7b5   :  { %3203 = vrot.lane.b32.xlu0 %v8198_v18, %s5294_s9  ;;  %4363 = vmatmul.msk.bf16.gmra.mxu3 %vm395_vm0, %v6833_v51 }
 0x7b6   :  { %2108 = vmatpush.bf16.msra.mxu2 %v6847_v61 }
 0x7b8   :  { %3201 = vrot.lane.b32.xlu1 %v6605_v50, %s5294_s9  ;;  %3183 = vrot.lane.b32.xlu2 %v6681_v13, %s5294_s9 }
 0x7ba   :  { %2109 = vmatpush.bf16.msra.mxu2 %v6853_v23 }
 0x7bd   :  { %3557 = vrot.lane.b32.xlu0 %v8198_v18, %s5296_s11 }
 0x7c0   :  { %3555 = vrot.lane.b32.xlu1 %v6605_v50, %s5296_s11  ;;  %3537 = vrot.lane.b32.xlu2 %v6681_v13, %s5296_s11 }
 0x7c5   :  { %2835 = vrot.lane.b32.xlu0 %v6731_v57, %s5295_s10 }
 0x7c8   :  { %2849 = vrot.lane.b32.xlu1 %v8198_v18, %s5295_s10  ;;  %3207 = vrot.lane.b32.xlu2 %v8199_v8, %s5294_s9  ;;  %v6906_v2 = vpop.f32.mrf.mxu3 }
 0x7c9   :  { %8203 = vst [vmem:[#allocation21_spill] sm:$0xff] %v6906_v2 }
 0x7ca   :  { %v6870_v42 = vpop.permute.xlu2 %4572 }
 0x7cd   :  { %3205 = vrot.lane.b32.xlu0 %v8197_v60, %s5294_s9 }
 0x7d0   :  { %3535 = vrot.lane.b32.xlu1 %v6668_v11, %s5296_s11  ;;  %3561 = vrot.lane.b32.xlu2 %v8199_v8, %s5296_s11 }
 0x7d2   :  { %v6878_v50 = vpop.permute.xlu1 %4562  ;;  %v6880_v13 = vpop.permute.xlu2 %4577 }
 0x7d5   :  { %3559 = vrot.lane.b32.xlu0 %v8197_v60, %s5296_s11  ;;  %v8205_v60 = vld [vmem:[#allocation7_spill] sm:$0xff] }
 0x7d6   :  { %v1998_v48 = vsel %vm395_vm0, %v8205_v60, %v4519_v1  ;;  %v4534_v1 = vunpack.i.l.bf16 %v4533_v3 }
 0x7d8   :  { %2837 = vrot.lane.b32.xlu1 %v6754_v15, %s5295_s10  ;;  %3563 = vrot.lane.b32.xlu2 %v8200_v46, %s5296_s11 }
 0x7da   :  { %v6888_v11 = vpop.permute.xlu1 %4567  ;;  %v4588_v58 = vpop.permute.xlu2 %4587 }
 0x7db   :  { %v4590_v31 = vunpack.i.h.bf16 %v4588_v58  ;;  %v4589_v32 = vunpack.i.l.bf16 %v4588_v58  ;;  %v6928_v58 = vpop.permute.xlu0 %4552 }
 0x7dd   :  { %v2014_v38 = vsel %vm2012_vm1, %v1997_v7, %v4590_v31  ;;  %v2013_v9 = vsel %vm2012_vm1, %v1996_v22, %v4589_v32  ;;  %2853 = vrot.lane.b32.xlu0 %v8199_v8, %s5295_s10  ;;  %v4525_v8 = vunpack.i.h.bf16 %v4523_v10  ;;  %v6930_v31 = vpop.f32.mrf.mxu3  ;;  %v4530_v7 = vunpack.i.h.bf16 %v6813_v40  ;;  %v8209_v40 = vld [vmem:[#allocation30_spill] sm:$0xff] }
 0x7de   :  { %v2031_v4 = vsel %vm2029_vm2, %v2014_v38, %v4515_v62  ;;  %v2030_v33 = vsel %vm2029_vm2, %v2013_v9, %v4514_v26  ;;  %v8207_v9 = vld [vmem:[#allocation10_spill] sm:$0xff] }
 0x7df   :  { %v2046_v17 = vpack.c.bf16 %v2031_v4, %v2030_v33  ;;  %v2001_v4 = vsel %vm395_vm0, %v8207_v9, %v4530_v7  ;;  %v8208_v33 = vld [vmem:[#allocation9_spill] sm:$0xff] }
 0x7e0   :  { %2855 = vrot.lane.b32.xlu1 %v8200_v46, %s5295_s10  ;;  %2839 = vrot.lane.b32.xlu2 %v6787_v44, %s5295_s10 }
 0x7e1   :  { %2110 = vmatmul.bf16.vlgmr.msra.gmra.mxu2 %v2046_v17  ;;  %v2000_v17 = vsel %vm395_vm0, %v8208_v33, %v4529_v55  ;;  %v8213_v55 = vld [vmem:[#allocation29_spill] sm:$0xff] }
 0x7e2   :  { %v4593_v47 = vpop.permute.xlu1 %4592  ;;  %v6904_v63 = vpop.permute.xlu2 %4612 }
 0x7e3   :  { %v4595_v30 = vunpack.i.h.bf16 %v4593_v47  ;;  %v4594_v16 = vunpack.i.l.bf16 %v4593_v47  ;;  %v6944_v26 = vpop.permute.xlu0 %4557 }
 0x7e5   :  { %3551 = vrot.lane.b32.xlu0 %v6651_v52, %s5296_s11  ;;  %v2015_v56 = vsel %vm2012_vm1, %v1998_v48, %v4594_v16  ;;  %v2016_v18 = vsel %vm2012_vm1, %v1999_v29, %v4595_v30  ;;  %v6946_v38 = vpop.f32.mrf.mxu3 }
 0x7e6   :  { %v2032_v54 = vsel %vm2029_vm2, %v2015_v56, %v4524_v12  ;;  %v2033_v27 = vsel %vm2029_vm2, %v2016_v18, %v4525_v8  ;;  %v4540_v18 = vunpack.i.h.bf16 %v6838_v37 }
 0x7e7   :  { %v2047_v32 = vpack.c.bf16 %v2033_v27, %v2032_v54  ;;  %v8211_v54 = vld [vmem:[#allocation12_spill] sm:$0xff] }
 0x7e8   :  { %3187 = vrot.lane.b32.xlu1 %v6709_v5, %s5294_s9  ;;  %2857 = vrot.lane.b32.xlu2 %v8206_v41, %s5295_s10  ;;  %v2003_v27 = vsel %vm395_vm0, %v8211_v54, %v4540_v18 }
 0x7ea   :  { %v4598_v39 = vpop.permute.xlu1 %4597  ;;  %v6924_v52 = vpop.permute.xlu2 %3197 }
 0x7eb   :  { %v4600_v22 = vunpack.i.h.bf16 %v4598_v39  ;;  %v4599_v62 = vunpack.i.l.bf16 %v4598_v39 }
 0x7ed   :  { %3185 = vrot.lane.b32.xlu0 %v6693_v14, %s5294_s9  ;;  %v2017_v47 = vsel %vm2012_vm1, %v2000_v17, %v4599_v62  ;;  %v6970_v3 = vpop.f32.mrf.mxu3 }
 0x7ee   :  { %v2034_v0 = vsel %vm2029_vm2, %v2017_v47, %v4534_v1  ;;  %8210 = vst [vmem:[#allocation22_spill] sm:$0xff] %v6970_v3  ;;  %v4550_v1 = vunpack.i.h.bf16 %v6862_v35 }
 0x7f0   :  { %3191 = vrot.lane.b32.xlu1 %v6754_v15, %s5294_s9  ;;  %3543 = vrot.lane.b32.xlu2 %v6731_v57, %s5296_s11 }
 0x7f1   :  { %2115 = vmatmul.bf16.gmra.mxu2 %v2047_v32  ;;  %v8212_v32 = vld [vmem:[#allocation11_spill] sm:$0xff] }
 0x7f2   :  { %v4603_v10 = vpop.permute.xlu1 %4602  ;;  %v6938_v43 = vpop.permute.xlu2 %3181 }
 0x7f3   :  { %v4605_v8 = vunpack.i.h.bf16 %v4603_v10  ;;  %v4604_v12 = vunpack.i.l.bf16 %v4603_v10 }
 0x7f5   :  { %3539 = vrot.lane.b32.xlu0 %v6693_v14, %s5296_s11  ;;  %v2018_v14 = vsel %vm2012_vm1, %v2001_v4, %v4600_v22  ;;  %v2020_v10 = vsel %vm2012_vm1, %v2003_v27, %v4605_v8  ;;  %v4544_v22 = vunpack.i.l.bf16 %v6910_v25  ;;  %v6998_v4 = vpop.f32.mrf.mxu3  ;;  %v4554_v27 = vunpack.i.l.bf16 %v6928_v58 }
 0x7f6   :  { %v2035_v29 = vsel %vm2029_vm2, %v2018_v14, %v4535_v34 }
 0x7f7   :  { %v2048_v60 = vpack.c.bf16 %v2035_v29, %v2034_v0  ;;  %v4549_v0 = vunpack.i.l.bf16 %v6862_v35 }
 0x7f8   :  { %3209 = vrot.lane.b32.xlu1 %v8200_v46, %s5294_s9  ;;  %3118 = vrot.lane.b32.xlu2 %v8209_v40, %s5295_s10 }
 0x7fa   :  { %v4608_v30 = vpop.permute.xlu1 %4607  ;;  %v6958_v16 = vpop.permute.xlu2 %2845 }
 0x7fb   :  { %v4610_v29 = vunpack.i.h.bf16 %v4608_v30 }
 0x7fd   :  { %3189 = vrot.lane.b32.xlu0 %v6731_v57, %s5294_s9  ;;  %v4539_v57 = vunpack.i.l.bf16 %v6838_v37 }
 0x7ff   :  { %v6964_v46 = vpop.permute.xlu0 %4582  ;;  %v2002_v7 = vsel %vm395_vm0, %v8212_v32, %v4539_v57  ;;  %v8215_v57 = vld [vmem:[#allocation14_spill] sm:$0xff] }
 0x800   :  { %3547 = vrot.lane.b32.xlu1 %v6787_v44, %s5296_s11  ;;  %3110 = vrot.lane.b32.xlu2 %v6666_v49, %s5295_s10  ;;  %v2019_v37 = vsel %vm2012_vm1, %v2002_v7, %v4604_v12  ;;  %v2005_v8 = vsel %vm395_vm0, %v8215_v57, %v4550_v1  ;;  %v8216_v12 = vld [vmem:[#allocation13_spill] sm:$0xff]  ;;  %v4559_v1 = vunpack.i.l.bf16 %v6944_v26  ;;  %v8218_v57 = vld [vmem:[#allocation16_spill] sm:$0xff] }
 0x801   :  { %2120 = vmatmul.bf16.gmra.mxu2 %v2048_v60  ;;  %v2036_v33 = vsel %vm2029_vm2, %v2019_v37, %v4544_v22  ;;  %v7016_v60 = vpop.f32.mrf.mxu3  ;;  %v2004_v54 = vsel %vm395_vm0, %v8216_v12, %v4549_v0  ;;  %v4615_v0 = vunpack.i.h.bf16 %v6904_v63 }
 0x802   :  { %v6972_v48 = vpop.permute.xlu1 %4622  ;;  %v6974_v56 = vpop.permute.xlu2 %2829  ;;  %8214 = vst [vmem:[#allocation26_spill] sm:$0xff] %v7016_v60 }
 0x805   :  { %3541 = vrot.lane.b32.xlu0 %v6709_v5, %s5296_s11  ;;  %v4545_v5 = vunpack.i.h.bf16 %v6910_v25 }
 0x807   :  { %v6980_v39 = vpop.permute.xlu0 %4617  ;;  %v2037_v17 = vsel %vm2029_vm2, %v2020_v10, %v4545_v5 }
 0x808   :  { %3120 = vrot.lane.b32.xlu1 %v8213_v55, %s5295_s10  ;;  %3474 = vrot.lane.b32.xlu2 %v8213_v55, %s5294_s9  ;;  %v2049_v14 = vpack.c.bf16 %v2037_v17, %v2036_v33 }
 0x809   :  { %v7042_v5 = vpop.f32.mrf.mxu3 }
 0x80a   :  { %v6994_v62 = vpop.permute.xlu1 %2843  ;;  %v6996_v9 = vpop.permute.xlu2 %2851 }
 0x80d   :  { %3193 = vrot.lane.b32.xlu0 %v6787_v44, %s5294_s9  ;;  %v4609_v44 = vunpack.i.l.bf16 %v4608_v30  ;;  %v2022_v30 = vsel %vm2012_vm1, %v2005_v8, %v4610_v29  ;;  %v4614_v29 = vunpack.i.l.bf16 %v6904_v63  ;;  %v8219_v8 = vld [vmem:[#allocation15_spill] sm:$0xff] }
 0x80e   :  { %v2006_v12 = vsel %vm395_vm0, %v8219_v8, %v4559_v1  ;;  %v4619_v8 = vunpack.i.l.bf16 %v6980_v39 }
 0x80f   :  { %v7004_v47 = vpop.permute.xlu0 %2827  ;;  %v2021_v35 = vsel %vm2012_vm1, %v2004_v54, %v4609_v44  ;;  %v2023_v63 = vsel %vm2012_vm1, %v2006_v12, %v4614_v29  ;;  %v4570_v29 = vunpack.i.h.bf16 %v6888_v11  ;;  %v8220_v12 = vld [vmem:[#allocation18_spill] sm:$0xff] }
 0x810   :  { %3114 = vrot.lane.b32.xlu1 %v6658_v20, %s5295_s10  ;;  %3470 = vrot.lane.b32.xlu2 %v6649_v53, %s5294_s9  ;;  %v2038_v37 = vsel %vm2029_vm2, %v2021_v35, %v4554_v27  ;;  %v4565_v35 = vunpack.i.h.bf16 %v6878_v50 }
 0x811   :  { %2125 = vmatmul.bf16.gmra.mxu2 %v2049_v14  ;;  %v4560_v14 = vunpack.i.h.bf16 %v6944_v26  ;;  %v7070_v26 = vpop.f32.mrf.mxu3 }
 0x812   :  { %v7010_v25 = vpop.permute.xlu1 %3199  ;;  %v7012_v34 = vpop.permute.xlu2 %3183 }
 0x815   :  { %3545 = vrot.lane.b32.xlu0 %v6754_v15, %s5296_s11  ;;  %v4555_v15 = vunpack.i.h.bf16 %v6928_v58 }
 0x817   :  { %v7020_v18 = vpop.permute.xlu0 %2847  ;;  %v2039_v10 = vsel %vm2029_vm2, %v2022_v30, %v4555_v15  ;;  %v4564_v30 = vunpack.i.l.bf16 %v6878_v50 }
 0x818   :  { %3108 = vrot.lane.b32.xlu1 %v6677_v6, %s5295_s10  ;;  %3466 = vrot.lane.b32.xlu2 %v6663_v45, %s5294_s9  ;;  %v2050_v33 = vpack.c.bf16 %v2039_v10, %v2038_v37 }
 0x819   :  { %v2040_v37 = vsel %vm2029_vm2, %v2023_v63, %v4564_v30  ;;  %v2009_v63 = vsel %vm395_vm0, %v8220_v12, %v4570_v29 }
 0x81a   :  { %v7034_v32 = vpop.permute.xlu1 %3553  ;;  %v7036_v7 = vpop.permute.xlu2 %3537 }
 0x81b   :  { %8217 = vst [vmem:[#allocation27_spill] sm:$0xff] %v7036_v7 }
 0x81d   :  { %3116 = vrot.lane.b32.xlu0 %v6649_v53, %s5295_s10 }
 0x81f   :  { %v7044_v22 = vpop.permute.xlu0 %2833 }
 0x820   :  { %3472 = vrot.lane.b32.xlu1 %v8209_v40, %s5294_s9  ;;  %3828 = vrot.lane.b32.xlu2 %v8213_v55, %s5296_s11  ;;  %v2007_v55 = vsel %vm395_vm0, %v8218_v57, %v4560_v14  ;;  %v4569_v57 = vunpack.i.l.bf16 %v6888_v11 }
 0x821   :  { %2130 = vmatmul.bf16.gmra.mxu2 %v2050_v33  ;;  %v2024_v54 = vsel %vm2012_vm1, %v2007_v55, %v4615_v0  ;;  %v7094_v0 = vpop.f32.mrf.mxu3  ;;  %v4620_v55 = vunpack.i.h.bf16 %v6980_v39  ;;  %v4575_v39 = vunpack.i.h.bf16 %v6870_v42 }
 0x822   :  { %v7050_v58 = vpop.permute.xlu1 %2831  ;;  %v7052_v17 = vpop.permute.xlu2 %3207  ;;  %v2041_v10 = vsel %vm2029_vm2, %v2024_v54, %v4565_v35  ;;  %v8221_v54 = vld [vmem:[#allocation17_spill] sm:$0xff] }
 0x823   :  { %v2051_v14 = vpack.c.bf16 %v2041_v10, %v2040_v37  ;;  %v2008_v35 = vsel %vm395_vm0, %v8221_v54, %v4569_v57  ;;  %v2026_v30 = vsel %vm2012_vm1, %v2009_v63, %v4620_v55  ;;  %v4574_v37 = vunpack.i.l.bf16 %v6870_v42 }
 0x824   :  { %v2025_v11 = vsel %vm2012_vm1, %v2008_v35, %v4619_v8  ;;  %v2043_v12 = vsel %vm2029_vm2, %v2026_v30, %v4575_v39  ;;  %v4580_v54 = vunpack.i.h.bf16 %v6880_v13  ;;  %v4579_v35 = vunpack.i.l.bf16 %v6880_v13  ;;  %v8226_v13 = vld [vmem:[#allocation28_spill] sm:$0xff] }
 0x825   :  { %3112 = vrot.lane.b32.xlu0 %v6663_v45, %s5295_s10  ;;  %v2042_v29 = vsel %vm2029_vm2, %v2025_v11, %v4574_v37  ;;  %v4625_v11 = vunpack.i.h.bf16 %v6972_v48  ;;  %v8224_v37 = vld [vmem:[#allocation20_spill] sm:$0xff]  ;;  %v4584_v45 = vunpack.i.l.bf16 %v6964_v46 }
 0x826   :  { %v2052_v55 = vpack.c.bf16 %v2043_v12, %v2042_v29  ;;  %v2011_v29 = vsel %vm395_vm0, %v8224_v37, %v4580_v54  ;;  %v8225_v12 = vld [vmem:[#allocation19_spill] sm:$0xff] }
 0x827   :  { %v7060_v44 = vpop.permute.xlu0 %3203 }
 0x828   :  { %3464 = vrot.lane.b32.xlu1 %v6666_v49, %s5294_s9  ;;  %3211 = vrot.lane.b32.xlu2 %v8206_v41, %s5294_s9 }
 0x829   :  { %v7120_v57 = vpop.f32.mrf.mxu3 }
 0x82a   :  { %v7076_v15 = vpop.permute.xlu1 %3201  ;;  %v7078_v27 = vpop.permute.xlu2 %3561  ;;  %8222 = vst [vmem:[#allocation25_spill] sm:$0xff] %v7120_v57 }
 0x82d   :  { %3468 = vrot.lane.b32.xlu0 %v6658_v20, %s5294_s9 }
 0x82f   :  { %v7084_v33 = vpop.permute.xlu0 %3557 }
 0x830   :  { %3824 = vrot.lane.b32.xlu1 %v6649_v53, %s5296_s11  ;;  %3195 = vrot.lane.b32.xlu2 %v6833_v51, %s5294_s9 }
 0x831   :  { %2135 = vmatmul.bf16.gmra.mxu2 %v2051_v14  ;;  %v7135_v30 = vpop.f32.mrf.mxu3 }
 0x832   :  { %v7090_v50 = vpop.permute.xlu1 %3555  ;;  %v7092_v1 = vpop.permute.xlu2 %3563  ;;  %8223 = vst [vmem:[#allocation24_spill] sm:$0xff] %v7135_v30 }
 0x835   :  { %3462 = vrot.lane.b32.xlu0 %v6677_v6, %s5294_s9 }
 0x837   :  { %v7102_v53 = vpop.permute.xlu0 %2835 }
 0x838   :  { %3565 = vrot.lane.b32.xlu1 %v8206_v41, %s5296_s11 }
 0x83a   :  { %v7114_v10 = vpop.permute.xlu1 %2849  ;;  %v7116_v14 = vpop.permute.xlu2 %2839 }
 0x83d   :  { %3826 = vrot.lane.b32.xlu0 %v8209_v40, %s5296_s11  ;;  %v4624_v40 = vunpack.i.l.bf16 %v6972_v48  ;;  %v2028_v48 = vsel %vm2012_vm1, %v2011_v29, %v4625_v11 }
 0x83f   :  { %v7124_v41 = vpop.permute.xlu0 %3205 }
 0x840   :  { %3549 = vrot.lane.b32.xlu1 %v6833_v51, %s5296_s11 }
 0x841   :  { %2140 = vmatmul.bf16.gmra.mxu2 %v2052_v55  ;;  %v2010_v55 = vsel %vm395_vm0, %v8225_v12, %v4579_v35  ;;  %v7159_v35 = vpop.f32.mrf.mxu3 }
 0x842   :  { %v7128_v42 = vpop.permute.xlu1 %3535  ;;  %v2858_v8 = vpop.permute.xlu2 %2857 }
 0x843   :  { %v2905_v63 = vsel %vm395_vm0, %v2858_v8, 0  ;;  %v2027_v8 = vsel %vm2012_vm1, %v2010_v55, %v4624_v40 }
 0x844   :  { %2907 = vmatpush.bf16.xpose.msrb.mxu2 %v2905_v63  ;;  %v4585_v63 = vunpack.i.h.bf16 %v6964_v46  ;;  %v2044_v54 = vsel %vm2029_vm2, %v2027_v8, %v4584_v45 }
 0x845   :  { %3822 = vrot.lane.b32.xlu0 %v6658_v20, %s5296_s11 }
 0x846   :  { %v2045_v37 = vsel %vm2029_vm2, %v2028_v48, %v4585_v63 }
 0x847   :  { %v7139_v39 = vpop.permute.xlu0 %3559  ;;  %v2053_v12 = vpack.c.bf16 %v2045_v37, %v2044_v54  ;;  %v7184_v54 = vld [vmem:[%s8128_s3] ss:$0 sm:$0xff] }
 0x848   :  { %3830 = vrot.lane.b32.xlu1 %v8226_v13, %s5296_s11 }
 0x849   :  { %v7168_v55 = vpop.f32.mrf.mxu3 }
 0x84a   :  { %v7151_v20 = vpop.permute.xlu1 %2837  ;;  %v7153_v49 = vpop.permute.xlu2 %3543  ;;  %8228 = vst [vmem:[#allocation5_spill] sm:$0xff] %v7168_v55 }
 0x84b   :  { %8227 = vst [vmem:[#allocation6_spill] sm:$0xff] %v7153_v49 }
 0x84d   :  { %2841 = vrot.lane.b32.xlu0 %v6833_v51, %s5295_s10 }
 0x84f   :  { %v2854_v40 = vpop.permute.xlu0 %2853 }
 0x850   :  { %v2899_v48 = vsel %vm395_vm0, %v2854_v40, 0  ;;  %v2896_v40 = vsel %vm395_vm0, %v6996_v9, 0 }
 0x851   :  { %2145 = vmatmul.bf16.gmra.mxu2 %v2053_v12 }
 0x852   :  { %v2856_v11 = vpop.permute.xlu1 %2855  ;;  %v7161_v29 = vpop.permute.xlu2 %3118 }
 0x853   :  { %v2902_v46 = vsel %vm395_vm0, %v2856_v11, 0  ;;  %v7192_v11 = vpop.f32.mrf.mxu3 }
 0x854   :  { %2908 = vmatpush.bf16.xpose.msrb.mxu2 %v2902_v46 }
 0x855   :  { %3122 = vrot.lane.b32.xlu0 %v8226_v13, %s5295_s10 }
 0x857   :  { %v7166_v45 = vpop.permute.xlu0 %3551 }
 0x859   :  { %2578 = vmax.xlane.f32.xlu2 %v6906_v2 }
 0x85a   :  { %v7171_v51 = vpop.permute.xlu1 %3187  ;;  %v7173_v8 = vpop.permute.xlu2 %3110 }
 0x85c   :  { %2909 = vmatpush.bf16.xpose.msrb.mxu2 %v2899_v48 }
 0x85d   :  { %3476 = vrot.lane.b32.xlu0 %v8226_v13, %s5294_s9 }
 0x85f   :  { %v7178_v63 = vpop.permute.xlu0 %3185 }
 0x861   :  { %2584 = vmax.xlane.f32.xlu2 %v6970_v3  ;;  %v2893_v3 = vsel %vm395_vm0, %v7114_v10, 0  ;;  %v2890_v10 = vsel %vm395_vm0, %v7020_v18, 0  ;;  %v2887_v18 = vsel %vm395_vm0, %v6958_v16, 0 }
 0x862   :  { %v7186_v37 = vpop.permute.xlu1 %3191  ;;  %v7188_v12 = vpop.permute.xlu2 %3474 }
 0x863   :  { %8229 = vst [vmem:[#allocation8_spill] sm:$0xff] %v7186_v37  ;;  %v7203_v37 = vpop.f32.mrf.mxu3 }
 0x864   :  { %v2111_v46 = vpop.f32.mrf.mxu2  ;;  %2910 = vmatpush.bf16.xpose.msrb.mxu2 %v2896_v40  ;;  %8231 = vst [vmem:[#allocation23_spill] sm:$0xff] %v7203_v37 }
 0x865   :  { %v2155_v13 = vmul.f32 %v7184_v54, %v2111_v46 }
 0x867   :  { %2171 = vst [vmem:[#allocation2] sm:$0xff] %v2155_v13  ;;  %v7195_v48 = vpop.permute.xlu0 %3539 }
 0x868   :  { %8230 = vst [vmem:[#allocation7_spill] sm:$0xff] %v7195_v48 }
 0x869   :  { %2596 = vmax.xlane.f32.xlu2 %v7120_v57 }
 0x86a   :  { %v3210_v6 = vpop.permute.xlu1 %3209  ;;  %v7198_v49 = vpop.permute.xlu2 %3470 }
 0x86c   :  { %v2113_v7 = vpop.f32.mrf.mxu2  ;;  %2911 = vmatpush.bf16.xpose.msrb.mxu2 %v2893_v3 }
 0x86d   :  { %v2156_v9 = vmul.f32 %v7184_v54, %v2113_v7 }
 0x86f   :  { %2172 = vst [vmem:[#allocation2 + $0x8] sm:$0xff] %v2156_v9  ;;  %v7205_v40 = vpop.permute.xlu0 %3189  ;;  %v7218_v9 = vpop.f32.mrf.mxu3 }
 0x870   :  { %8234 = vst [vmem:[#allocation30_spill] sm:$0xff] %v7218_v9 }
 0x871   :  { %2598 = vmax.xlane.f32.xlu2 %v7135_v30 }
 0x872   :  { %2580 = vmax.xlane.f32.xlu1 %v6930_v31  ;;  %v7209_v46 = vpop.permute.xlu1 %3547  ;;  %v7211_v13 = vpop.permute.xlu2 %3466 }
 0x873   :  { %8232 = vst [vmem:[#allocation10_spill] sm:$0xff] %v7209_v46 }
 0x874   :  { %v2116_v57 = vpop.f32.mrf.mxu2  ;;  %2912 = vmatpush.bf16.xpose.msrb.mxu2 %v2890_v10 }
 0x875   :  { %v2157_v3 = vmul.f32 %v7184_v54, %v2116_v57 }
 0x877   :  { %2173 = vst [vmem:[#allocation2 + $0x10] sm:$0xff] %v2157_v3  ;;  %v7216_v7 = vpop.permute.xlu0 %3541 }
 0x878   :  { %8233 = vst [vmem:[#allocation9_spill] sm:$0xff] %v7216_v7  ;;  %v2884_v7 = vsel %vm395_vm0, %v6994_v62, 0 }
 0x879   :  { %2608 = vmax.xlane.f32.xlu2 %v7218_v9 }
 0x87a   :  { %2588 = vmax.xlane.f32.xlu1 %v7016_v60  ;;  %v7222_v30 = vpop.permute.xlu1 %3120  ;;  %v7224_v46 = vpop.permute.xlu2 %3828 }
 0x87c   :  { %v2118_v48 = vpop.f32.mrf.mxu2  ;;  %2913 = vmatpush.bf16.xpose.msrb.mxu2 %v2887_v18 }
 0x87d   :  { %v2158_v57 = vmul.f32 %v7184_v54, %v2118_v48 }
 0x87f   :  { %2174 = vst [vmem:[#allocation2 + $0x18] sm:$0xff] %v2158_v57  ;;  %v7229_v10 = vpop.permute.xlu0 %3193  ;;  %v3253_v57 = vsel %vm395_vm0, %v7052_v17, 0 }
 0x882   :  { %2592 = vmax.xlane.f32.xlu1 %v7070_v26  ;;  %v7232_v3 = vpop.permute.xlu1 %3114  ;;  %v3212_v9 = vpop.permute.xlu2 %3211 }
 0x883   :  { %v3259_v60 = vsel %vm395_vm0, %v3212_v9, 0  ;;  %v3256_v9 = vsel %vm395_vm0, %v3210_v6, 0 }
 0x884   :  { %v2121_v2 = vpop.f32.mrf.mxu2  ;;  %2914 = vmatpush.bf16.xpose.msrb.mxu2 %v2884_v7  ;;  %3261 = vmatpush.bf16.xpose.msrb.mxu3 %v3259_v60 }
 0x885   :  { %v2159_v16 = vmul.f32 %v7184_v54, %v2121_v2 }
 0x887   :  { %2175 = vst [vmem:[#allocation2 + $0x20] sm:$0xff] %v2159_v16  ;;  %2582 = vmax.xlane.f32.xlu0 %v6946_v38  ;;  %v7239_v48 = vpop.permute.xlu0 %3545 }
 0x88a   :  { %2600 = vmax.xlane.f32.xlu1 %v7159_v35  ;;  %v7242_v18 = vpop.permute.xlu1 %3108 }
 0x88b   :  { %4364 = vmatmul.msk.bf16.vlgmr.msrb.gmra.mxu2 %vm395_vm0, %v7004_v47 }
 0x88c   :  { %v2123_v62 = vpop.f32.mrf.mxu2  ;;  %3262 = vmatpush.bf16.xpose.msrb.mxu3 %v3256_v9 }
 0x88d   :  { %v2160_v60 = vmul.f32 %v7184_v54, %v2123_v62  ;;  %v3250_v62 = vsel %vm395_vm0, %v7124_v41, 0 }
 0x88f   :  { %2176 = vst [vmem:[#allocation2 + $0x28] sm:$0xff] %v2160_v60  ;;  %2586 = vmax.xlane.f32.xlu0 %v6998_v4  ;;  %v7249_v2 = vpop.permute.xlu0 %3116 }
 0x892   :  { %2602 = vmax.xlane.f32.xlu1 %v7168_v55  ;;  %v7252_v7 = vpop.permute.xlu1 %3472 }
 0x894   :  { %v2126_v16 = vpop.f32.mrf.mxu2  ;;  %3263 = vmatpush.bf16.xpose.msrb.mxu3 %v3253_v57 }
 0x895   :  { %v2161_v6 = vmul.f32 %v7184_v54, %v2126_v16 }
 0x897   :  { %2177 = vst [vmem:[#allocation2 + $0x30] sm:$0xff] %v2161_v6  ;;  %2590 = vmax.xlane.f32.xlu0 %v7042_v5  ;;  %v7258_v47 = vpop.permute.xlu0 %3112  ;;  %v3247_v6 = vsel %vm395_vm0, %v7060_v44, 0 }
 0x89a   :  { %2606 = vmax.xlane.f32.xlu1 %v7203_v37  ;;  %v7261_v9 = vpop.permute.xlu1 %3464 }
 0x89b   :  { %4365 = vmatmul.msk.bf16.gmra.mxu2 %vm395_vm0, %v6974_v56 }
 0x89c   :  { %v2128_v17 = vpop.f32.mrf.mxu2  ;;  %3264 = vmatpush.bf16.xpose.msrb.mxu3 %v3250_v62 }
 0x89d   :  { %v2162_v60 = vmul.f32 %v7184_v54, %v2128_v17 }
 0x89f   :  { %2178 = vst [vmem:[#allocation2 + $0x38] sm:$0xff] %v2162_v60  ;;  %2594 = vmax.xlane.f32.xlu0 %v7094_v0  ;;  %v7269_v57 = vpop.permute.xlu0 %3468  ;;  %v3244_v60 = vsel %vm395_vm0, %v7076_v15, 0 }
 0x8a2   :  { %v7271_v16 = vpop.permute.xlu1 %3824 }
 0x8a4   :  { %v2131_v37 = vpop.f32.mrf.mxu2  ;;  %3265 = vmatpush.bf16.xpose.msrb.mxu3 %v3247_v6  ;;  %v3241_v6 = vsel %vm395_vm0, %v7010_v25, 0  ;;  %v3607_v25 = vsel %vm395_vm0, %v7078_v27, 0 }
 0x8a5   :  { %v2163_v56 = vmul.f32 %v7184_v54, %v2131_v37 }
 0x8a7   :  { %2179 = vst [vmem:[#allocation2 + $0x40] sm:$0xff] %v2163_v56  ;;  %2604 = vmax.xlane.f32.xlu0 %v7192_v11  ;;  %v7277_v41 = vpop.permute.xlu0 %3462  ;;  %v3610_v56 = vsel %vm395_vm0, %v7092_v1, 0 }
 0x8aa   :  { %v3566_v62 = vpop.permute.xlu1 %3565 }
 0x8ab   :  { %v3613_v17 = vsel %vm395_vm0, %v3566_v62, 0  ;;  %4366 = vmatmul.msk.bf16.gmra.mxu2 %vm395_vm0, %v7050_v58 }
 0x8ac   :  { %v2133_v55 = vpop.f32.mrf.mxu2  ;;  %3266 = vmatpush.bf16.xpose.msrb.mxu3 %v3244_v60  ;;  %3615 = vmatpush.bf16.xpose.msra.mxu2 %v3613_v17 }
 0x8ad   :  { %v2164_v44 = vmul.f32 %v7184_v54, %v2133_v55  ;;  %v3238_v55 = vsel %vm395_vm0, %v6924_v52, 0  ;;  %v3604_v52 = vsel %vm395_vm0, %v7139_v39, 0 }
 0x8af   :  { %2180 = vst [vmem:[#allocation2 + $0x48] sm:$0xff] %v2164_v44  ;;  %v7285_v37 = vpop.permute.xlu0 %3826 }
 0x8b4   :  { %v2136_v62 = vpop.f32.mrf.mxu2  ;;  %3267 = vmatpush.bf16.xpose.msrb.mxu3 %v3241_v6  ;;  %3616 = vmatpush.bf16.xpose.msra.mxu2 %v3610_v56 }
 0x8b5   :  { %v2165_v58 = vmul.f32 %v7184_v54, %v2136_v62  ;;  %v7321_v62 = vpop.permute.xlu1 %3549 }
 0x8b7   :  { %2181 = vst [vmem:[#allocation2 + $0x50] sm:$0xff] %v2165_v58  ;;  %v7292_v15 = vpop.permute.xlu0 %3822  ;;  %v8241_v58 = vld [vmem:[#allocation6_spill] sm:$0xff] }
 0x8bb   :  { %4367 = vmatmul.msk.bf16.gmra.mxu2 %vm395_vm0, %v7044_v22 }
 0x8bc   :  { %v2138_v17 = vpop.f32.mrf.mxu2  ;;  %3268 = vmatpush.bf16.xpose.msrb.mxu3 %v3238_v55  ;;  %3617 = vmatpush.bf16.xpose.msra.mxu2 %v3607_v25 }
 0x8bd   :  { %v2166_v1 = vmul.f32 %v7184_v54, %v2138_v17 }
 0x8bf   :  { %2182 = vst [vmem:[#allocation2 + $0x58] sm:$0xff] %v2166_v1  ;;  %v7302_v60 = vpop.permute.xlu0 %2841 }
 0x8c3   :  { %4372 = vmatmul.msk.bf16.vlgmr.msrb.gmra.mxu3 %vm395_vm0, %v6938_v43  ;;  %v3601_v43 = vsel %vm395_vm0, %v7084_v33, 0  ;;  %v3598_v33 = vsel %vm395_vm0, %v7090_v50, 0 }
 0x8c4   :  { %4492 = vmatpush.bf16.msra.mxu3 %v6775_v19  ;;  %v2141_v22 = vpop.f32.mrf.mxu2  ;;  %3618 = vmatpush.bf16.xpose.msra.mxu2 %v3604_v52 }
 0x8c5   :  { %v2167_v27 = vmul.f32 %v7184_v54, %v2141_v22 }
 0x8c7   :  { %2183 = vst [vmem:[#allocation2 + $0x60] sm:$0xff] %v2167_v27  ;;  %v3123_v44 = vpop.permute.xlu0 %3122 }
 0x8c8   :  { %4493 = vmatpush.bf16.msra.mxu3 %v6781_v59  ;;  %3132 = vmatpush.bf16.msrb.mxu1 %v3123_v44 }
 0x8cb   :  { %4368 = vmatmul.msk.bf16.gmra.mxu2 %vm395_vm0, %v7102_v53 }
 0x8cc   :  { %4494 = vmatpush.bf16.msra.mxu3 %v6799_v24  ;;  %v2143_v6 = vpop.f32.mrf.mxu2  ;;  %3619 = vmatpush.bf16.xpose.msra.mxu2 %v3601_v43 }
 0x8cd   :  { %3133 = vmatpush.bf16.msrb.mxu1 %v7222_v30  ;;  %v2168_v39 = vmul.f32 %v7184_v54, %v2143_v6 }
 0x8cf   :  { %2184 = vst [vmem:[#allocation2 + $0x68] sm:$0xff] %v2168_v39  ;;  %v3477_v56 = vpop.permute.xlu0 %3476 }
 0x8d0   :  { %4495 = vmatpush.bf16.msra.mxu3 %v6809_v36  ;;  %3486 = vmatpush.bf16.msra.mxu0 %v3477_v56  ;;  %v8242_v56 = vld [vmem:[#allocation26_spill] sm:$0xff] }
 0x8d1   :  { %3134 = vmatpush.bf16.msrb.mxu1 %v7161_v29  ;;  %v7339_v29 = vpop.permute.xlu1 %3830 }
 0x8d3   :  { %4373 = vmatmul.msk.bf16.gmra.mxu3 %vm395_vm0, %v7012_v34  ;;  %v3595_v34 = vsel %vm395_vm0, %v7034_v32, 0  ;;  %v3592_v32 = vsel %vm395_vm0, %v7166_v45, 0 }
 0x8d4   :  { %4496 = vmatpush.bf16.msra.mxu3 %v6823_v28  ;;  %v2146_v53 = vpop.f32.mrf.mxu2  ;;  %3620 = vmatpush.bf16.xpose.msra.mxu2 %v3598_v33 }
 0x8d5   :  { %3135 = vmatpush.bf16.msrb.mxu1 %v7249_v2  ;;  %v2169_v30 = vmul.f32 %v7184_v54, %v2146_v53  ;;  %3487 = vmatpush.bf16.msra.mxu0 %v7188_v12 }
 0x8d7   :  { %2185 = vst [vmem:[#allocation2 + $0x70] sm:$0xff] %v2169_v30 }
 0x8d8   :  { %4497 = vmatpush.bf16.msra.mxu3 %v6829_v21 }
 0x8d9   :  { %3136 = vmatpush.bf16.msrb.mxu1 %v7232_v3  ;;  %3488 = vmatpush.bf16.msra.mxu0 %v7252_v7 }
 0x8db   :  { %4369 = vmatmul.msk.bf16.gmra.mxu2 %vm395_vm0, %v7151_v20 }
 0x8dc   :  { %4498 = vmatpush.bf16.msra.mxu3 %v6847_v61  ;;  %v2148_v50 = vpop.f32.mrf.mxu2  ;;  %3621 = vmatpush.bf16.xpose.msra.mxu2 %v3595_v34 }
 0x8dd   :  { %3137 = vmatpush.bf16.msrb.mxu1 %v7258_v47  ;;  %v2170_v12 = vmul.f32 %v7184_v54, %v2148_v50  ;;  %3489 = vmatpush.bf16.msra.mxu0 %v7198_v49  ;;  %v8240_v47 = vld [vmem:[#allocation22_spill] sm:$0xff] }
 0x8df   :  { %2186 = vst [vmem:[#allocation2 + $0x78] sm:$0xff] %v2170_v12 }
 0x8e0   :  { %4499 = vmatpush.bf16.msra.mxu3 %v6853_v23 }
 0x8e1   :  { %3138 = vmatpush.bf16.msrb.mxu1 %v7173_v8  ;;  %3490 = vmatpush.bf16.msra.mxu0 %v7269_v57 }
 0x8e3   :  { %4374 = vmatmul.msk.bf16.gmra.mxu3 %vm395_vm0, %v7178_v63  ;;  %v8238_v63 = vld [vmem:[#allocation7_spill] sm:$0xff] }
 0x8e4   :  { %3622 = vmatpush.bf16.xpose.msra.mxu2 %v3592_v32 }
 0x8e5   :  { %3139 = vmatpush.bf16.msrb.mxu1 %v7242_v18  ;;  %v2581_v20 = vpop.xlane.xlu1 %2580  ;;  %3491 = vmatpush.bf16.msra.mxu0 %v7211_v13  ;;  %v8239_v13 = vld [vmem:[#allocation9_spill] sm:$0xff] }
 0x8e6   :  { %v2611_v49 = vsub.f32 %v6930_v31, %v2581_v20 }
 0x8e8   :  { %v2628_v8 = vmul.f32 1.442695, %v2611_v49 }
 0x8e9   :  { %4484 = vmatpush.bf16.msra.mxu1 %v7339_v29  ;;  %3492 = vmatpush.bf16.msra.mxu0 %v7261_v9 }
 0x8ea   :  { %5004 = vpow2.f32 %v2628_v8 }
 0x8eb   :  { %4370 = vmatmul.msk.bf16.gmra.mxu2 %vm395_vm0, %v7116_v14 }
 0x8ec   :  { %4137 = vmatpush.bf16.msrb.mxu2 %v6775_v19  ;;  %v3196_v19 = vpop.permute.xlu2 %3195 }
 0x8ed   :  { %4485 = vmatpush.bf16.msra.mxu1 %v7224_v46  ;;  %3493 = vmatpush.bf16.msra.mxu0 %v7277_v41  ;;  %v2589_v44 = vpop.xlane.xlu1 %2588 }
 0x8ee   :  { %v2615_v33 = vsub.f32 %v8242_v56, %v2589_v44 }
 0x8f0   :  { %4138 = vmatpush.bf16.msrb.mxu2 %v6781_v59  ;;  %v7362_v31 = vpop.eup %5004  ;;  %v2636_v53 = vmul.f32 1.442695, %v2615_v33  ;;  %v8245_v33 = vld [vmem:[#allocation24_spill] sm:$0xff] }
 0x8f1   :  { %4486 = vmatpush.bf16.msra.mxu1 %v7285_v37  ;;  %2660 = vadd.xlane.f32.xlu1 %v7362_v31 }
 0x8f3   :  { %4375 = vmatmul.msk.bf16.gmra.mxu3 %vm395_vm0, %v7171_v51 }
 0x8f4   :  { %4139 = vmatpush.bf16.msrb.mxu2 %v6799_v24  ;;  %v2579_v59 = vpop.xlane.xlu2 %2578 }
 0x8f5   :  { %4487 = vmatpush.bf16.msra.mxu1 %v7271_v16  ;;  %v2593_v12 = vpop.xlane.xlu1 %2592 }
 0x8f8   :  { %4140 = vmatpush.bf16.msrb.mxu2 %v6809_v36  ;;  %v8235_v36 = vld [vmem:[#allocation21_spill] sm:$0xff] }
 0x8f9   :  { %4488 = vmatpush.bf16.msra.mxu1 %v7292_v15 }
 0x8fb   :  { %4371 = vmatmul.msk.bf16.gmra.mxu2 %vm395_vm0, %v7302_v60 }
 0x8fc   :  { %4141 = vmatpush.bf16.msrb.mxu2 %v6823_v28  ;;  %v2610_v28 = vsub.f32 %v8235_v36, %v2579_v59  ;;  %v2585_v18 = vpop.xlane.xlu2 %2584  ;;  %v2617_v59 = vsub.f32 %v7070_v26, %v2593_v12  ;;  %v8244_v36 = vld [vmem:[#allocation25_spill] sm:$0xff] }
 0x8fd   :  { %v2613_v9 = vsub.f32 %v8240_v47, %v2585_v18 }
 0x8ff   :  { %v2632_v41 = vmul.f32 1.442695, %v2613_v9 }
 0x900   :  { %4142 = vmatpush.bf16.msrb.mxu2 %v6829_v21  ;;  %v8236_v21 = vld [vmem:[#allocation8_spill] sm:$0xff] }
 0x903   :  { %4376 = vmatmul.msk.bf16.gmra.mxu3 %vm395_vm0, %v7205_v40 }
 0x904   :  { %4143 = vmatpush.bf16.msrb.mxu2 %v6847_v61  ;;  %v2626_v61 = vmul.f32 1.442695, %v2610_v28  ;;  %v2597_v8 = vpop.xlane.xlu2 %2596 }
 0x905   :  { %v2619_v28 = vsub.f32 %v8244_v36, %v2597_v8 }
 0x906   :  { %5006 = vpow2.f32 %v2626_v61  ;;  %v2640_v61 = vmul.f32 1.442695, %v2617_v59 }
 0x907   :  { %5008 = vpow2.f32 %v2632_v41 }
 0x908   :  { %4144 = vmatpush.bf16.msrb.mxu2 %v6853_v23  ;;  %v8237_v23 = vld [vmem:[#allocation27_spill] sm:$0xff] }
 0x90b   :  { %4380 = vmatmul.msk.bf16.vlgmr.msra.gmra.mxu2 %vm395_vm0, %v7128_v42 }
 0x90c   :  { %v7391_v42 = vpop.eup %5006  ;;  %v2599_v18 = vpop.xlane.xlu2 %2598 }
 0x90d   :  { %v7427_v60 = vpop.eup %5008 }
 0x90e   :  { %v7380_v24 = vpop.f32.mrf.mxu2 }
 0x90f   :  { %2956 = vmax.xlane.f32.xlu0 %v7380_v24 }
 0x913   :  { %4377 = vmatmul.msk.bf16.gmra.mxu3 %vm395_vm0, %v8236_v21  ;;  %v2601_v21 = vpop.xlane.xlu1 %2600 }
 0x914   :  { %v2609_v41 = vpop.xlane.xlu2 %2608  ;;  %v2621_v59 = vsub.f32 %v7159_v35, %v2601_v21  ;;  %v8247_v21 = vld [vmem:[#allocation30_spill] sm:$0xff] }
 0x916   :  { %v7386_v14 = vpop.f32.mrf.mxu2 }
 0x917   :  { %2958 = vmax.xlane.f32.xlu2 %v7386_v14 }
 0x91b   :  { %4381 = vmatmul.msk.bf16.gmra.mxu2 %vm395_vm0, %v8237_v23  ;;  %v2644_v23 = vmul.f32 1.442695, %v2619_v28  ;;  %v2603_v26 = vpop.xlane.xlu1 %2602  ;;  %v8246_v28 = vld [vmem:[#allocation5_spill] sm:$0xff] }
 0x91e   :  { %v7393_v45 = vpop.f32.mrf.mxu2 }
 0x91f   :  { %2658 = vadd.xlane.f32.xlu2 %v7391_v42 }
 0x923   :  { %4378 = vmatmul.msk.bf16.gmra.mxu3 %vm395_vm0, %v7229_v10  ;;  %v2583_v10 = vpop.xlane.xlu0 %2582 }
 0x924   :  { %v2612_v57 = vsub.f32 %v6946_v38, %v2583_v10 }
 0x926   :  { %v7398_v51 = vpop.f32.mrf.mxu2  ;;  %v2630_v55 = vmul.f32 1.442695, %v2612_v57 }
 0x927   :  { %2962 = vmax.xlane.f32.xlu1 %v7398_v51 }
 0x928   :  { %5010 = vpow2.f32 %v2630_v55  ;;  %v7491_v55 = vpop.xlane.xlu1 %2606 }
 0x92b   :  { %4382 = vmatmul.msk.bf16.gmra.mxu2 %vm395_vm0, %v8238_v63  ;;  %v2587_v1 = vpop.xlane.xlu0 %2586 }
 0x92c   :  { %v2614_v22 = vsub.f32 %v6998_v4, %v2587_v1 }
 0x92e   :  { %v7403_v54 = vpop.f32.mrf.mxu2  ;;  %v7429_v52 = vpop.eup %5010  ;;  %v2634_v43 = vmul.f32 1.442695, %v2614_v22 }
 0x930   :  { %5012 = vpow2.f32 %v2634_v43 }
 0x931   :  { %5014 = vpow2.f32 %v2636_v53 }
 0x933   :  { %4379 = vmatmul.msk.bf16.gmra.mxu3 %vm395_vm0, %v3196_v19  ;;  %v2591_v6 = vpop.xlane.xlu0 %2590 }
 0x934   :  { %v2616_v4 = vsub.f32 %v7042_v5, %v2591_v6  ;;  %v8243_v5 = vld [vmem:[#allocation10_spill] sm:$0xff] }
 0x936   :  { %v7406_v40 = vpop.f32.mrf.mxu2  ;;  %v7450_v34 = vpop.eup %5012 }
 0x937   :  { %v7459_v32 = vpop.eup %5014 }
 0x93b   :  { %4383 = vmatmul.msk.bf16.gmra.mxu2 %vm395_vm0, %v8239_v13 }
 0x93e   :  { %v7410_v3 = vpop.f32.mrf.mxu2 }
 0x946   :  { %v7412_v2 = vpop.f32.mrf.mxu2  ;;  %v7414_v7 = vpop.f32.mrf.mxu3 }
 0x947   :  { %3310 = vmax.xlane.f32.xlu2 %v7414_v7 }
 0x94b   :  { %4384 = vmatmul.msk.bf16.gmra.mxu2 %vm395_vm0, %v8241_v58  ;;  %v2595_v58 = vpop.xlane.xlu0 %2594 }
 0x94c   :  { %v2618_v1 = vsub.f32 %v7094_v0, %v2595_v58  ;;  %v2648_v58 = vmul.f32 1.442695, %v2621_v59 }
 0x94e   :  { %v7421_v25 = vpop.f32.mrf.mxu3  ;;  %v7423_v17 = vpop.f32.mrf.mxu2  ;;  %v2642_v43 = vmul.f32 1.442695, %v2618_v1 }
 0x94f   :  { %3312 = vmax.xlane.f32.xlu0 %v7421_v25  ;;  %2960 = vmax.xlane.f32.xlu2 %v7393_v45 }
 0x956   :  { %v7431_v38 = vpop.f32.mrf.mxu3  ;;  %v7437_v27 = vpop.f32.mrf.mxu2 }
 0x957   :  { %2662 = vadd.xlane.f32.xlu0 %v7429_v52  ;;  %2664 = vadd.xlane.f32.xlu2 %v7427_v60 }
 0x958   :  { %3314 = vmax.xlane.f32.xlu1 %v7431_v38 }
 0x95b   :  { %4385 = vmatmul.msk.bf16.gmra.mxu2 %vm395_vm0, %v7239_v48  ;;  %v2638_v48 = vmul.f32 1.442695, %v2616_v4  ;;  %v2620_v4 = vsub.f32 %v8245_v33, %v2599_v18 }
 0x95d   :  { %5016 = vpow2.f32 %v2638_v48  ;;  %v2646_v0 = vmul.f32 1.442695, %v2620_v4 }
 0x95e   :  { %v7441_v39 = vpop.f32.mrf.mxu3  ;;  %v7448_v30 = vpop.f32.mrf.mxu2  ;;  %5018 = vpow2.f32 %v2640_v61  ;;  %v2622_v61 = vsub.f32 %v8246_v28, %v2603_v26  ;;  %v2625_v26 = vsub.f32 %v8247_v21, %v2609_v41 }
 0x95f   :  { %3316 = vmax.xlane.f32.xlu2 %v7441_v39  ;;  %2964 = vmax.xlane.f32.xlu0 %v7403_v54  ;;  %5020 = vpow2.f32 %v2644_v23 }
 0x960   :  { %2966 = vmax.xlane.f32.xlu1 %v7406_v40  ;;  %5022 = vpow2.f32 %v2642_v43  ;;  %v2650_v43 = vmul.f32 1.442695, %v2622_v61 }
 0x963   :  { %v7463_v49 = vpop.eup %5016 }
 0x964   :  { %v7480_v10 = vpop.eup %5018  ;;  %v2661_v6 = vpop.xlane.xlu1 %2660 }
 0x965   :  { %v7484_v9 = vpop.eup %5020  ;;  %5024 = vrcp.f32 %v2661_v6  ;;  %v2605_v6 = vpop.xlane.xlu0 %2604 }
 0x966   :  { %v7452_v50 = vpop.f32.mrf.mxu3  ;;  %v7461_v20 = vpop.f32.mrf.mxu2 }
 0x967   :  { %2666 = vadd.xlane.f32.xlu2 %v7450_v34  ;;  %2968 = vmax.xlane.f32.xlu0 %v7410_v3  ;;  %v7510_v12 = vpop.eup %5022 }
 0x968   :  { %3318 = vmax.xlane.f32.xlu1 %v7452_v50 }
 0x96b   :  { %4386 = vmatmul.msk.bf16.gmra.mxu2 %vm395_vm0, %v8243_v5  ;;  %v5025_v8 = vpop.eup %5024 }
 0x96c   :  { %v2707_v23 = vmul.f32 %v5025_v8, %v7362_v31  ;;  %v2656_v8 = vmul.f32 1.442695, %v2625_v26 }
 0x96e   :  { %v7465_v19 = vpop.f32.mrf.mxu3  ;;  %v7473_v13 = vpop.f32.mrf.mxu2 }
 0x96f   :  { %2668 = vadd.xlane.f32.xlu2 %v7459_v32  ;;  %2670 = vadd.xlane.f32.xlu0 %v7463_v49 }
 0x976   :  { %v7471_v63 = vpop.f32.mrf.mxu3  ;;  %v7489_v57 = vpop.f32.mrf.mxu2 }
 0x977   :  { %3320 = vmax.xlane.f32.xlu2 %v7465_v19  ;;  %3322 = vmax.xlane.f32.xlu1 %v7471_v63 }
 0x978   :  { %2976 = vmax.xlane.f32.xlu0 %v7448_v30 }
 0x97b   :  { %4387 = vmatmul.msk.bf16.gmra.mxu2 %vm395_vm0, %v7321_v62 }
 0x97e   :  { %v7482_v47 = vpop.f32.mrf.mxu3  ;;  %v7501_v44 = vpop.f32.mrf.mxu2 }
 0x97f   :  { %2672 = vadd.xlane.f32.xlu1 %v7480_v10  ;;  %2970 = vmax.xlane.f32.xlu2 %v7412_v2 }
 0x980   :  { %2676 = vadd.xlane.f32.xlu0 %v7484_v9 }
 0x982   :  { %v2957_v31 = vpop.xlane.xlu0 %2956 }
 0x986   :  { %v7493_v62 = vpop.f32.mrf.mxu3  ;;  %v7508_v48 = vpop.f32.mrf.mxu2 }
 0x987   :  { %2972 = vmax.xlane.f32.xlu2 %v7423_v17  ;;  %2974 = vmax.xlane.f32.xlu1 %v7437_v27 }
 0x988   :  { %2980 = vmax.xlane.f32.xlu0 %v7473_v13 }
 0x98a   :  { %v7499_v22 = vpop.xlane.xlu2 %2958 }
 0x98e   :  { %v7503_v56 = vpop.f32.mrf.mxu3 }
 0x98f   :  { %3324 = vmax.xlane.f32.xlu2 %v7482_v47  ;;  %3328 = vmax.xlane.f32.xlu1 %v7503_v56 }
 0x992   :  { %v2659_v53 = vpop.xlane.xlu2 %2658 }
 0x993   :  { %5026 = vrcp.f32 %v2659_v53  ;;  %v7524_v53 = vpop.f32.mrf.mxu2 }
 0x994   :  { %5028 = vpow2.f32 %v2646_v0  ;;  %v2988_v0 = vsub.f32 %v7380_v24, %v2957_v31 }
 0x995   :  { %5030 = vpow2.f32 %v2648_v58 }
 0x996   :  { %v7512_v5 = vpop.f32.mrf.mxu3  ;;  %5032 = vpow2.f32 %v2650_v43 }
 0x997   :  { %2674 = vadd.xlane.f32.xlu2 %v7510_v12  ;;  %2978 = vmax.xlane.f32.xlu1 %v7461_v20  ;;  %5034 = vpow2.f32 %v2656_v8 }
 0x999   :  { %v5027_v36 = vpop.eup %5026 }
 0x99a   :  { %v2706_v18 = vmul.f32 %v5027_v36, %v7391_v42  ;;  %v7522_v4 = vpop.eup %5028  ;;  %v3004_v36 = vmul.f32 1.442695, %v2988_v0  ;;  %v2963_v41 = vpop.xlane.xlu1 %2962 }
 0x99b   :  { %v7531_v35 = vpop.eup %5030 }
 0x99c   :  { %v2722_v1 = vpack.c.bf16 %v2707_v23, %v2706_v18  ;;  %v7533_v42 = vpop.eup %5032 }
 0x99e   :  { %2786 = vmatmul.bf16.vlgmr.msrb.gmra.mxu0 %v2722_v1  ;;  %v7520_v33 = vpop.f32.mrf.mxu3 }
 0x99f   :  { %3840 = vmatpush.bf16.msrb.mxu0 %v7339_v29  ;;  %3326 = vmax.xlane.f32.xlu2 %v7493_v62  ;;  %v2623_v29 = vsub.f32 %v7192_v11, %v2605_v6  ;;  %v2989_v11 = vsub.f32 %v7386_v14, %v7499_v22 }
 0x9a0   :  { %2678 = vadd.xlane.f32.xlu1 %v7522_v4  ;;  %3332 = vmax.xlane.f32.xlu0 %v7520_v33 }
 0x9a1   :  { %v2652_v59 = vmul.f32 1.442695, %v2623_v29  ;;  %v3006_v23 = vmul.f32 1.442695, %v2989_v11 }
 0x9a3   :  { %3841 = vmatpush.bf16.msrb.mxu0 %v7224_v46  ;;  %v7542_v46 = vpop.f32.mrf.mxu2  ;;  %5036 = vpow2.f32 %v2652_v59 }
 0x9a4   :  { %5038 = vpow2.f32 %v3004_v36 }
 0x9a7   :  { %3842 = vmatpush.bf16.msrb.mxu0 %v7285_v37  ;;  %2680 = vadd.xlane.f32.xlu2 %v7531_v35  ;;  %v8248_v37 = vld [vmem:[#allocation23_spill] sm:$0xff] }
 0x9a8   :  { %3330 = vmax.xlane.f32.xlu1 %v7512_v5  ;;  %2682 = vadd.xlane.f32.xlu0 %v7533_v42  ;;  %v2624_v28 = vsub.f32 %v8248_v37, %v7491_v55  ;;  %v7556_v55 = vpop.eup %5034 }
 0x9a9   :  { %v7558_v18 = vpop.eup %5036 }
 0x9aa   :  { %v2654_v24 = vmul.f32 1.442695, %v2624_v28  ;;  %v7560_v58 = vpop.eup %5038 }
 0x9ab   :  { %3843 = vmatpush.bf16.msrb.mxu0 %v7271_v16  ;;  %v2991_v16 = vsub.f32 %v7398_v51, %v2963_v41  ;;  %v7554_v61 = vpop.f32.mrf.mxu2 }
 0x9ac   :  { %5040 = vpow2.f32 %v2654_v24 }
 0x9ad   :  { %5042 = vpow2.f32 %v3006_v23 }
 0x9af   :  { %3844 = vmatpush.bf16.msrb.mxu0 %v7292_v15  ;;  %2984 = vmax.xlane.f32.xlu2 %v7501_v44  ;;  %v3010_v15 = vmul.f32 1.442695, %v2991_v16 }
 0x9b0   :  { %2982 = vmax.xlane.f32.xlu1 %v7489_v57  ;;  %2986 = vmax.xlane.f32.xlu0 %v7508_v48 }
 0x9b1   :  { %5044 = vpow2.f32 %v3010_v15 }
 0x9b2   :  { %v7566_v22 = vpop.eup %5040 }
 0x9b3   :  { %v7568_v1 = vpop.f32.mrf.mxu2  ;;  %v7570_v6 = vpop.eup %5042 }
 0x9b7   :  { %2688 = vadd.xlane.f32.xlu2 %v7556_v55  ;;  %v7572_v31 = vpop.eup %5044 }
 0x9b8   :  { %2684 = vadd.xlane.f32.xlu1 %v7558_v18  ;;  %3036 = vadd.xlane.f32.xlu0 %v7560_v58 }
 0x9ba   :  { %v3311_v14 = vpop.xlane.xlu2 %3310 }
 0x9bb   :  { %v3342_v51 = vsub.f32 %v7414_v7, %v3311_v14  ;;  %v7581_v36 = vpop.f32.mrf.mxu2 }
 0x9bd   :  { %v3358_v43 = vmul.f32 1.442695, %v3342_v51 }
 0x9bf   :  { %5046 = vpow2.f32 %v3358_v43  ;;  %3038 = vadd.xlane.f32.xlu2 %v7570_v6 }
 0x9c0   :  { %2686 = vadd.xlane.f32.xlu1 %v7566_v22  ;;  %3042 = vadd.xlane.f32.xlu0 %v7572_v31 }
 0x9c2   :  { %v3313_v21 = vpop.xlane.xlu0 %3312  ;;  %v2961_v26 = vpop.xlane.xlu2 %2960 }
 0x9c3   :  { %v3343_v7 = vsub.f32 %v7421_v25, %v3313_v21  ;;  %v2990_v29 = vsub.f32 %v7393_v45, %v2961_v26 }
 0x9c5   :  { %v7579_v0 = vpop.eup %5046  ;;  %v3360_v8 = vmul.f32 1.442695, %v3343_v7  ;;  %v3008_v59 = vmul.f32 1.442695, %v2990_v29 }
 0x9c7   :  { %5048 = vpow2.f32 %v3360_v8  ;;  %3390 = vadd.xlane.f32.xlu2 %v7579_v0 }
 0x9c8   :  { %5050 = vpow2.f32 %v3008_v59  ;;  %3668 = vmax.xlane.f32.xlu1 %v7554_v61  ;;  %3672 = vmax.xlane.f32.xlu0 %v7581_v36 }
 0x9ca   :  { %v2663_v41 = vpop.xlane.xlu0 %2662  ;;  %v2665_v37 = vpop.xlane.xlu2 %2664 }
 0x9cb   :  { %5052 = vrcp.f32 %v2663_v41  ;;  %v3315_v25 = vpop.xlane.xlu1 %3314 }
 0x9cc   :  { %5054 = vrcp.f32 %v2665_v37  ;;  %v3344_v11 = vsub.f32 %v7431_v38, %v3315_v25 }
 0x9cd   :  { %v7586_v45 = vpop.eup %5048 }
 0x9ce   :  { %v7588_v28 = vpop.eup %5050  ;;  %v3362_v23 = vmul.f32 1.442695, %v3344_v11 }
 0x9cf   :  { %3040 = vadd.xlane.f32.xlu2 %v7588_v28 }
 0x9d0   :  { %3392 = vadd.xlane.f32.xlu1 %v7586_v45  ;;  %5056 = vpow2.f32 %v3362_v23 }
 0x9d1   :  { %v5053_v16 = vpop.eup %5052 }
 0x9d2   :  { %v5055_v24 = vpop.eup %5054  ;;  %v3317_v15 = vpop.xlane.xlu2 %3316  ;;  %v2708_v51 = vmul.f32 %v5053_v16, %v7429_v52 }
 0x9d3   :  { %v2965_v14 = vpop.xlane.xlu0 %2964  ;;  %v3345_v43 = vsub.f32 %v7441_v39, %v3317_v15  ;;  %v2967_v26 = vpop.xlane.xlu1 %2966  ;;  %v2709_v7 = vmul.f32 %v5055_v24, %v7427_v60 }
 0x9d4   :  { %v2992_v21 = vsub.f32 %v7403_v54, %v2965_v14  ;;  %v2993_v59 = vsub.f32 %v7406_v40, %v2967_v26  ;;  %v7604_v60 = vpop.f32.mrf.mxu2 }
 0x9d5   :  { %v3364_v29 = vmul.f32 1.442695, %v3345_v43  ;;  %v2723_v8 = vpack.c.bf16 %v2709_v7, %v2708_v51 }
 0x9d6   :  { %v3012_v38 = vmul.f32 1.442695, %v2992_v21  ;;  %v7600_v37 = vpop.eup %5056  ;;  %v3014_v54 = vmul.f32 1.442695, %v2993_v59 }
 0x9d7   :  { %5058 = vpow2.f32 %v3364_v29  ;;  %2791 = vmatmul.bf16.gmra.mxu0 %v2723_v8  ;;  %3670 = vmax.xlane.f32.xlu2 %v7568_v1 }
 0x9d8   :  { %5060 = vpow2.f32 %v3012_v38 }
 0x9da   :  { %v2667_v41 = vpop.xlane.xlu2 %2666 }
 0x9db   :  { %v2969_v52 = vpop.xlane.xlu0 %2968  ;;  %v3319_v11 = vpop.xlane.xlu1 %3318 }
 0x9dc   :  { %v2994_v39 = vsub.f32 %v7410_v3, %v2969_v52  ;;  %v3346_v40 = vsub.f32 %v7452_v50, %v3319_v11  ;;  %v7617_v43 = vpop.f32.mrf.mxu2 }
 0x9dd   :  { %v7602_v25 = vpop.eup %5058 }
 0x9de   :  { %v3016_v16 = vmul.f32 1.442695, %v2994_v39  ;;  %v7606_v24 = vpop.eup %5060  ;;  %3396 = vadd.xlane.f32.xlu0 %v7602_v25  ;;  %v3366_v23 = vmul.f32 1.442695, %v3346_v40 }
 0x9df   :  { %3044 = vadd.xlane.f32.xlu1 %v7606_v24  ;;  %3394 = vadd.xlane.f32.xlu2 %v7600_v37 }
 0x9e0   :  { %5062 = vpow2.f32 %v3016_v16 }
 0x9e1   :  { %5064 = vpow2.f32 %v3014_v54 }
 0x9e2   :  { %5066 = vrcp.f32 %v2667_v41  ;;  %v2669_v3 = vpop.xlane.xlu2 %2668 }
 0x9e3   :  { %5068 = vrcp.f32 %v2669_v3  ;;  %v2671_v21 = vpop.xlane.xlu0 %2670 }
 0x9e4   :  { %5070 = vpow2.f32 %v3366_v23  ;;  %v7630_v39 = vpop.f32.mrf.mxu2 }
 0x9e6   :  { %v7612_v15 = vpop.eup %5062 }
 0x9e7   :  { %v7614_v14 = vpop.eup %5064  ;;  %3048 = vadd.xlane.f32.xlu0 %v7612_v15  ;;  %3674 = vmax.xlane.f32.xlu1 %v7604_v60 }
 0x9e8   :  { %v5067_v51 = vpop.eup %5066  ;;  %3046 = vadd.xlane.f32.xlu2 %v7614_v14 }
 0x9e9   :  { %v5069_v50 = vpop.eup %5068  ;;  %v2710_v29 = vmul.f32 %v5067_v51, %v7450_v34 }
 0x9ea   :  { %v3321_v26 = vpop.xlane.xlu2 %3320  ;;  %v7621_v7 = vpop.xlane.xlu1 %3322  ;;  %v2711_v38 = vmul.f32 %v5069_v50, %v7459_v32 }
 0x9eb   :  { %v3347_v8 = vsub.f32 %v7465_v19, %v3321_v26  ;;  %v7626_v52 = vpop.eup %5070  ;;  %v2977_v54 = vpop.xlane.xlu0 %2976 }
 0x9ec   :  { %v2724_v59 = vpack.c.bf16 %v2711_v38, %v2710_v29  ;;  %v7638_v26 = vpop.f32.mrf.mxu2 }
 0x9ed   :  { %v3368_v41 = vmul.f32 1.442695, %v3347_v8 }
 0x9ee   :  { %2796 = vmatmul.bf16.gmra.mxu0 %v2724_v59 }
 0x9ef   :  { %3676 = vmax.xlane.f32.xlu0 %v7617_v43  ;;  %5072 = vpow2.f32 %v3368_v41  ;;  %3398 = vadd.xlane.f32.xlu1 %v7626_v52 }
 0x9f0   :  { %5074 = vrcp.f32 %v2671_v21 }
 0x9f2   :  { %v2673_v11 = vpop.xlane.xlu1 %2672  ;;  %v2971_v34 = vpop.xlane.xlu2 %2970 }
 0x9f3   :  { %5076 = vrcp.f32 %v2673_v11  ;;  %v2995_v32 = vsub.f32 %v7412_v2, %v2971_v34  ;;  %v2677_v29 = vpop.xlane.xlu0 %2676  ;;  %v2998_v34 = vsub.f32 %v7448_v30, %v2977_v54 }
 0x9f5   :  { %v7633_v19 = vpop.eup %5072  ;;  %v3018_v16 = vmul.f32 1.442695, %v2995_v32  ;;  %v7653_v32 = vpop.f32.mrf.mxu2 }
 0x9f6   :  { %3400 = vadd.xlane.f32.xlu2 %v7633_v19  ;;  %v5075_v40 = vpop.eup %5074 }
 0x9f7   :  { %5078 = vpow2.f32 %v3018_v16  ;;  %v2712_v50 = vmul.f32 %v5075_v40, %v7463_v49 }
 0x9f9   :  { %v5077_v3 = vpop.eup %5076 }
 0x9fa   :  { %v2973_v23 = vpop.xlane.xlu2 %2972  ;;  %v2975_v51 = vpop.xlane.xlu1 %2974  ;;  %v2713_v21 = vmul.f32 %v5077_v3, %v7480_v10 }
 0x9fb   :  { %v2996_v38 = vsub.f32 %v7423_v17, %v2973_v23  ;;  %v2997_v2 = vsub.f32 %v7437_v27, %v2975_v51  ;;  %v3024_v17 = vmul.f32 1.442695, %v2998_v34  ;;  %v2981_v16 = vpop.xlane.xlu0 %2980 }
 0x9fc   :  { %v2725_v8 = vpack.c.bf16 %v2713_v21, %v2712_v50  ;;  %v3000_v30 = vsub.f32 %v7473_v13, %v2981_v16 }
 0x9fd   :  { %v7642_v59 = vpop.eup %5078  ;;  %v3020_v41 = vmul.f32 1.442695, %v2996_v38  ;;  %v3022_v11 = vmul.f32 1.442695, %v2997_v2 }
 0x9fe   :  { %2801 = vmatmul.bf16.gmra.mxu0 %v2725_v8  ;;  %3050 = vadd.xlane.f32.xlu1 %v7642_v59  ;;  %v3028_v51 = vmul.f32 1.442695, %v3000_v30 }
 0x9ff   :  { %5080 = vpow2.f32 %v3020_v41  ;;  %3678 = vmax.xlane.f32.xlu2 %v7630_v39 }
 0xa00   :  { %5082 = vpow2.f32 %v3022_v11 }
 0xa01   :  { %5084 = vpow2.f32 %v3024_v17 }
 0xa02   :  { %v7647_v49 = vpop.xlane.xlu2 %3324  ;;  %v7649_v10 = vpop.xlane.xlu1 %3328  ;;  %5086 = vrcp.f32 %v2677_v29 }
 0xa05   :  { %v7651_v27 = vpop.eup %5080 }
 0xa06   :  { %v7655_v40 = vpop.eup %5082  ;;  %3682 = vmax.xlane.f32.xlu1 %v7653_v32 }
 0xa07   :  { %3054 = vadd.xlane.f32.xlu0 %v7655_v40  ;;  %3052 = vadd.xlane.f32.xlu2 %v7651_v27  ;;  %v7662_v50 = vpop.eup %5084 }
 0xa08   :  { %v5087_v38 = vpop.eup %5086 }
 0xa09   :  { %v2715_v29 = vmul.f32 %v5087_v38, %v7484_v9 }
 0xa0a   :  { %v2675_v54 = vpop.xlane.xlu2 %2674  ;;  %v2979_v3 = vpop.xlane.xlu1 %2978 }
 0xa0b   :  { %5088 = vrcp.f32 %v2675_v54  ;;  %v2999_v23 = vsub.f32 %v7461_v20, %v2979_v3 }
 0xa0d   :  { %v3026_v21 = vmul.f32 1.442695, %v2999_v23 }
 0xa0e   :  { %3056 = vadd.xlane.f32.xlu1 %v7662_v50 }
 0xa0f   :  { %5090 = vpow2.f32 %v3026_v21  ;;  %3680 = vmax.xlane.f32.xlu2 %v7638_v26 }
 0xa10   :  { %5092 = vpow2.f32 %v3028_v51 }
 0xa11   :  { %v5089_v2 = vpop.eup %5088 }
 0xa12   :  { %v7666_v8 = vpop.xlane.xlu2 %3326  ;;  %v2714_v13 = vmul.f32 %v5089_v2, %v7510_v12 }
 0xa13   :  { %v2679_v41 = vpop.xlane.xlu1 %2678  ;;  %v7670_v20 = vpop.xlane.xlu0 %3332 }
 0xa14   :  { %v2726_v11 = vpack.c.bf16 %v2715_v29, %v2714_v13  ;;  %5094 = vrcp.f32 %v2679_v41 }
 0xa15   :  { %v7672_v34 = vpop.eup %5090 }
 0xa16   :  { %v7674_v17 = vpop.eup %5092  ;;  %2806 = vmatmul.bf16.gmra.mxu0 %v2726_v11  ;;  %3058 = vadd.xlane.f32.xlu0 %v7672_v34  ;;  %v8250_v11 = vld [vmem:[#allocation33_spill] sm:$0xff] }
 0xa17   :  { %8249 = vst [vmem:[#allocation12_spill] sm:$0xff] %v7674_v17  ;;  %3060 = vadd.xlane.f32.xlu2 %v7674_v17 }
 0xa1a   :  { %v2681_v16 = vpop.xlane.xlu2 %2680  ;;  %v5095_v9 = vpop.eup %5094 }
 0xa1b   :  { %5096 = vrcp.f32 %v2681_v16  ;;  %v7678_v30 = vpop.xlane.xlu1 %3330  ;;  %v2683_v12 = vpop.xlane.xlu0 %2682  ;;  %v2716_v23 = vmul.f32 %v5095_v9, %v7522_v4 }
 0xa21   :  { %v5097_v54 = vpop.eup %5096 }
 0xa22   :  { %v7680_v3 = vpop.xlane.xlu2 %2984  ;;  %v2717_v51 = vmul.f32 %v5097_v54, %v7531_v35  ;;  %v8252_v35 = vld [vmem:[#allocation32_spill] sm:$0xff] }
 0xa23   :  { %v2983_v21 = vpop.xlane.xlu1 %2982  ;;  %v2987_v2 = vpop.xlane.xlu0 %2986 }
 0xa24   :  { %v3001_v38 = vsub.f32 %v7489_v57, %v2983_v21  ;;  %v2727_v13 = vpack.c.bf16 %v2717_v51, %v2716_v23 }
 0xa26   :  { %v3030_v29 = vmul.f32 1.442695, %v3001_v38  ;;  %2811 = vmatmul.bf16.gmra.mxu0 %v2727_v13 }
 0xa28   :  { %5098 = vpow2.f32 %v3030_v29 }
 0xa29   :  { %5100 = vrcp.f32 %v2683_v12 }
 0xa2a   :  { %v2689_v41 = vpop.xlane.xlu2 %2688  ;;  %3816 = vrot.lane.b32.xlu0 %v8250_v11, %s5296_s11 }
 0xa2b   :  { %v2685_v16 = vpop.xlane.xlu1 %2684  ;;  %v3037_v4 = vpop.xlane.xlu0 %3036 }
 0xa2c   :  { %5102 = vrcp.f32 %v2685_v16 }
 0xa2d   :  { %5104 = vrcp.f32 %v3037_v4 }
 0xa2e   :  { %v7687_v17 = vpop.eup %5098 }
 0xa2f   :  { %8251 = vst [vmem:[#allocation11_spill] sm:$0xff] %v7687_v17  ;;  %3818 = vrot.lane.b32.xlu2 %v8252_v35, %s5296_s11  ;;  %3062 = vadd.xlane.f32.xlu1 %v7687_v17  ;;  %v5101_v57 = vpop.eup %5100 }
 0xa30   :  { %v2718_v12 = vmul.f32 %v5101_v57, %v7533_v42 }
 0xa32   :  { %v5103_v9 = vpop.eup %5102  ;;  %v3039_v54 = vpop.xlane.xlu2 %3038 }
 0xa33   :  { %v2687_v23 = vpop.xlane.xlu1 %2686  ;;  %5106 = vrcp.f32 %v3039_v54  ;;  %v2719_v51 = vmul.f32 %v5103_v9, %v7558_v18  ;;  %v5105_v38 = vpop.eup %5104 }
 0xa34   :  { %5108 = vrcp.f32 %v2687_v23  ;;  %v3084_v29 = vmul.f32 %v5105_v38, %v7560_v58  ;;  %v3043_v54 = vpop.xlane.xlu0 %3042 }
 0xa35   :  { %v2728_v21 = vpack.c.bf16 %v2719_v51, %v2718_v12  ;;  %5110 = vrcp.f32 %v2689_v41  ;;  %v7702_v51 = vpop.f32.mrf.mxu0 }
 0xa36   :  { %5112 = vrcp.f32 %v3043_v54 }
 0xa37   :  { %2816 = vmatmul.bf16.gmra.mxu0 %v2728_v21 }
 0xa39   :  { %v5107_v13 = vpop.eup %5106 }
 0xa3a   :  { %v3085_v11 = vmul.f32 %v5107_v13, %v7570_v6  ;;  %v3391_v16 = vpop.xlane.xlu2 %3390  ;;  %v5109_v17 = vpop.eup %5108  ;;  %v8253_v6 = vld [vmem:[#allocation31_spill] sm:$0xff] }
 0xa3b   :  { %v7696_v4 = vpop.xlane.xlu1 %3668  ;;  %v5111_v42 = vpop.eup %5110  ;;  %v2720_v18 = vmul.f32 %v5109_v17, %v7566_v22 }
 0xa3c   :  { %v3100_v35 = vpack.c.bf16 %v3085_v11, %v3084_v29  ;;  %v2721_v9 = vmul.f32 %v5111_v42, %v7556_v55  ;;  %v5113_v58 = vpop.eup %5112  ;;  %v7706_v17 = vpop.xlane.xlu0 %3672  ;;  %v3003_v29 = vsub.f32 %v7508_v48, %v2987_v2 }
 0xa3d   :  { %v3087_v22 = vmul.f32 %v5113_v58, %v7572_v31  ;;  %v7708_v13 = vpop.f32.mrf.mxu3  ;;  %v7714_v31 = vpop.f32.mrf.mxu0 }
 0xa3e   :  { %3140 = vmatmul.bf16.vlgmr.msrb.gmra.mxu1 %v3100_v35  ;;  %v2729_v23 = vpack.c.bf16 %v2721_v9, %v2720_v18  ;;  %v3002_v35 = vsub.f32 %v7501_v44, %v7680_v3  ;;  %v3034_v42 = vmul.f32 1.442695, %v3003_v29  ;;  %v7721_v44 = vpop.f32.mrf.mxu2 }
 0xa40   :  { %v3032_v18 = vmul.f32 1.442695, %v3002_v35 }
 0xa42   :  { %v3041_v57 = vpop.xlane.xlu2 %3040 }
 0xa43   :  { %5114 = vrcp.f32 %v3041_v57  ;;  %v3393_v41 = vpop.xlane.xlu1 %3392 }
 0xa44   :  { %5116 = vrcp.f32 %v3393_v41 }
 0xa45   :  { %5118 = vrcp.f32 %v3391_v16  ;;  %v7718_v2 = vpop.f32.mrf.mxu3 }
 0xa46   :  { %5120 = vpow2.f32 %v3034_v42 }
 0xa47   :  { %2821 = vmatmul.bf16.gmra.mxu0 %v2729_v23  ;;  %5122 = vpow2.f32 %v3032_v18 }
 0xa48   :  { %3820 = vrot.lane.b32.xlu1 %v8253_v6, %s5296_s11 }
 0xa49   :  { %v5115_v12 = vpop.eup %5114 }
 0xa4a   :  { %v3671_v21 = vpop.xlane.xlu2 %3670  ;;  %v3086_v38 = vmul.f32 %v5115_v12, %v7588_v28  ;;  %v5117_v11 = vpop.eup %5116  ;;  %v3348_v12 = vsub.f32 %v7471_v63, %v7621_v7 }
 0xa4b   :  { %v5119_v54 = vpop.eup %5118  ;;  %v3439_v16 = vmul.f32 %v5117_v11, %v7586_v45  ;;  %v3349_v45 = vsub.f32 %v7482_v47, %v7647_v49  ;;  %v3699_v11 = vsub.f32 %v7568_v1, %v3671_v21  ;;  %v7740_v7 = vpop.f32.mrf.mxu2 }
 0xa4c   :  { %v3101_v55 = vpack.c.bf16 %v3087_v22, %v3086_v38  ;;  %v3438_v9 = vmul.f32 %v5119_v54, %v7579_v0  ;;  %v7725_v3 = vpop.eup %5120  ;;  %v3370_v47 = vmul.f32 1.442695, %v3348_v12 }
 0xa4d   :  { %v7729_v6 = vpop.eup %5122  ;;  %v3372_v22 = vmul.f32 1.442695, %v3349_v45  ;;  %v3718_v18 = vmul.f32 1.442695, %v3699_v11 }
 0xa4e   :  { %3145 = vmatmul.bf16.gmra.mxu1 %v3101_v55  ;;  %v3454_v48 = vpack.c.bf16 %v3439_v16, %v3438_v9 }
 0xa51   :  { %v3397_v41 = vpop.xlane.xlu0 %3396 }
 0xa52   :  { %v3045_v28 = vpop.xlane.xlu1 %3044  ;;  %v3395_v57 = vpop.xlane.xlu2 %3394  ;;  %5124 = vrcp.f32 %v3397_v41 }
 0xa53   :  { %5126 = vrcp.f32 %v3395_v57 }
 0xa54   :  { %3334 = vmax.xlane.f32.xlu0 %v7708_v13  ;;  %5128 = vrcp.f32 %v3045_v28  ;;  %v7727_v23 = vpop.f32.mrf.mxu0 }
 0xa57   :  { %3494 = vmatmul.bf16.vlgmr.msra.gmra.mxu0 %v3454_v48 }
 0xa58   :  { %3336 = vmax.xlane.f32.xlu2 %v7718_v2  ;;  %v5125_v38 = vpop.eup %5124 }
 0xa59   :  { %v5127_v55 = vpop.eup %5126  ;;  %v3441_v54 = vmul.f32 %v5125_v38, %v7602_v25 }
 0xa5a   :  { %v3675_v58 = vpop.xlane.xlu1 %3674  ;;  %v5129_v29 = vpop.eup %5128  ;;  %v3440_v35 = vmul.f32 %v5127_v55, %v7600_v37 }
 0xa5b   :  { %v3047_v0 = vpop.xlane.xlu2 %3046  ;;  %v3088_v42 = vmul.f32 %v5129_v29, %v7606_v24  ;;  %v3049_v37 = vpop.xlane.xlu0 %3048  ;;  %v3701_v21 = vsub.f32 %v7604_v60, %v3675_v58 }
 0xa5c   :  { %5130 = vrcp.f32 %v3047_v0  ;;  %3066 = vadd.xlane.f32.xlu0 %v7725_v3  ;;  %v7743_v28 = vpop.f32.mrf.mxu0  ;;  %v3455_v9 = vpack.c.bf16 %v3441_v54, %v3440_v35  ;;  %v7764_v60 = vpop.f32.mrf.mxu2 }
 0xa5d   :  { %5132 = vpow2.f32 %v3372_v22  ;;  %v3722_v38 = vmul.f32 1.442695, %v3701_v21 }
 0xa5e   :  { %5134 = vpow2.f32 %v3370_v47  ;;  %v3351_v47 = vsub.f32 %v7503_v56, %v7649_v10 }
 0xa60   :  { %3064 = vadd.xlane.f32.xlu2 %v7729_v6  ;;  %v3376_v35 = vmul.f32 1.442695, %v3351_v47 }
 0xa62   :  { %v5131_v49 = vpop.eup %5130  ;;  %v3399_v57 = vpop.xlane.xlu1 %3398 }
 0xa63   :  { %v3089_v63 = vmul.f32 %v5131_v49, %v7614_v14  ;;  %v7745_v1 = vpop.eup %5132  ;;  %5136 = vrcp.f32 %v3399_v57  ;;  %v3698_v14 = vsub.f32 %v7554_v61, %v7696_v4  ;;  %v3677_v4 = vpop.xlane.xlu0 %3676 }
 0xa64   :  { %3686 = vmax.xlane.f32.xlu0 %v7740_v7  ;;  %5138 = vpow2.f32 %v3718_v18  ;;  %v7748_v24 = vpop.eup %5134 }
 0xa65   :  { %v3102_v16 = vpack.c.bf16 %v3089_v63, %v3088_v42  ;;  %v3716_v0 = vmul.f32 1.442695, %v3698_v14  ;;  %v3350_v14 = vsub.f32 %v7493_v62, %v7666_v8  ;;  %v3352_v62 = vsub.f32 %v7512_v5, %v7678_v30 }
 0xa67   :  { %3150 = vmatmul.bf16.gmra.mxu1 %v3102_v16  ;;  %3499 = vmatmul.bf16.gmra.mxu0 %v3455_v9  ;;  %v3700_v16 = vsub.f32 %v7581_v36, %v7706_v17  ;;  %v7784_v9 = vpop.f32.mrf.mxu2 }
 0xa68   :  { %3404 = vadd.xlane.f32.xlu2 %v7745_v1 }
 0xa69   :  { %v3401_v25 = vpop.xlane.xlu2 %3400  ;;  %v5137_v48 = vpop.eup %5136 }
 0xa6a   :  { %5140 = vrcp.f32 %v3401_v25  ;;  %v7756_v45 = vpop.eup %5138  ;;  %v3442_v55 = vmul.f32 %v5137_v48, %v7626_v52  ;;  %v7769_v52 = vpop.f32.mrf.mxu3 }
 0xa6b   :  { %v7754_v41 = vpop.f32.mrf.mxu0  ;;  %5142 = vrcp.f32 %v3049_v37  ;;  %v3702_v37 = vsub.f32 %v7617_v43, %v3677_v4 }
 0xa6c   :  { %3402 = vadd.xlane.f32.xlu0 %v7748_v24 }
 0xa70   :  { %v5141_v12 = vpop.eup %5140  ;;  %3750 = vadd.xlane.f32.xlu2 %v7756_v45 }
 0xa71   :  { %v3051_v22 = vpop.xlane.xlu1 %3050  ;;  %v3443_v61 = vmul.f32 %v5141_v12, %v7633_v19  ;;  %v5143_v49 = vpop.eup %5142  ;;  %v3374_v12 = vmul.f32 1.442695, %v3350_v14 }
 0xa72   :  { %5144 = vrcp.f32 %v3051_v22  ;;  %v7761_v29 = vpop.xlane.xlu2 %3678  ;;  %3684 = vmax.xlane.f32.xlu1 %v7721_v44  ;;  %v3090_v42 = vmul.f32 %v5143_v49, %v7612_v15  ;;  %v3720_v15 = vmul.f32 1.442695, %v3700_v16 }
 0xa73   :  { %5146 = vpow2.f32 %v3716_v0  ;;  %v3456_v58 = vpack.c.bf16 %v3443_v61, %v3442_v55  ;;  %v7771_v19 = vpop.f32.mrf.mxu0  ;;  %v3724_v0 = vmul.f32 1.442695, %v3702_v37  ;;  %v7803_v55 = vpop.f32.mrf.mxu2  ;;  %v3703_v61 = vsub.f32 %v7630_v39, %v7761_v29 }
 0xa74   :  { %3688 = vmax.xlane.f32.xlu0 %v7764_v60  ;;  %5148 = vpow2.f32 %v3722_v38 }
 0xa75   :  { %5150 = vpow2.f32 %v3376_v35  ;;  %v3726_v30 = vmul.f32 1.442695, %v3703_v61 }
 0xa77   :  { %3504 = vmatmul.bf16.gmra.mxu0 %v3456_v58  ;;  %v3378_v58 = vmul.f32 1.442695, %v3352_v62  ;;  %v8255_v62 = vld [vmem:[#allocation11_spill] sm:$0xff] }
 0xa78   :  { %v5145_v11 = vpop.eup %5144  ;;  %3338 = vmax.xlane.f32.xlu2 %v7769_v52 }
 0xa79   :  { %v7774_v54 = vpop.eup %5146  ;;  %v3091_v63 = vmul.f32 %v5145_v11, %v7642_v59  ;;  %v7787_v59 = vpop.f32.mrf.mxu3 }
 0xa7a   :  { %v3055_v56 = vpop.xlane.xlu0 %3054  ;;  %3748 = vadd.xlane.f32.xlu1 %v7774_v54  ;;  %v7779_v10 = vpop.eup %5148 }
 0xa7b   :  { %v3053_v18 = vpop.xlane.xlu2 %3052  ;;  %v3103_v57 = vpack.c.bf16 %v3091_v63, %v3090_v42  ;;  %5152 = vrcp.f32 %v3055_v56  ;;  %v7790_v25 = vpop.f32.mrf.mxu0 }
 0xa7c   :  { %3754 = vadd.xlane.f32.xlu0 %v7779_v10  ;;  %5154 = vrcp.f32 %v3053_v18  ;;  %v7792_v36 = vpop.eup %5150  ;;  %v3683_v21 = vpop.xlane.xlu1 %3682 }
 0xa7d   :  { %3155 = vmatmul.bf16.gmra.mxu1 %v3103_v57  ;;  %5156 = vpow2.f32 %v3720_v15  ;;  %v3705_v39 = vsub.f32 %v7653_v32, %v3683_v21  ;;  %v7821_v35 = vpop.f32.mrf.mxu2  ;;  %v3353_v15 = vsub.f32 %v7520_v33, %v7670_v20 }
 0xa7e   :  { %5158 = vpow2.f32 %v3724_v0 }
 0xa7f   :  { %5160 = vpow2.f32 %v3374_v12  ;;  %v3730_v63 = vmul.f32 1.442695, %v3705_v39 }
 0xa80   :  { %3690 = vmax.xlane.f32.xlu2 %v7784_v9 }
 0xa81   :  { %v5153_v17 = vpop.eup %5152 }
 0xa82   :  { %3340 = vmax.xlane.f32.xlu1 %v7787_v59  ;;  %v5155_v48 = vpop.eup %5154  ;;  %v3093_v43 = vmul.f32 %v5153_v17, %v7655_v40 }
 0xa83   :  { %v3092_v38 = vmul.f32 %v5155_v48, %v7651_v27  ;;  %v7801_v22 = vpop.eup %5156  ;;  %v3681_v8 = vpop.xlane.xlu2 %3680 }
 0xa84   :  { %3408 = vadd.xlane.f32.xlu0 %v7792_v36  ;;  %v7810_v27 = vpop.f32.mrf.mxu0  ;;  %v3704_v47 = vsub.f32 %v7638_v26, %v3681_v8  ;;  %v3057_v49 = vpop.xlane.xlu1 %3056 }
 0xa85   :  { %v3104_v4 = vpack.c.bf16 %v3093_v43, %v3092_v38  ;;  %v7814_v5 = vpop.eup %5158  ;;  %v8254_v38 = vld [vmem:[#allocation12_spill] sm:$0xff] }
 0xa86   :  { %v7817_v11 = vpop.eup %5160  ;;  %v3728_v29 = vmul.f32 1.442695, %v3704_v47 }
 0xa88   :  { %3666 = vmax.xlane.f32.xlu2 %v7542_v46 }
 0xa89   :  { %v3059_v40 = vpop.xlane.xlu0 %3058 }
 0xa8a   :  { %3752 = vadd.xlane.f32.xlu1 %v7801_v22  ;;  %5162 = vrcp.f32 %v3059_v40 }
 0xa8b   :  { %5164 = vrcp.f32 %v3057_v49  ;;  %v3061_v21 = vpop.xlane.xlu2 %3060 }
 0xa8c   :  { %3664 = vmax.xlane.f32.xlu0 %v7524_v53  ;;  %5166 = vpow2.f32 %v3378_v58 }
 0xa8d   :  { %3160 = vmatmul.bf16.gmra.mxu1 %v3104_v4  ;;  %5168 = vpow2.f32 %v3726_v30 }
 0xa8e   :  { %5170 = vpow2.f32 %v3728_v29 }
 0xa8f   :  { %5172 = vpow2.f32 %v3730_v63 }
 0xa90   :  { %3756 = vadd.xlane.f32.xlu2 %v7814_v5  ;;  %v5163_v42 = vpop.eup %5162  ;;  %5174 = vrcp.f32 %v3061_v21 }
 0xa91   :  { %v5165_v56 = vpop.eup %5164  ;;  %v3095_v18 = vmul.f32 %v5163_v42, %v7672_v34  ;;  %v3380_v34 = vmul.f32 1.442695, %v3353_v15 }
 0xa92   :  { %3406 = vadd.xlane.f32.xlu1 %v7817_v11  ;;  %v7826_v16 = vpop.eup %5166  ;;  %v3094_v57 = vmul.f32 %v5165_v56, %v7662_v50 }
 0xa93   :  { %v7823_v26 = vpop.f32.mrf.mxu0  ;;  %v7830_v32 = vpop.eup %5168  ;;  %5176 = vpow2.f32 %v3380_v34 }
 0xa94   :  { %3694 = vmax.xlane.f32.xlu0 %v7821_v35  ;;  %v7836_v37 = vpop.eup %5170  ;;  %v3105_v14 = vpack.c.bf16 %v3095_v18, %v3094_v57  ;;  %v3819_v49 = vpop.permute.xlu2 %3818 }
 0xa95   :  { %v7841_v48 = vpop.eup %5172 }
 0xa96   :  { %v5175_v20 = vpop.eup %5174 }
 0xa97   :  { %v3096_v43 = vmul.f32 %v5175_v20, %v8254_v38 }
 0xa98   :  { %3410 = vadd.xlane.f32.xlu2 %v7826_v16 }
 0xa99   :  { %v7847_v0 = vpop.eup %5176 }
 0xa9a   :  { %3758 = vadd.xlane.f32.xlu1 %v7830_v32 }
 0xa9b   :  { %v7838_v17 = vpop.f32.mrf.mxu0 }
 0xa9c   :  { %3760 = vadd.xlane.f32.xlu0 %v7836_v37  ;;  %v3817_v30 = vpop.permute.xlu0 %3816 }
 0xa9d   :  { %3165 = vmatmul.bf16.gmra.mxu1 %v3105_v14 }
 0xaa0   :  { %3762 = vadd.xlane.f32.xlu2 %v7841_v48 }
 0xaa2   :  { %v3063_v50 = vpop.xlane.xlu1 %3062  ;;  %3692 = vmax.xlane.f32.xlu1 %v7803_v55 }
 0xaa3   :  { %5178 = vrcp.f32 %v3063_v50  ;;  %v7845_v33 = vpop.f32.mrf.mxu0 }
 0xaa9   :  { %v5179_v12 = vpop.eup %5178 }
 0xaaa   :  { %3412 = vadd.xlane.f32.xlu1 %v7847_v0  ;;  %v3097_v8 = vmul.f32 %v5179_v12, %v8255_v62 }
 0xaab   :  { %v7852_v61 = vpop.f32.mrf.mxu0 }
 0xaac   :  { %v3106_v40 = vpack.c.bf16 %v3097_v8, %v3096_v43 }
 0xaae   :  { %3170 = vmatmul.bf16.gmra.mxu1 %v3106_v40 }
 0xab4   :  { %v7854_v4 = vpop.f32.mrf.mxu0 }
 0xaba   :  { %v3821_v58 = vpop.permute.xlu1 %3820 }
 0xabb   :  { %3845 = vmatpush.bf16.msrb.mxu0 %v3821_v58  ;;  %4489 = vmatpush.bf16.msra.mxu1 %v3821_v58  ;;  %v7858_v39 = vpop.f32.mrf.mxu1 }
 0xabc   :  { %v7856_v47 = vpop.f32.mrf.mxu0 }
 0xabf   :  { %3846 = vmatpush.bf16.msrb.mxu0 %v3819_v49  ;;  %4490 = vmatpush.bf16.msra.mxu1 %v3819_v49 }
 0xac3   :  { %3847 = vmatpush.bf16.msrb.mxu0 %v3817_v30  ;;  %4491 = vmatpush.bf16.msra.mxu1 %v3817_v30  ;;  %v7863_v57 = vpop.f32.mrf.mxu1 }
 0xac4   :  { %v7860_v29 = vpop.f32.mrf.mxu0 }
 0xac7   :  { %v3335_v42 = vpop.xlane.xlu0 %3334 }
 0xac8   :  { %v3354_v63 = vsub.f32 %v7708_v13, %v3335_v42 }
 0xaca   :  { %v3382_v56 = vmul.f32 1.442695, %v3354_v63 }
 0xacb   :  { %v3337_v18 = vpop.xlane.xlu2 %3336  ;;  %v7875_v38 = vpop.f32.mrf.mxu1 }
 0xacc   :  { %5180 = vpow2.f32 %v3382_v56  ;;  %v3355_v15 = vsub.f32 %v7718_v2, %v3337_v18  ;;  %v7866_v14 = vpop.f32.mrf.mxu0 }
 0xace   :  { %v3384_v34 = vmul.f32 1.442695, %v3355_v15 }
 0xacf   :  { %v3067_v21 = vpop.xlane.xlu0 %3066 }
 0xad0   :  { %5182 = vpow2.f32 %v3384_v34 }
 0xad1   :  { %5184 = vrcp.f32 %v3067_v21 }
 0xad2   :  { %v7868_v50 = vpop.eup %5180 }
 0xad3   :  { %v3065_v20 = vpop.xlane.xlu2 %3064  ;;  %3414 = vadd.xlane.f32.xlu1 %v7868_v50  ;;  %v7885_v15 = vpop.f32.mrf.mxu1 }
 0xad4   :  { %5186 = vrcp.f32 %v3065_v20  ;;  %v7871_v13 = vpop.f32.mrf.mxu0 }
 0xad6   :  { %v7873_v12 = vpop.eup %5182 }
 0xad7   :  { %3416 = vadd.xlane.f32.xlu0 %v7873_v12  ;;  %v3687_v2 = vpop.xlane.xlu0 %3686  ;;  %v5185_v43 = vpop.eup %5184 }
 0xad8   :  { %v3707_v62 = vsub.f32 %v7740_v7, %v3687_v2  ;;  %v3099_v30 = vmul.f32 %v5185_v43, %v7725_v3 }
 0xada   :  { %v5187_v8 = vpop.eup %5186  ;;  %v3734_v40 = vmul.f32 1.442695, %v3707_v62 }
 0xadb   :  { %v3405_v58 = vpop.xlane.xlu2 %3404  ;;  %v3098_v49 = vmul.f32 %v5187_v8, %v7729_v6 }
 0xadc   :  { %5188 = vpow2.f32 %v3734_v40  ;;  %v7881_v42 = vpop.f32.mrf.mxu0 }
 0xadd   :  { %v3107_v56 = vpack.c.bf16 %v3099_v30, %v3098_v49  ;;  %5190 = vrcp.f32 %v3405_v58 }
 0xadf   :  { %3175 = vmatmul.bf16.gmra.mxu1 %v3107_v56  ;;  %v3403_v18 = vpop.xlane.xlu0 %3402 }
 0xae0   :  { %5192 = vrcp.f32 %v3403_v18 }
 0xae2   :  { %v7887_v7 = vpop.eup %5188 }
 0xae3   :  { %v3751_v34 = vpop.xlane.xlu2 %3750  ;;  %3766 = vadd.xlane.f32.xlu1 %v7887_v7  ;;  %v5191_v6 = vpop.eup %5190 }
 0xae4   :  { %v3445_v62 = vmul.f32 %v5191_v6, %v7745_v1  ;;  %v7893_v8 = vpop.f32.mrf.mxu1 }
 0xae5   :  { %v3685_v3 = vpop.xlane.xlu1 %3684 }
 0xae6   :  { %v5193_v21 = vpop.eup %5192  ;;  %v3706_v20 = vsub.f32 %v7721_v44, %v3685_v3 }
 0xae7   :  { %v3689_v2 = vpop.xlane.xlu0 %3688  ;;  %v3444_v43 = vmul.f32 %v5193_v21, %v7748_v24 }
 0xae8   :  { %v3732_v40 = vmul.f32 1.442695, %v3706_v20  ;;  %v3708_v58 = vsub.f32 %v7764_v60, %v3689_v2 }
 0xae9   :  { %v3457_v49 = vpack.c.bf16 %v3445_v62, %v3444_v43 }
 0xaea   :  { %5194 = vpow2.f32 %v3732_v40  ;;  %v3736_v30 = vmul.f32 1.442695, %v3708_v58 }
 0xaeb   :  { %5196 = vrcp.f32 %v3751_v34  ;;  %v3339_v56 = vpop.xlane.xlu2 %3338  ;;  %3509 = vmatmul.bf16.gmra.mxu0 %v3457_v49 }
 0xaec   :  { %5198 = vpow2.f32 %v3736_v30  ;;  %v3356_v18 = vsub.f32 %v7769_v52, %v3339_v56  ;;  %v7902_v6 = vpop.f32.mrf.mxu1 }
 0xaed   :  { %v3749_v44 = vpop.xlane.xlu1 %3748 }
 0xaee   :  { %v3386_v3 = vmul.f32 1.442695, %v3356_v18  ;;  %5200 = vrcp.f32 %v3749_v44 }
 0xaef   :  { %v3755_v24 = vpop.xlane.xlu0 %3754 }
 0xaf0   :  { %v7897_v21 = vpop.eup %5194  ;;  %5202 = vpow2.f32 %v3386_v3 }
 0xaf1   :  { %v5197_v1 = vpop.eup %5196  ;;  %3764 = vadd.xlane.f32.xlu2 %v7897_v21 }
 0xaf2   :  { %v7900_v60 = vpop.eup %5198  ;;  %v3795_v2 = vmul.f32 %v5197_v1, %v7756_v45 }
 0xaf3   :  { %v3691_v34 = vpop.xlane.xlu2 %3690  ;;  %3768 = vadd.xlane.f32.xlu1 %v7900_v60 }
 0xaf4   :  { %v5201_v20 = vpop.eup %5200  ;;  %v3709_v52 = vsub.f32 %v7784_v9, %v3691_v34 }
 0xaf5   :  { %v3794_v43 = vmul.f32 %v5201_v20, %v7774_v54  ;;  %v3341_v62 = vpop.xlane.xlu1 %3340 }
 0xaf6   :  { %v7908_v40 = vpop.eup %5202  ;;  %v3738_v58 = vmul.f32 1.442695, %v3709_v52  ;;  %v3357_v49 = vsub.f32 %v7787_v59, %v3341_v62 }
 0xaf7   :  { %v3809_v30 = vpack.c.bf16 %v3795_v2, %v3794_v43  ;;  %3418 = vadd.xlane.f32.xlu0 %v7908_v40  ;;  %v3409_v56 = vpop.xlane.xlu0 %3408 }
 0xaf8   :  { %5204 = vpow2.f32 %v3738_v58  ;;  %v3388_v18 = vmul.f32 1.442695, %v3357_v49  ;;  %v7926_v58 = vpop.f32.mrf.mxu0 }
 0xaf9   :  { %3853 = vmatmul.bf16.vlgmr.msra.gmra.mxu1 %v3809_v30 }
 0xafa   :  { %5206 = vpow2.f32 %v3388_v18  ;;  %v7912_v44 = vpop.f32.mrf.mxu1 }
 0xafb   :  { %v3667_v9 = vpop.xlane.xlu2 %3666  ;;  %5208 = vrcp.f32 %v3755_v24 }
 0xafc   :  { %v3697_v45 = vsub.f32 %v7542_v46, %v3667_v9 }
 0xafd   :  { %v3753_v54 = vpop.xlane.xlu1 %3752 }
 0xafe   :  { %v7915_v3 = vpop.eup %5204  ;;  %v3714_v1 = vmul.f32 1.442695, %v3697_v45  ;;  %5210 = vrcp.f32 %v3753_v54 }
 0xaff   :  { %3770 = vadd.xlane.f32.xlu0 %v7915_v3  ;;  %v3665_v59 = vpop.xlane.xlu0 %3664 }
 0xb00   :  { %v7918_v34 = vpop.eup %5206  ;;  %5212 = vpow2.f32 %v3714_v1  ;;  %v3696_v20 = vsub.f32 %v7524_v53, %v3665_v59 }
 0xb01   :  { %3420 = vadd.xlane.f32.xlu2 %v7918_v34  ;;  %v5209_v52 = vpop.eup %5208  ;;  %5214 = vrcp.f32 %v3409_v56 }
 0xb02   :  { %v3712_v2 = vmul.f32 1.442695, %v3696_v20  ;;  %v7922_v24 = vpop.f32.mrf.mxu1  ;;  %v3797_v53 = vmul.f32 %v5209_v52, %v7779_v10 }
 0xb03   :  { %v4656_v46 = vpack.i.bf16 %v7922_v24, %v7912_v44  ;;  %v3757_v43 = vpop.xlane.xlu2 %3756 }
 0xb04   :  { %v5211_v62 = vpop.eup %5210  ;;  %5216 = vpow2.f32 %v3712_v2 }
 0xb05   :  { %v3407_v49 = vpop.xlane.xlu1 %3406  ;;  %v3796_v30 = vmul.f32 %v5211_v62, %v7801_v22 }
 0xb06   :  { %v7930_v18 = vpop.eup %5212  ;;  %5218 = vrcp.f32 %v3407_v49 }
 0xb07   :  { %3746 = vadd.xlane.f32.xlu1 %v7930_v18  ;;  %v3695_v9 = vpop.xlane.xlu0 %3694  ;;  %v3810_v56 = vpack.c.bf16 %v3797_v53, %v3796_v30  ;;  %v5215_v54 = vpop.eup %5214  ;;  %5220 = vrcp.f32 %v3757_v43 }
 0xb08   :  { %v3711_v45 = vsub.f32 %v7821_v35, %v3695_v9  ;;  %v3447_v62 = vmul.f32 %v5215_v54, %v7792_v36  ;;  %v3502_v35 = vpop.f32.mrf.mxu0 }
 0xb09   :  { %3858 = vmatmul.bf16.gmra.mxu1 %v3810_v56 }
 0xb0a   :  { %v7934_v1 = vpop.eup %5216  ;;  %v3742_v59 = vmul.f32 1.442695, %v3711_v45  ;;  %v7936_v20 = vpop.f32.mrf.mxu1 }
 0xb0b   :  { %3744 = vadd.xlane.f32.xlu2 %v7934_v1  ;;  %v3411_v22 = vpop.xlane.xlu2 %3410 }
 0xb0c   :  { %v5219_v10 = vpop.eup %5218  ;;  %5222 = vpow2.f32 %v3742_v59 }
 0xb0d   :  { %v3759_v52 = vpop.xlane.xlu1 %3758  ;;  %v3446_v2 = vmul.f32 %v5219_v10, %v7817_v11  ;;  %v5221_v30 = vpop.eup %5220 }
 0xb0e   :  { %5224 = vrcp.f32 %v3759_v52  ;;  %v3798_v11 = vmul.f32 %v5221_v30, %v7814_v5  ;;  %v4626_v5 = vpack.i.bf16 %v7885_v15, %v7875_v38 }
 0xb0f   :  { %v3458_v49 = vpack.c.bf16 %v3447_v62, %v3446_v2  ;;  %v3761_v62 = vpop.xlane.xlu0 %3760 }
 0xb10   :  { %v3505_v2 = vpop.f32.mrf.mxu0 }
 0xb11   :  { %3514 = vmatmul.bf16.gmra.mxu0 %v3458_v49 }
 0xb12   :  { %v7941_v53 = vpop.eup %5222  ;;  %v7943_v9 = vpop.f32.mrf.mxu1 }
 0xb13   :  { %v4671_v43 = vpack.i.bf16 %v7943_v9, %v7936_v20  ;;  %3774 = vadd.xlane.f32.xlu2 %v7941_v53  ;;  %v3763_v54 = vpop.xlane.xlu2 %3762 }
 0xb14   :  { %v5225_v56 = vpop.eup %5224  ;;  %5226 = vrcp.f32 %v3763_v54 }
 0xb15   :  { %v3693_v45 = vpop.xlane.xlu1 %3692  ;;  %v3799_v36 = vmul.f32 %v5225_v56, %v7830_v32 }
 0xb16   :  { %v3710_v59 = vsub.f32 %v7803_v55, %v3693_v45 }
 0xb17   :  { %v3811_v10 = vpack.c.bf16 %v3799_v36, %v3798_v11 }
 0xb18   :  { %v3740_v52 = vmul.f32 1.442695, %v3710_v59  ;;  %v3507_v11 = vpop.f32.mrf.mxu0 }
 0xb19   :  { %3863 = vmatmul.bf16.gmra.mxu1 %v3811_v10  ;;  %v4646_v59 = vpack.i.bf16 %v3507_v11, %v3505_v2 }
 0xb1a   :  { %5228 = vpow2.f32 %v3740_v52  ;;  %v7951_v49 = vpop.f32.mrf.mxu1  ;;  %v5227_v32 = vpop.eup %5226 }
 0xb1b   :  { %5230 = vrcp.f32 %v3411_v22  ;;  %v3801_v36 = vmul.f32 %v5227_v32, %v7841_v48 }
 0xb1c   :  { %5232 = vrcp.f32 %v3761_v62 }
 0xb1d   :  { %v3413_v63 = vpop.xlane.xlu1 %3412 }
 0xb1e   :  { %5234 = vrcp.f32 %v3413_v63 }
 0xb20   :  { %v7955_v30 = vpop.eup %5228  ;;  %4627 = vrot.lane.b32.xlu1 %v4626_v5, %s5296_s11  ;;  %v4631_v5 = vpack.i.bf16 %v3502_v35, %v7926_v58 }
 0xb21   :  { %v5231_v55 = vpop.eup %5230  ;;  %3772 = vadd.xlane.f32.xlu0 %v7955_v30 }
 0xb22   :  { %v5233_v56 = vpop.eup %5232  ;;  %v7959_v45 = vpop.f32.mrf.mxu1  ;;  %v3448_v38 = vmul.f32 %v5231_v55, %v7826_v16 }
 0xb23   :  { %v3800_v15 = vmul.f32 %v5233_v56, %v7836_v37  ;;  %v4641_v37 = vpack.i.bf16 %v7902_v6, %v7893_v8 }
 0xb24   :  { %v5235_v54 = vpop.eup %5234 }
 0xb25   :  { %v3449_v63 = vmul.f32 %v5235_v54, %v7847_v0  ;;  %v3812_v52 = vpack.c.bf16 %v3801_v36, %v3800_v15 }
 0xb27   :  { %v3459_v10 = vpack.c.bf16 %v3449_v63, %v3448_v38 }
 0xb28   :  { %4647 = vrot.lane.b32.xlu1 %v4646_v59, %s5294_s9 }
 0xb29   :  { %3519 = vmatmul.bf16.gmra.mxu0 %v3459_v10  ;;  %3868 = vmatmul.bf16.gmra.mxu1 %v3812_v52 }
 0xb2b   :  { %v7968_v62 = vpop.f32.mrf.mxu1 }
 0xb33   :  { %v7971_v22 = vpop.f32.mrf.mxu1 }
 0xb34   :  { %v4701_v16 = vpack.i.bf16 %v7971_v22, %v7968_v62 }
 0xb35   :  { %4632 = vrot.lane.b32.xlu0 %v4631_v5, %s5294_s9 }
 0xb3d   :  { %4642 = vrot.lane.b32.xlu0 %v4641_v37, %s5296_s11 }
 0xb46   :  { %v3415_v48 = vpop.xlane.xlu1 %3414 }
 0xb47   :  { %5236 = vrcp.f32 %v3415_v48 }
 0xb4a   :  { %v3417_v0 = vpop.xlane.xlu0 %3416 }
 0xb4b   :  { %5238 = vrcp.f32 %v3417_v0 }
 0xb4d   :  { %v5237_v2 = vpop.eup %5236 }
 0xb4e   :  { %v3450_v58 = vmul.f32 %v5237_v2, %v7868_v50 }
 0xb51   :  { %v5239_v32 = vpop.eup %5238 }
 0xb52   :  { %v3451_v35 = vmul.f32 %v5239_v32, %v7873_v12 }
 0xb54   :  { %v3460_v55 = vpack.c.bf16 %v3451_v35, %v3450_v58 }
 0xb56   :  { %3524 = vmatmul.bf16.gmra.mxu0 %v3460_v55  ;;  %v3767_v11 = vpop.xlane.xlu1 %3766 }
 0xb57   :  { %5240 = vrcp.f32 %v3767_v11 }
 0xb5c   :  { %v7981_v56 = vpop.f32.mrf.mxu1 }
 0xb5d   :  { %v5241_v38 = vpop.eup %5240 }
 0xb5e   :  { %v3803_v12 = vmul.f32 %v5241_v38, %v7887_v7 }
 0xb64   :  { %v7983_v36 = vpop.f32.mrf.mxu1  ;;  %v3765_v8 = vpop.xlane.xlu2 %3764 }
 0xb65   :  { %v4716_v6 = vpack.i.bf16 %v7983_v36, %v7981_v56  ;;  %5242 = vrcp.f32 %v3765_v8 }
 0xb66   :  { %v3769_v59 = vpop.xlane.xlu1 %3768 }
 0xb67   :  { %5244 = vrcp.f32 %v3769_v59 }
 0xb68   :  { %v3510_v54 = vpop.f32.mrf.mxu0 }
 0xb6a   :  { %v3419_v63 = vpop.xlane.xlu0 %3418 }
 0xb6b   :  { %v5243_v15 = vpop.eup %5242  ;;  %5246 = vrcp.f32 %v3419_v63 }
 0xb6c   :  { %v3802_v50 = vmul.f32 %v5243_v15, %v7897_v21 }
 0xb6d   :  { %v5245_v2 = vpop.eup %5244 }
 0xb6e   :  { %v3813_v10 = vpack.c.bf16 %v3803_v12, %v3802_v50  ;;  %v3804_v11 = vmul.f32 %v5245_v2, %v7900_v60 }
 0xb70   :  { %3873 = vmatmul.bf16.gmra.mxu1 %v3813_v10  ;;  %v3512_v52 = vpop.f32.mrf.mxu0 }
 0xb71   :  { %v4661_v5 = vpack.i.bf16 %v3512_v52, %v3510_v54  ;;  %v5247_v32 = vpop.eup %5246 }
 0xb72   :  { %v3771_v37 = vpop.xlane.xlu0 %3770  ;;  %v3452_v35 = vmul.f32 %v5247_v32, %v7908_v40 }
 0xb73   :  { %5248 = vrcp.f32 %v3771_v37  ;;  %4662 = vrot.lane.b32.xlu1 %v4661_v5, %s5294_s9 }
 0xb74   :  { %v3421_v48 = vpop.xlane.xlu2 %3420 }
 0xb75   :  { %5250 = vrcp.f32 %v3421_v48  ;;  %v8256_v48 = vpack.i.bf16 %v7959_v45, %v7951_v49  ;;  %v4711_v49 = vpack.i.bf16 %v7863_v57, %v7858_v39 }
 0xb76   :  { %v3854_v0 = vpop.f32.mrf.mxu1 }
 0xb79   :  { %v5249_v58 = vpop.eup %5248 }
 0xb7a   :  { %v3805_v21 = vmul.f32 %v5249_v58, %v7915_v3  ;;  %v3747_v50 = vpop.xlane.xlu1 %3746 }
 0xb7b   :  { %v5251_v7 = vpop.eup %5250 }
 0xb7c   :  { %v3453_v55 = vmul.f32 %v5251_v7, %v7918_v34  ;;  %v3814_v63 = vpack.c.bf16 %v3805_v21, %v3804_v11 }
 0xb7e   :  { %v3856_v8 = vpop.f32.mrf.mxu1  ;;  %v3745_v54 = vpop.xlane.xlu2 %3744  ;;  %v3461_v38 = vpack.c.bf16 %v3453_v55, %v3452_v35 }
 0xb7f   :  { %v4636_v15 = vpack.i.bf16 %v3856_v8, %v3854_v0  ;;  %5252 = vrcp.f32 %v3745_v54 }
 0xb80   :  { %3529 = vmatmul.bf16.gmra.mxu0 %v3461_v38  ;;  %3878 = vmatmul.bf16.gmra.mxu1 %v3814_v63  ;;  %5254 = vrcp.f32 %v3747_v50 }
 0xb81   :  { %4637 = vrot.lane.b32.xlu2 %v4636_v15, %s5295_s10 }
 0xb85   :  { %v5253_v12 = vpop.eup %5252 }
 0xb86   :  { %v3859_v3 = vpop.f32.mrf.mxu1  ;;  %v5255_v59 = vpop.eup %5254  ;;  %v3792_v60 = vmul.f32 %v5253_v12, %v7934_v1 }
 0xb87   :  { %v3793_v40 = vmul.f32 %v5255_v59, %v7930_v18  ;;  %v3775_v37 = vpop.xlane.xlu2 %3774 }
 0xb88   :  { %5256 = vrcp.f32 %v3775_v37 }
 0xb89   :  { %4657 = vrot.lane.b32.xlu2 %v4656_v46, %s5296_s11  ;;  %v3808_v34 = vpack.c.bf16 %v3793_v40, %v3792_v60 }
 0xb8e   :  { %v3515_v10 = vpop.f32.mrf.mxu0  ;;  %v3861_v52 = vpop.f32.mrf.mxu1 }
 0xb8f   :  { %v4651_v5 = vpack.i.bf16 %v3861_v52, %v3859_v3  ;;  %v5257_v18 = vpop.eup %5256 }
 0xb90   :  { %3848 = vmatmul.bf16.vlgmr.msrb.gmra.mxu0 %v3808_v34  ;;  %v3807_v20 = vmul.f32 %v5257_v18, %v7941_v53 }
 0xb91   :  { %4652 = vrot.lane.b32.xlu0 %v4651_v5, %s5295_s10  ;;  %4672 = vrot.lane.b32.xlu2 %v4671_v43, %s5296_s11 }
 0xb92   :  { %v4628_v55 = vpop.permute.xlu1 %4627 }
 0xb93   :  { %v4630_v22 = vunpack.i.h.bf16 %v4628_v55  ;;  %v4629_v62 = vunpack.i.l.bf16 %v4628_v55 }
 0xb94   :  { %v3773_v44 = vpop.xlane.xlu0 %3772 }
 0xb95   :  { %5258 = vrcp.f32 %v3773_v44  ;;  %v4084_v39 = vsel %vm395_vm0, %v7743_v28, %v4630_v22  ;;  %v4083_v38 = vsel %vm395_vm0, %v7727_v23, %v4629_v62 }
 0xb96   :  { %v3517_v24 = vpop.f32.mrf.mxu0  ;;  %v3864_v46 = vpop.f32.mrf.mxu1 }
 0xb97   :  { %v4676_v1 = vpack.i.bf16 %v3517_v24, %v3515_v10 }
 0xb99   :  { %4677 = vrot.lane.b32.xlu1 %v4676_v1, %s5294_s9  ;;  %4687 = vrot.lane.b32.xlu2 %v8256_v48, %s5296_s11 }
 0xb9a   :  { %v4648_v24 = vpop.permute.xlu1 %4647 }
 0xb9b   :  { %v5259_v0 = vpop.eup %5258  ;;  %v4650_v56 = vunpack.i.h.bf16 %v4648_v24  ;;  %v4649_v36 = vunpack.i.l.bf16 %v4648_v24 }
 0xb9c   :  { %v3806_v2 = vmul.f32 %v5259_v0, %v7955_v30 }
 0xb9e   :  { %v3866_v9 = vpop.f32.mrf.mxu1  ;;  %v3815_v43 = vpack.c.bf16 %v3807_v20, %v3806_v2 }
 0xb9f   :  { %v4666_v32 = vpack.i.bf16 %v3866_v9, %v3864_v46 }
 0xba0   :  { %3883 = vmatmul.bf16.gmra.mxu1 %v3815_v43 }
 0xba1   :  { %4667 = vrot.lane.b32.xlu0 %v4666_v32, %s5295_s10  ;;  %4702 = vrot.lane.b32.xlu2 %v4701_v16, %s5296_s11 }
 0xba6   :  { %v3520_v58 = vpop.f32.mrf.mxu0  ;;  %v3869_v21 = vpop.f32.mrf.mxu1 }
 0xba7   :  { %v4633_v11 = vpop.permute.xlu0 %4632 }
 0xba8   :  { %v4635_v16 = vunpack.i.h.bf16 %v4633_v11  ;;  %v4634_v8 = vunpack.i.l.bf16 %v4633_v11 }
 0xba9   :  { %4712 = vrot.lane.b32.xlu2 %v4711_v49, %s5296_s11 }
 0xbaa   :  { %v4100_v3 = vsel %vm2012_vm1, %v4084_v39, %v4635_v16  ;;  %v4099_v12 = vsel %vm2012_vm1, %v4083_v38, %v4634_v8 }
 0xbae   :  { %v3522_v30 = vpop.f32.mrf.mxu0  ;;  %v3871_v53 = vpop.f32.mrf.mxu1 }
 0xbaf   :  { %v4691_v45 = vpack.i.bf16 %v3522_v30, %v3520_v58  ;;  %v4681_v7 = vpack.i.bf16 %v3871_v53, %v3869_v21  ;;  %v4643_v10 = vpop.permute.xlu0 %4642 }
 0xbb0   :  { %v4645_v37 = vunpack.i.h.bf16 %v4643_v10  ;;  %v4644_v44 = vunpack.i.l.bf16 %v4643_v10 }
 0xbb1   :  { %4692 = vrot.lane.b32.xlu1 %v4691_v45, %s5294_s9  ;;  %4682 = vrot.lane.b32.xlu0 %v4681_v7, %s5295_s10  ;;  %v8257_v7 = vpack.i.bf16 %v7881_v42, %v7871_v13 }
 0xbb2   :  { %v4086_v46 = vsel %vm395_vm0, %v7771_v19, %v4645_v37  ;;  %v4085_v1 = vsel %vm395_vm0, %v7754_v41, %v4644_v44 }
 0xbb3   :  { %v4101_v43 = vsel %vm2012_vm1, %v4085_v1, %v4649_v36  ;;  %v4102_v32 = vsel %vm2012_vm1, %v4086_v46, %v4650_v56 }
 0xbd3   :  { %v3525_v35 = vpop.f32.mrf.mxu0 }
 0xbdb   :  { %v4638_v57 = vpop.permute.xlu2 %4637  ;;  %v3527_v54 = vpop.f32.mrf.mxu0 }
 0xbdc   :  { %v4640_v63 = vunpack.i.h.bf16 %v4638_v57  ;;  %v4639_v15 = vunpack.i.l.bf16 %v4638_v57  ;;  %v4706_v50 = vpack.i.bf16 %v3527_v54, %v3525_v35 }
 0xbde   :  { %v4115_v59 = vsel %vm2029_vm2, %v4099_v12, %v4639_v15  ;;  %v4116_v60 = vsel %vm2029_vm2, %v4100_v3, %v4640_v63  ;;  %4707 = vrot.lane.b32.xlu1 %v4706_v50, %s5294_s9 }
 0xbdf   :  { %v4130_v40 = vpack.c.bf16 %v4116_v60, %v4115_v59 }
 0xbe1   :  { %4150 = vmatmul.bf16.vlgmr.msra.gmra.mxu3 %v4130_v40 }
 0xbe3   :  { %v4658_v21 = vpop.permute.xlu2 %4657 }
 0xbe4   :  { %v4660_v53 = vunpack.i.h.bf16 %v4658_v21  ;;  %v4659_v45 = vunpack.i.l.bf16 %v4658_v21 }
 0xbe5   :  { %v4663_v30 = vpop.permute.xlu1 %4662 }
 0xbe6   :  { %4717 = vrot.lane.b32.xlu1 %v4716_v6, %s5296_s11  ;;  %v4665_v35 = vunpack.i.h.bf16 %v4663_v30  ;;  %v4664_v55 = vunpack.i.l.bf16 %v4663_v30  ;;  %v4088_v22 = vsel %vm395_vm0, %v7810_v27, %v4660_v53  ;;  %v4087_v62 = vsel %vm395_vm0, %v7790_v25, %v4659_v45 }
 0xbe8   :  { %v4103_v39 = vsel %vm2012_vm1, %v4087_v62, %v4664_v55  ;;  %v4104_v57 = vsel %vm2012_vm1, %v4088_v22, %v4665_v35 }
 0xbeb   :  { %v4673_v27 = vpop.permute.xlu2 %4672 }
 0xbec   :  { %v4674_v25 = vunpack.i.l.bf16 %v4673_v27  ;;  %v4675_v3 = vunpack.i.h.bf16 %v4673_v27 }
 0xbed   :  { %v3874_v23 = vpop.f32.mrf.mxu1 }
 0xbee   :  { %v4089_v40 = vsel %vm395_vm0, %v7823_v26, %v4674_v25  ;;  %v8072_v26 = vld [vmem:[%s8128_s3 + $0x1] ss:$0 sm:$0xff]  ;;  %s5297_s3 = smov [#allocation2]  }
 0xbf5   :  { %v3876_v28 = vpop.f32.mrf.mxu1 }
 0xbf6   :  { %v4696_v34 = vpack.i.bf16 %v3876_v28, %v3874_v23 }
 0xbf8   :  { %4697 = vrot.lane.b32.xlu0 %v4696_v34, %s5295_s10  ;;  %v4090_v34 = vsel %vm395_vm0, %v7838_v17, %v4675_v3  ;;  %v4688_v17 = vpop.permute.xlu2 %4687 }
 0xbf9   :  { %v4690_v36 = vunpack.i.h.bf16 %v4688_v17 }
 0xbfd   :  { %v3530_v52 = vpop.f32.mrf.mxu0  ;;  %v3879_v5 = vpop.f32.mrf.mxu1 }
 0xc03   :  { %v4653_v18 = vpop.permute.xlu0 %4652 }
 0xc04   :  { %v4655_v6 = vunpack.i.h.bf16 %v4653_v18  ;;  %v4654_v48 = vunpack.i.l.bf16 %v4653_v18 }
 0xc05   :  { %v3532_v0 = vpop.f32.mrf.mxu0  ;;  %v3881_v2 = vpop.f32.mrf.mxu1 }
 0xc06   :  { %v4731_v20 = vpack.i.bf16 %v3532_v0, %v3530_v52  ;;  %v4721_v9 = vpack.i.bf16 %v3881_v2, %v3879_v5  ;;  %v4117_v58 = vsel %vm2029_vm2, %v4101_v43, %v4654_v48  ;;  %v4118_v19 = vsel %vm2029_vm2, %v4102_v32, %v4655_v6 }
 0xc07   :  { %v4131_v41 = vpack.c.bf16 %v4118_v19, %v4117_v58  ;;  %v4689_v6 = vunpack.i.l.bf16 %v4688_v17 }
 0xc08   :  { %4732 = vrot.lane.b32.xlu2 %v4731_v20, %s5294_s9  ;;  %4722 = vrot.lane.b32.xlu0 %v4721_v9, %s5295_s10  ;;  %v4092_v20 = vsel %vm395_vm0, %v7852_v61, %v4690_v36  ;;  %v4703_v61 = vpop.permute.xlu2 %4702 }
 0xc09   :  { %4155 = vmatmul.bf16.gmra.mxu3 %v4131_v41  ;;  %v4091_v9 = vsel %vm395_vm0, %v7845_v33, %v4689_v6  ;;  %v4704_v33 = vunpack.i.l.bf16 %v4703_v61 }
 0xc0b   :  { %v4678_v50 = vpop.permute.xlu1 %4677  ;;  %v4093_v62 = vsel %vm395_vm0, %v7854_v4, %v4704_v33 }
 0xc0c   :  { %v4679_v12 = vunpack.i.l.bf16 %v4678_v50  ;;  %v4680_v59 = vunpack.i.h.bf16 %v4678_v50 }
 0xc0d   :  { %v3849_v49 = vpop.f32.mrf.mxu0 }
 0xc0e   :  { %v4105_v10 = vsel %vm2012_vm1, %v4089_v40, %v4679_v12  ;;  %v4106_v5 = vsel %vm2012_vm1, %v4090_v34, %v4680_v59 }
 0xc10   :  { %4727 = vrot.lane.b32.xlu0 %v8257_v7, %s5294_s9  ;;  %v4705_v7 = vunpack.i.h.bf16 %v4703_v61 }
 0xc12   :  { %v4094_v22 = vsel %vm395_vm0, %v7856_v47, %v4705_v7 }
 0xc13   :  { %v4668_v11 = vpop.permute.xlu0 %4667 }
 0xc14   :  { %v4670_v16 = vunpack.i.h.bf16 %v4668_v11  ;;  %v4669_v8 = vunpack.i.l.bf16 %v4668_v11 }
 0xc15   :  { %v3851_v54 = vpop.f32.mrf.mxu0 }
 0xc16   :  { %v4736_v38 = vpack.i.bf16 %v3851_v54, %v3849_v49  ;;  %v4119_v13 = vsel %vm2029_vm2, %v4103_v39, %v4669_v8  ;;  %v4120_v42 = vsel %vm2029_vm2, %v4104_v57, %v4670_v16 }
 0xc17   :  { %v4132_v63 = vpack.c.bf16 %v4120_v42, %v4119_v13 }
 0xc18   :  { %4737 = vrot.lane.b32.xlu1 %v4736_v38, %s5295_s10 }
 0xc19   :  { %4160 = vmatmul.bf16.gmra.mxu3 %v4132_v63  ;;  %v4713_v63 = vpop.permute.xlu2 %4712 }
 0xc1a   :  { %v4714_v47 = vunpack.i.l.bf16 %v4713_v63 }
 0xc1c   :  { %v4081_v12 = vsel %vm395_vm0, %v7702_v51, %v4714_v47 }
 0xc1d   :  { %v3884_v15 = vpop.f32.mrf.mxu1 }
 0xc23   :  { %v4683_v60 = vpop.permute.xlu0 %4682  ;;  %v4693_v18 = vpop.permute.xlu1 %4692 }
 0xc24   :  { %v4685_v23 = vunpack.i.h.bf16 %v4683_v60  ;;  %v4684_v28 = vunpack.i.l.bf16 %v4683_v60  ;;  %v4695_v48 = vunpack.i.h.bf16 %v4693_v18  ;;  %v4694_v0 = vunpack.i.l.bf16 %v4693_v18 }
 0xc25   :  { %v3886_v52 = vpop.f32.mrf.mxu1 }
 0xc26   :  { %v4741_v37 = vpack.i.bf16 %v3886_v52, %v3884_v15  ;;  %v4121_v44 = vsel %vm2029_vm2, %v4105_v10, %v4684_v28  ;;  %v4122_v24 = vsel %vm2029_vm2, %v4106_v5, %v4685_v23  ;;  %v4107_v58 = vsel %vm2012_vm1, %v4091_v9, %v4694_v0 }
 0xc27   :  { %v4133_v46 = vpack.c.bf16 %v4122_v24, %v4121_v44  ;;  %v4108_v19 = vsel %vm2012_vm1, %v4092_v20, %v4695_v48  ;;  %v4715_v15 = vunpack.i.h.bf16 %v4713_v63 }
 0xc28   :  { %4742 = vrot.lane.b32.xlu0 %v4741_v37, %s5295_s10  ;;  %s4228_s10 = sshll.u32 %s5297_s3, 4  ;;  %s4229_s10 = int_to_ptr.vmem [resolvable:$true] %s4228_s10 }
 0xc29   :  { %4165 = vmatmul.bf16.gmra.mxu3 %v4133_v46  ;;  %v4082_v3 = vsel %vm395_vm0, %v7714_v31, %v4715_v15 }
 0xc50   :  { %v4708_v45 = vpop.permute.xlu1 %4707 }
 0xc51   :  { %v4710_v35 = vunpack.i.h.bf16 %v4708_v45  ;;  %v4709_v55 = vunpack.i.l.bf16 %v4708_v45 }
 0xc53   :  { %v4110_v39 = vsel %vm2012_vm1, %v4094_v22, %v4710_v35  ;;  %v4109_v57 = vsel %vm2012_vm1, %v4093_v62, %v4709_v55 }
 0xc58   :  { %v4718_v42 = vpop.permute.xlu1 %4717 }
 0xc59   :  { %v4720_v44 = vunpack.i.h.bf16 %v4718_v42  ;;  %v4719_v24 = vunpack.i.l.bf16 %v4718_v42 }
 0xc5b   :  { %v4096_v18 = vsel %vm395_vm0, %v7866_v14, %v4720_v44 }
 0xc62   :  { %v4733_v31 = vpop.permute.xlu2 %4732 }
 0xc63   :  { %v4735_v46 = vunpack.i.h.bf16 %v4733_v31  ;;  %v4734_v17 = vunpack.i.l.bf16 %v4733_v31 }
 0xc64   :  { %v4151_v1 = vpop.f32.mrf.mxu3 }
 0xc65   :  { %v4193_v56 = vmul.f32 %v8072_v26, %v4151_v1  ;;  %v4112_v48 = vsel %vm2012_vm1, %v4096_v18, %v4735_v46 }
 0xc67   :  { %4210 = vst [vmem:[#allocation2 + $0x90] sm:$0xff] %v4193_v56  ;;  %v4095_v56 = vsel %vm395_vm0, %v7860_v29, %v4719_v24 }
 0xc68   :  { %v4111_v0 = vsel %vm2012_vm1, %v4095_v56, %v4734_v17 }
 0xc6a   :  { %v4698_v2 = vpop.permute.xlu0 %4697 }
 0xc6b   :  { %v4700_v43 = vunpack.i.h.bf16 %v4698_v2  ;;  %v4699_v32 = vunpack.i.l.bf16 %v4698_v2 }
 0xc6c   :  { %v4153_v41 = vpop.f32.mrf.mxu3 }
 0xc6d   :  { %v4194_v21 = vmul.f32 %v8072_v26, %v4153_v41  ;;  %v4123_v49 = vsel %vm2029_vm2, %v4107_v58, %v4699_v32  ;;  %v4124_v30 = vsel %vm2029_vm2, %v4108_v19, %v4700_v43 }
 0xc6e   :  { %v4134_v53 = vpack.c.bf16 %v4124_v30, %v4123_v49 }
 0xc6f   :  { %4211 = vst [vmem:[#allocation2 + $0x98] sm:$0xff] %v4194_v21 }
 0xc70   :  { %4170 = vmatmul.bf16.gmra.mxu3 %v4134_v53 }
 0xc7a   :  { %v4723_v11 = vpop.permute.xlu0 %4722 }
 0xc7b   :  { %v4725_v16 = vunpack.i.h.bf16 %v4723_v11  ;;  %v4724_v8 = vunpack.i.l.bf16 %v4723_v11 }
 0xc7d   :  { %v4125_v54 = vsel %vm2029_vm2, %v4109_v57, %v4724_v8  ;;  %v4126_v38 = vsel %vm2029_vm2, %v4110_v39, %v4725_v16 }
 0xc7e   :  { %v4135_v13 = vpack.c.bf16 %v4126_v38, %v4125_v54 }
 0xc80   :  { %4175 = vmatmul.bf16.gmra.mxu3 %v4135_v13 }
 0xc82   :  { %v4728_v27 = vpop.permute.xlu0 %4727 }
 0xc83   :  { %v4730_v50 = vunpack.i.h.bf16 %v4728_v27  ;;  %v4729_v25 = vunpack.i.l.bf16 %v4728_v27 }
 0xc85   :  { %v4098_v40 = vsel %vm2012_vm1, %v4082_v3, %v4730_v50  ;;  %v4097_v23 = vsel %vm2012_vm1, %v4081_v12, %v4729_v25 }
 0xc8a   :  { %v4738_v4 = vpop.permute.xlu1 %4737 }
 0xc8b   :  { %v4740_v59 = vunpack.i.h.bf16 %v4738_v4  ;;  %v4739_v60 = vunpack.i.l.bf16 %v4738_v4 }
 0xc8c   :  { %v4156_v10 = vpop.f32.mrf.mxu3 }
 0xc8d   :  { %v4113_v28 = vsel %vm2029_vm2, %v4097_v23, %v4739_v60  ;;  %v4114_v34 = vsel %vm2029_vm2, %v4098_v40, %v4740_v59  ;;  %v4195_v5 = vmul.f32 %v8072_v26, %v4156_v10 }
 0xc8e   :  { %v4129_v52 = vpack.c.bf16 %v4114_v34, %v4113_v28 }
 0xc8f   :  { %4212 = vst [vmem:[#allocation2 + $0xa0] sm:$0xff] %v4195_v5 }
 0xc90   :  { %4145 = vmatmul.bf16.vlgmr.msrb.gmra.mxu2 %v4129_v52 }
 0xc94   :  { %v4158_v37 = vpop.f32.mrf.mxu3 }
 0xc95   :  { %v4196_v51 = vmul.f32 %v8072_v26, %v4158_v37 }
 0xc97   :  { %4213 = vst [vmem:[#allocation2 + $0xa8] sm:$0xff] %v4196_v51 }
 0xc9a   :  { %v4743_v1 = vpop.permute.xlu0 %4742 }
 0xc9b   :  { %v4745_v36 = vunpack.i.h.bf16 %v4743_v1  ;;  %v4744_v6 = vunpack.i.l.bf16 %v4743_v1 }
 0xc9c   :  { %v4161_v2 = vpop.f32.mrf.mxu3 }
 0xc9d   :  { %v4127_v20 = vsel %vm2029_vm2, %v4111_v0, %v4744_v6  ;;  %v4128_v9 = vsel %vm2029_vm2, %v4112_v48, %v4745_v36  ;;  %v4197_v43 = vmul.f32 %v8072_v26, %v4161_v2 }
 0xc9e   :  { %v4136_v32 = vpack.c.bf16 %v4128_v9, %v4127_v20 }
 0xc9f   :  { %4214 = vst [vmem:[#allocation2 + $0xb0] sm:$0xff] %v4197_v43 }
 0xca0   :  { %4180 = vmatmul.bf16.gmra.mxu3 %v4136_v32 }
 0xca4   :  { %v4163_v14 = vpop.f32.mrf.mxu3 }
 0xca5   :  { %v4198_v58 = vmul.f32 %v8072_v26, %v4163_v14 }
 0xca7   :  { %4215 = vst [vmem:[#allocation2 + $0xb8] sm:$0xff] %v4198_v58 }
 0xcac   :  { %v4166_v29 = vpop.f32.mrf.mxu3 }
 0xcad   :  { %v4199_v19 = vmul.f32 %v8072_v26, %v4166_v29 }
 0xcaf   :  { %4216 = vst [vmem:[#allocation2 + $0xc0] sm:$0xff] %v4199_v19 }
 0xcb4   :  { %v4168_v41 = vpop.f32.mrf.mxu3 }
 0xcb5   :  { %v4200_v21 = vmul.f32 %v8072_v26, %v4168_v41 }
 0xcb7   :  { %4217 = vst [vmem:[#allocation2 + $0xc8] sm:$0xff] %v4200_v21 }
 0xcf3   :  { %v4171_v49 = vpop.f32.mrf.mxu3 }
 0xcf4   :  { %v4201_v30 = vmul.f32 %v8072_v26, %v4171_v49 }
 0xcf6   :  { %4218 = vst [vmem:[#allocation2 + $0xd0] sm:$0xff] %v4201_v30 }
 0xcfb   :  { %v4173_v53 = vpop.f32.mrf.mxu3 }
 0xcfc   :  { %v4202_v61 = vmul.f32 %v8072_v26, %v4173_v53 }
 0xcfe   :  { %4219 = vst [vmem:[#allocation2 + $0xd8] sm:$0xff] %v4202_v61 }
 0xd03   :  { %v4176_v45 = vpop.f32.mrf.mxu3 }
 0xd04   :  { %v4203_v7 = vmul.f32 %v8072_v26, %v4176_v45 }
 0xd06   :  { %4220 = vst [vmem:[#allocation2 + $0xe0] sm:$0xff] %v4203_v7 }
 0xd0b   :  { %v4178_v33 = vpop.f32.mrf.mxu3 }
 0xd0c   :  { %v4204_v35 = vmul.f32 %v8072_v26, %v4178_v33 }
 0xd0e   :  { %4221 = vst [vmem:[#allocation2 + $0xe8] sm:$0xff] %v4204_v35 }
 0xd13   :  { %v4146_v55 = vpop.f32.mrf.mxu2 }
 0xd14   :  { %v4191_v11 = vmul.f32 %v8072_v26, %v4146_v55 }
 0xd16   :  { %4208 = vst [vmem:[#allocation2 + $0x80] sm:$0xff] %v4191_v11 }
 0xd1b   :  { %v4148_v22 = vpop.f32.mrf.mxu2 }
 0xd1c   :  { %v4192_v62 = vmul.f32 %v8072_v26, %v4148_v22 }
 0xd1e   :  { %4209 = vst [vmem:[#allocation2 + $0x88] sm:$0xff] %v4192_v62 }
 0xd23   :  { %v4181_v16 = vpop.f32.mrf.mxu3 }
 0xd24   :  { %v4205_v8 = vmul.f32 %v8072_v26, %v4181_v16 }
 0xd26   :  { %4222 = vst [vmem:[#allocation2 + $0xf0] sm:$0xff] %v4205_v8 }
 0xd2b   :  { %v4183_v39 = vpop.f32.mrf.mxu3 }
 0xd2c   :  { %v4206_v57 = vmul.f32 %v8072_v26, %v4183_v39 }
 0xd2e   :  { %4223 = vst [vmem:[#allocation2 + $0xf8] sm:$0xff] %v4206_v57 }
 0xd2f   :  { %4236 = dma.vmem_to_hbm [thread:$0]  %s4229_s10, 4096, %s4231_s19, [#allocation3], %s5298_s20, %s5298_s20, %s5299_s21  }
 0xd30   :  { %5292 = dma.done.wait [#allocation3], 4096  }
 0xd31   :  { %5293 = vsyncadd [#allocation3], 4294963200 }
 0xd32   :  { %4241 = vsyncpa [#allocation3], 1 }

</bundles_post_ra>
